<compile_context>
chip_gen: v5e
topology: v5e:2x2
jax: 0.10.0
libtpu: 0.0.40
codegen_flags: <defaults>
</compile_context>

<pallas_src>
import functools
import jax
import jax.numpy as jnp
from jax import lax
from jax.experimental import pallas as pl
from jax.experimental.pallas import tpu as pltpu

F32 = jnp.float32
BF16 = jnp.bfloat16


# ----------------------------- in-kernel helpers ----------------------------

def _conv3x3_from_padded(pad_ref, w_ref, H, W, Cin, Cout):
    """3x3 'same' conv from an H-padded VMEM scratch.

    pad_ref: (H+2, W, Cin) f32 ref; rows 0 and H+1 are zero, rows 1..H hold the activation.
    w_ref:   (9, Cin, Cout) bf16 ref, tap order k = kh*3 + kw (torch (kh, kw) order).
    Returns an f32 (H*W, Cout) accumulator.
    """
    col = lax.broadcasted_iota(jnp.int32, (H, W, Cin), 1)
    m_left = col >= 1          # valid when reading x[.., w-1, ..]
    m_right = col < (W - 1)    # valid when reading x[.., w+1, ..]
    acc = jnp.zeros((H * W, Cout), dtype=jnp.float32)
    for kh in range(3):
        rows = pad_ref[pl.ds(kh, H), :, :]                 # (H, W, Cin) f32
        for kw in range(3):
            if kw == 0:        # x[h+kh-1, w-1]
                tap = jnp.where(m_left, pltpu.roll(rows, 1, 1), jnp.zeros_like(rows))
            elif kw == 1:      # x[h+kh-1, w]
                tap = rows
            else:              # x[h+kh-1, w+1]
                tap = jnp.where(m_right, pltpu.roll(rows, W - 1, 1), jnp.zeros_like(rows))
            acc = acc + jnp.dot(tap.reshape(H * W, Cin).astype(jnp.bfloat16),
                                w_ref[kh * 3 + kw],
                                preferred_element_type=jnp.float32)
    return acc


# ------------------------------- Pallas kernels ------------------------------

def _stem_kernel(x_ref, w0_ref, cb0_ref, w1_ref, b1_ref, o_ref, pad0, pad1,
                 *, H, W, Cf, Dm):
    # conv0 (3x3, coord channels folded into cb0) + ReLU
    z_cf = jnp.zeros((1, W, Cf), jnp.float32)
    pad0[pl.ds(0, 1), :, :] = z_cf
    pad0[pl.ds(H + 1, 1), :, :] = z_cf
    pad0[pl.ds(1, H), :, :] = x_ref[0].astype(jnp.float32)
    h0 = _conv3x3_from_padded(pad0, w0_ref, H, W, Cf, Dm) + cb0_ref[...]
    h0 = jnp.maximum(h0, 0.0)                              # (HW, Dm) f32
    # conv1 (3x3) + ReLU
    z_dm = jnp.zeros((1, W, Dm), jnp.float32)
    pad1[pl.ds(0, 1), :, :] = z_dm
    pad1[pl.ds(H + 1, 1), :, :] = z_dm
    pad1[pl.ds(1, H), :, :] = h0.reshape(H, W, Dm)
    h1 = _conv3x3_from_padded(pad1, w1_ref, H, W, Dm, Dm) + b1_ref[...]
    h1 = jnp.maximum(h1, 0.0)
    o_ref[0] = h1.astype(o_ref.dtype)


def _film_module_kernel(h_ref, wp_ref, cbp_ref, wc_ref, g_ref, bb_ref, o_ref, pad,
                        *, H, W, Dm):
    # 1x1 input_proj (coord channels + bias folded into cbp) + ReLU -> residual
    y1 = jnp.dot(h_ref[0], wp_ref[...], preferred_element_type=jnp.float32) + cbp_ref[...]
    y1 = jnp.maximum(y1, 0.0)                              # (HW, Dm) f32
    # 3x3 conv on y1 (zero 'same' padding) via H-padded scratch + sublane rolls
    z = jnp.zeros((1, W, Dm), jnp.float32)
    pad[pl.ds(0, 1), :, :] = z
    pad[pl.ds(H + 1, 1), :, :] = z
    pad[pl.ds(1, H), :, :] = y1.reshape(H, W, Dm)
    yc = _conv3x3_from_padded(pad, wc_ref, H, W, Dm, Dm)
    # FiLM (bn-film path; conv bias folded: bb = gamma*bias + beta), ReLU, residual
    yc = g_ref[0] * yc + bb_ref[0]
    yc = jnp.maximum(yc, 0.0)
    o_ref[0] = (y1 + yc).astype(o_ref.dtype)


def _cls_head_kernel(h_ref, wc_ref, cbc_ref, o_ref, *, H, W, P):
    # 1x1 classifier proj (coords + bias folded into cbc) + ReLU
    p = jnp.dot(h_ref[0], wc_ref[...], preferred_element_type=jnp.float32) + cbc_ref[...]
    p = jnp.maximum(p, 0.0)                                # (HW, P) f32
    # 2x2 max-pool: pair-max over H rows (leading-axis reshape), then pair-max over W
    # columns via a sublane roll.  Even columns of the output hold the pooled values;
    # the (tiny) even-column selection is done by the caller.
    pr = p.reshape(H // 2, 2, W, P)
    q = jnp.maximum(pr[:, 0], pr[:, 1])                    # (H/2, W, P)
    qs = pltpu.roll(q, W - 1, 1)                           # qs[:, w] = q[:, w+1 (mod W)]
    o_ref[0] = jnp.maximum(q, qs).astype(o_ref.dtype)


def _linear_kernel(x_ref, w_ref, b_ref, o_ref, acc_ref, *, apply_relu):
    k = pl.program_id(0)

    @pl.when(k == 0)
    def _init():
        acc_ref[...] = jnp.zeros_like(acc_ref)

    acc_ref[...] += jnp.dot(x_ref[...], w_ref[...], preferred_element_type=jnp.float32)

    @pl.when(k == pl.num_programs(0) - 1)
    def _fin():
        y = acc_ref[...] + b_ref[...]
        if apply_relu:
            y = jnp.maximum(y, 0.0)
        o_ref[...] = y.astype(o_ref.dtype)


# ------------------------------ Pallas wrappers ------------------------------

def stem_forward(x_nhwc, w0, cb0, w1, b1, *, Dm):
    N, H, W, Cf = x_nhwc.shape
    HW = H * W
    kernel = functools.partial(_stem_kernel, H=H, W=W, Cf=Cf, Dm=Dm)
    return pl.pallas_call(
        kernel,
        out_shape=jax.ShapeDtypeStruct((N, HW, Dm), BF16),
        grid=(N,),
        in_specs=[
            pl.BlockSpec((1, H, W, Cf), lambda n: (n, 0, 0, 0)),
            pl.BlockSpec((9, Cf, Dm), lambda n: (0, 0, 0)),
            pl.BlockSpec((HW, Dm), lambda n: (0, 0)),
            pl.BlockSpec((9, Dm, Dm), lambda n: (0, 0, 0)),
            pl.BlockSpec((1, Dm), lambda n: (0, 0)),
        ],
        out_specs=pl.BlockSpec((1, HW, Dm), lambda n: (n, 0, 0)),
        scratch_shapes=[pltpu.VMEM((H + 2, W, Cf), F32),
                        pltpu.VMEM((H + 2, W, Dm), F32)],
        compiler_params=pltpu.CompilerParams(dimension_semantics=("parallel",)),
    )(x_nhwc, w0, cb0, w1, b1)


def film_module(h, wp, cbp, wc, gamma, bb, *, H, W, Dm):
    N, HW, _ = h.shape
    kernel = functools.partial(_film_module_kernel, H=H, W=W, Dm=Dm)
    return pl.pallas_call(
        kernel,
        out_shape=jax.ShapeDtypeStruct((N, HW, Dm), BF16),
        grid=(N,),
        in_specs=[
            pl.BlockSpec((1, HW, Dm), lambda n: (n, 0, 0)),
            pl.BlockSpec((Dm, Dm), lambda n: (0, 0)),
            pl.BlockSpec((HW, Dm), lambda n: (0, 0)),
            pl.BlockSpec((9, Dm, Dm), lambda n: (0, 0, 0)),
            pl.BlockSpec((1, 1, Dm), lambda n: (n, 0, 0)),   # gamma
            pl.BlockSpec((1, 1, Dm), lambda n: (n, 0, 0)),   # beta' = gamma*bias + beta
        ],
        out_specs=pl.BlockSpec((1, HW, Dm), lambda n: (n, 0, 0)),
        scratch_shapes=[pltpu.VMEM((H + 2, W, Dm), F32)],
        compiler_params=pltpu.CompilerParams(dimension_semantics=("parallel",)),
    )(h, wp, cbp, wc, gamma, bb)


def cls_head(h, wc, cbc, *, H, W, Dm, P):
    N, HW, _ = h.shape
    Hh = H // 2
    kernel = functools.partial(_cls_head_kernel, H=H, W=W, P=P)
    return pl.pallas_call(
        kernel,
        out_shape=jax.ShapeDtypeStruct((N, Hh, W, P), BF16),
        grid=(N,),
        in_specs=[
            pl.BlockSpec((1, HW, Dm), lambda n: (n, 0, 0)),
            pl.BlockSpec((Dm, P), lambda n: (0, 0)),
            pl.BlockSpec((HW, P), lambda n: (0, 0)),
        ],
        out_specs=pl.BlockSpec((1, Hh, W, P), lambda n: (n, 0, 0, 0)),
        compiler_params=pltpu.CompilerParams(dimension_semantics=("parallel",)),
    )(h, wc, cbc)


def linear(x, w, b, *, apply_relu, out_dtype):
    N, Din = x.shape
    Dout = w.shape[1]
    if Din <= 512:
        tk = Din
    else:
        tk = Din
        for cand in (512, 256, 128):
            if Din % cand == 0:
                tk = cand
                break
    nk = Din // tk
    kernel = functools.partial(_linear_kernel, apply_relu=apply_relu)
    return pl.pallas_call(
        kernel,
        out_shape=jax.ShapeDtypeStruct((N, Dout), out_dtype),
        grid=(nk,),
        in_specs=[
            pl.BlockSpec((N, tk), lambda k: (0, k)),
            pl.BlockSpec((tk, Dout), lambda k: (k, 0)),
            pl.BlockSpec((1, Dout), lambda k: (0, 0)),
        ],
        out_specs=pl.BlockSpec((N, Dout), lambda k: (0, 0)),
        scratch_shapes=[pltpu.VMEM((N, Dout), F32)],
        compiler_params=pltpu.CompilerParams(dimension_semantics=("arbitrary",)),
    )(x, w, b)


# --------------------------------- glue (JAX) --------------------------------

def make_coords(H, W):
    """coord_map semantics: channel 0 varies over width, channel 1 over height, in [-1,1]."""
    xs = jnp.linspace(-1.0, 1.0, W)
    ys = jnp.linspace(-1.0, 1.0, H)
    xc = jnp.broadcast_to(xs[None, :], (H, W))
    yc = jnp.broadcast_to(ys[:, None], (H, W))
    return jnp.stack([xc, yc], axis=-1).astype(F32)        # (H, W, 2)


def init_params(key, *, Cf, H, W, Dm, num_modules, P, F1, A):
    Hh, Wh = H // 2, W // 2
    keys = iter(jax.random.split(key, 64))

    def nrm(k, shape, fan_in, dtype):
        return (jax.random.normal(k, shape, F32) / jnp.sqrt(float(fan_in))).astype(dtype)

    p = {}
    # stem: two 3x3 convs (Cf+2 -> Dm -> Dm); coord-channel weights kept separately (folded
    # into a precomputed additive bias at trace time)
    p["stem_w0"] = nrm(next(keys), (9, Cf, Dm), 9 * (Cf + 2), BF16)
    p["stem_w0c"] = nrm(next(keys), (9, 2, Dm), 9 * (Cf + 2), F32)
    p["stem_b0"] = jnp.zeros((Dm,), F32)
    p["stem_w1"] = nrm(next(keys), (9, Dm, Dm), 9 * Dm, BF16)
    p["stem_b1"] = jnp.zeros((1, Dm), F32)
    # FiLMed res blocks: 1x1 input_proj (Dm+2 -> Dm), 3x3 conv1 (Dm -> Dm)
    for i in range(num_modules):
        p[f"m{i}_proj_w"] = nrm(next(keys), (Dm, Dm), Dm + 2, BF16)
        p[f"m{i}_proj_wc"] = nrm(next(keys), (2, Dm), Dm + 2, F32)
        p[f"m{i}_proj_b"] = nrm(next(keys), (Dm,), Dm, F32)
        p[f"m{i}_conv_w"] = nrm(next(keys), (9, Dm, Dm), 9 * Dm, BF16)
        p[f"m{i}_conv_b"] = nrm(next(keys), (Dm,), Dm, F32)
    # classifier: 1x1 proj (Dm+2 -> P), maxpool2, FC (P*Hh*Wh -> F1) + ReLU, FC (F1 -> A)
    p["cls_proj_w"] = nrm(next(keys), (Dm, P), Dm + 2, BF16)
    p["cls_proj_wc"] = nrm(next(keys), (2, P), Dm + 2, F32)
    p["cls_proj_b"] = jnp.zeros((P,), F32)
    p["fc1_w"] = nrm(next(keys), (Hh * Wh * P, F1), Hh * Wh * P, BF16)
    p["fc1_b"] = jnp.zeros((1, F1), F32)
    p["fc2_w"] = nrm(next(keys), (F1, A), F1, BF16)
    p["fc2_b"] = jnp.zeros((1, A), F32)
    return p


def filmed_net_forward(x_nchw, film, params, *, Dm, num_modules, P, F1):
    """FiLMedNet.forward with defaults: bn-film, use_gamma/use_beta/use_coords=1,
    residual blocks, no batchnorm, no dropout, maxpool2 classifier."""
    N, Cf, H, W = x_nchw.shape
    HW = H * W
    Hh, Wh = H // 2, W // 2
    # TODO(synk): general spatial sizes (e.g. 14x14) need masked tail handling for the
    # in-kernel tile-exact reshapes; this implementation assumes W % 8 == 0 and even H, W.
    assert W % 8 == 0 and H % 2 == 0 and W % 2 == 0

    x = jnp.transpose(x_nchw, (0, 2, 3, 1)).astype(BF16)   # NCHW -> NHWC
    coords = make_coords(H, W)                              # (H, W, 2)
    coords_flat = coords.reshape(HW, 2)

    # split film into per-module gammas / betas (raw gamma, matching FiLMedNet.forward)
    gammas, betas = jnp.split(film[:, :, :2 * Dm], 2, axis=-1)   # each (N, M, Dm)

    # --- stem: fold coord-channel contribution of conv0 into a per-pixel bias ---
    cpad = jnp.pad(coords, ((1, 1), (1, 1), (0, 0)))
    cb0 = params["stem_b0"][None, :]
    for kh in range(3):
        for kw in range(3):
            tap = cpad[kh:kh + H, kw:kw + W, :].reshape(HW, 2)
            cb0 = cb0 + tap @ params["stem_w0c"][kh * 3 + kw]    # (HW, Dm) f32
    h = stem_forward(x, params["stem_w0"], cb0, params["stem_w1"], params["stem_b1"], Dm=Dm)

    # --- FiLMed res blocks (module k consumes module k-1 output) ---
    for i in range(num_modules):
        cbp = coords_flat @ params[f"m{i}_proj_wc"] + params[f"m{i}_proj_b"][None, :]
        g = gammas[:, i, :]
        bb = g * params[f"m{i}_conv_b"][None, :] + betas[:, i, :]   # fold conv bias into beta
        h = film_module(h, params[f"m{i}_proj_w"], cbp, params[f"m{i}_conv_w"],
                        g[:, None, :], bb[:, None, :], H=H, W=W, Dm=Dm)

    # --- classifier: 1x1 proj + ReLU + 2x2 maxpool (fused), flatten, FC+ReLU, FC ---
    cbc = coords_flat @ params["cls_proj_wc"] + params["cls_proj_b"][None, :]
    pooled = cls_head(h, params["cls_proj_w"], cbc, H=H, W=W, Dm=Dm, P=P)   # (N, Hh, W, P)
    # keep the pooling-window anchor columns; flatten in (h, w, c) order (fc1_w is stored
    # in the matching permuted layout of the PyTorch NCHW-flatten weight)
    flat = pooled[:, :, 0::2, :].reshape(N, Hh * Wh * P)
    h1 = linear(flat, params["fc1_w"], params["fc1_b"], apply_relu=True, out_dtype=BF16)
    out = linear(h1, params["fc2_w"], params["fc2_b"], apply_relu=False, out_dtype=F32)
    return out


# ----------------------------------- driver ----------------------------------

if __name__ == "__main__":
    # small config consistent with FiLMedNet(feature_dim=(Cf,H,W), module_dim=Dm, ...)
    N, Cf, H, W = 2, 16, 8, 8
    Dm = 128              # module_dim (FiLMedNet default; 128-lane aligned)
    num_modules = 4
    P = 128               # classifier_proj_dim (lane-aligned, smaller than the 512 default)
    F1 = 128              # classifier_fc_layers[0]
    num_answers = 16      # len(vocab['answer_idx_to_token'])

    key = jax.random.PRNGKey(0)
    k_x, k_f, k_p = jax.random.split(key, 3)
    x = jax.random.normal(k_x, (N, Cf, H, W), F32)                   # NCHW input
    film = jax.random.normal(k_f, (N, num_modules, 2 * Dm), F32)     # gammas | betas
    params = init_params(k_p, Cf=Cf, H=H, W=W, Dm=Dm, num_modules=num_modules,
                         P=P, F1=F1, A=num_answers)

    fwd = jax.jit(functools.partial(filmed_net_forward, Dm=Dm,
                                    num_modules=num_modules, P=P, F1=F1))
    out = fwd(x, film, params)
    jax.block_until_ready(out)
    assert out.shape == (N, num_answers)
    assert bool(jnp.all(jnp.isfinite(out)))
    print("KERNEL_OK")
</pallas_src>

<mosaic_0001>
module attributes {stable_mosaic.version = 11 : i64} {
  func.func @_cls_head_kernel(%arg0: i32, %arg1: memref<1x64x128xbf16, #tpu.memory_space<vmem>>, %arg2: memref<128x128xbf16, #tpu.memory_space<vmem>>, %arg3: memref<64x128xf32, #tpu.memory_space<vmem>>, %arg4: memref<1x4x8x128xbf16, #tpu.memory_space<vmem>>) attributes {dimension_semantics = [#tpu.dimension_semantics<parallel>], iteration_bounds = array<i64: 2>, scalar_prefetch = 0 : i64, scratch_operands = 0 : i64, tpu.core_type = #tpu.core_type<tc>, window_params = [{transform_indices = @transform_0, window_bounds = array<i64: 1, 64, 128>}, {pipeline_mode = #tpu.pipeline_mode<synchronous>, transform_indices = @transform_1, window_bounds = array<i64: 128, 128>}, {pipeline_mode = #tpu.pipeline_mode<synchronous>, transform_indices = @transform_2, window_bounds = array<i64: 64, 128>}, {transform_indices = @transform_3, window_bounds = array<i64: 1, 4, 8, 128>}]} {
    %c0 = arith.constant 0 : index
    %c0_0 = arith.constant 0 : index
    %c0_1 = arith.constant 0 : index
    %0 = vector.load %arg1[%c0, %c0_0, %c0_1] : memref<1x64x128xbf16, #tpu.memory_space<vmem>>, vector<1x64x128xbf16>
    %1 = vector.shape_cast %0 : vector<1x64x128xbf16> to vector<64x128xbf16>
    %c0_2 = arith.constant 0 : index
    %c0_3 = arith.constant 0 : index
    %2 = vector.load %arg2[%c0_2, %c0_3] : memref<128x128xbf16, #tpu.memory_space<vmem>>, vector<128x128xbf16>
    %cst = arith.constant dense<0.000000e+00> : vector<64x128xf32>
    %3 = tpu.matmul %1, %2, %cst {dimension_numbers = #tpu.dot_dimension_numbers<[1], [0], [0], [1], [0, 0, 1, 1], [], []>} : vector<64x128xbf16>, vector<128x128xbf16>, vector<64x128xf32> -> vector<64x128xf32>
    %c0_4 = arith.constant 0 : index
    %c0_5 = arith.constant 0 : index
    %4 = vector.load %arg3[%c0_4, %c0_5] : memref<64x128xf32, #tpu.memory_space<vmem>>, vector<64x128xf32>
    %5 = arith.addf %3, %4 : vector<64x128xf32>
    %cst_6 = arith.constant 0.000000e+00 : f32
    %6 = vector.broadcast %cst_6 : f32 to vector<64x128xf32>
    %7 = arith.maximumf %5, %6 : vector<64x128xf32>
    %8 = vector.shape_cast %7 : vector<64x128xf32> to vector<4x2x8x128xf32>
    %9 = vector.extract_strided_slice %8 {offsets = [0, 0, 0, 0], sizes = [4, 1, 8, 128], strides = [1, 1, 1, 1]} : vector<4x2x8x128xf32> to vector<4x1x8x128xf32>
    %10 = vector.shape_cast %9 : vector<4x1x8x128xf32> to vector<4x8x128xf32>
    %11 = vector.extract_strided_slice %8 {offsets = [0, 1, 0, 0], sizes = [4, 1, 8, 128], strides = [1, 1, 1, 1]} : vector<4x2x8x128xf32> to vector<4x1x8x128xf32>
    %12 = vector.shape_cast %11 : vector<4x1x8x128xf32> to vector<4x8x128xf32>
    %13 = arith.maximumf %10, %12 : vector<4x8x128xf32>
    %c7_i32 = arith.constant 7 : i32
    %14 = tpu.dynamic_rotate %13 by %c7_i32 dim 1 : vector<4x8x128xf32>, i32 -> vector<4x8x128xf32>
    %15 = arith.maximumf %13, %14 : vector<4x8x128xf32>
    %16 = arith.truncf %15 : vector<4x8x128xf32> to vector<4x8x128xbf16>
    %c0_7 = arith.constant 0 : index
    %c0_8 = arith.constant 0 : index
    %c0_9 = arith.constant 0 : index
    %c0_10 = arith.constant 0 : index
    %17 = vector.load %arg4[%c0_7, %c0_8, %c0_9, %c0_10] : memref<1x4x8x128xbf16, #tpu.memory_space<vmem>>, vector<1x4x8x128xbf16>
    %18 = vector.shape_cast %17 : vector<1x4x8x128xbf16> to vector<4x8x128xbf16>
    %19 = vector.shape_cast %16 : vector<4x8x128xbf16> to vector<1x4x8x128xbf16>
    tpu.vector_store %arg4[%c0_7, %c0_8, %c0_9, %c0_10], %19 {strides = array<i32>} : memref<1x4x8x128xbf16, #tpu.memory_space<vmem>>, vector<1x4x8x128xbf16>,
    return
  }
  func.func @transform_0(%arg0: i32) -> (i32, i32, i32) {
    %c0_i32 = arith.constant 0 : i32
    %c0_i32_0 = arith.constant 0 : i32
    %c0_i32_1 = arith.constant 0 : i32
    return %arg0, %c0_i32, %c0_i32_0 : i32, i32, i32
  }
  func.func @transform_1(%arg0: i32) -> (i32, i32) {
    %c0_i32 = arith.constant 0 : i32
    %c0_i32_0 = arith.constant 0 : i32
    %c0_i32_1 = arith.constant 0 : i32
    return %c0_i32, %c0_i32_0 : i32, i32
  }
  func.func @transform_2(%arg0: i32) -> (i32, i32) {
    %c0_i32 = arith.constant 0 : i32
    %c0_i32_0 = arith.constant 0 : i32
    %c0_i32_1 = arith.constant 0 : i32
    return %c0_i32, %c0_i32_0 : i32, i32
  }
  func.func @transform_3(%arg0: i32) -> (i32, i32, i32, i32) {
    %c0_i32 = arith.constant 0 : i32
    %c0_i32_0 = arith.constant 0 : i32
    %c0_i32_1 = arith.constant 0 : i32
    %c0_i32_2 = arith.constant 0 : i32
    return %arg0, %c0_i32, %c0_i32_0, %c0_i32_1 : i32, i32, i32, i32
  }
}

module attributes {stable_mosaic.version = 11 : i64} {
  func.func @_film_module_kernel(%arg0: i32, %arg1: memref<1x64x128xbf16, #tpu.memory_space<vmem>>, %arg2: memref<128x128xbf16, #tpu.memory_space<vmem>>, %arg3: memref<64x128xf32, #tpu.memory_space<vmem>>, %arg4: memref<9x128x128xbf16, #tpu.memory_space<vmem>>, %arg5: memref<1x1x128xf32, #tpu.memory_space<vmem>>, %arg6: memref<1x1x128xf32, #tpu.memory_space<vmem>>, %arg7: memref<1x64x128xbf16, #tpu.memory_space<vmem>>, %arg8: memref<10x8x128xf32, #tpu.memory_space<vmem>>) attributes {dimension_semantics = [#tpu.dimension_semantics<parallel>], iteration_bounds = array<i64: 2>, scalar_prefetch = 0 : i64, scratch_operands = 1 : i64, tpu.core_type = #tpu.core_type<tc>, window_params = [{transform_indices = @transform_0, window_bounds = array<i64: 1, 64, 128>}, {pipeline_mode = #tpu.pipeline_mode<synchronous>, transform_indices = @transform_1, window_bounds = array<i64: 128, 128>}, {pipeline_mode = #tpu.pipeline_mode<synchronous>, transform_indices = @transform_2, window_bounds = array<i64: 64, 128>}, {pipeline_mode = #tpu.pipeline_mode<synchronous>, transform_indices = @transform_3, window_bounds = array<i64: 9, 128, 128>}, {transform_indices = @transform_4, window_bounds = array<i64: 1, 1, 128>}, {transform_indices = @transform_5, window_bounds = array<i64: 1, 1, 128>}, {transform_indices = @transform_6, window_bounds = array<i64: 1, 64, 128>}]} {
    %c0 = arith.constant 0 : index
    %c0_0 = arith.constant 0 : index
    %c0_1 = arith.constant 0 : index
    %0 = vector.load %arg1[%c0, %c0_0, %c0_1] : memref<1x64x128xbf16, #tpu.memory_space<vmem>>, vector<1x64x128xbf16>
    %1 = vector.shape_cast %0 : vector<1x64x128xbf16> to vector<64x128xbf16>
    %c0_2 = arith.constant 0 : index
    %c0_3 = arith.constant 0 : index
    %2 = vector.load %arg2[%c0_2, %c0_3] : memref<128x128xbf16, #tpu.memory_space<vmem>>, vector<128x128xbf16>
    %cst = arith.constant dense<0.000000e+00> : vector<64x128xf32>
    %3 = tpu.matmul %1, %2, %cst {dimension_numbers = #tpu.dot_dimension_numbers<[1], [0], [0], [1], [0, 0, 1, 1], [], []>} : vector<64x128xbf16>, vector<128x128xbf16>, vector<64x128xf32> -> vector<64x128xf32>
    %c0_4 = arith.constant 0 : index
    %c0_5 = arith.constant 0 : index
    %4 = vector.load %arg3[%c0_4, %c0_5] : memref<64x128xf32, #tpu.memory_space<vmem>>, vector<64x128xf32>
    %5 = arith.addf %3, %4 : vector<64x128xf32>
    %cst_6 = arith.constant 0.000000e+00 : f32
    %6 = vector.broadcast %cst_6 : f32 to vector<64x128xf32>
    %7 = arith.maximumf %5, %6 : vector<64x128xf32>
    %cst_7 = arith.constant 0.000000e+00 : f32
    %8 = vector.broadcast %cst_7 : f32 to vector<1x8x128xf32>
    %c0_8 = arith.constant 0 : index
    %c0_9 = arith.constant 0 : index
    %c0_10 = arith.constant 0 : index
    %9 = vector.load %arg8[%c0_8, %c0_9, %c0_10] : memref<10x8x128xf32, #tpu.memory_space<vmem>>, vector<1x8x128xf32>
    tpu.vector_store %arg8[%c0_8, %c0_9, %c0_10], %8 {strides = array<i32>} : memref<10x8x128xf32, #tpu.memory_space<vmem>>, vector<1x8x128xf32>,
    %c9 = arith.constant 9 : index
    %c0_11 = arith.constant 0 : index
    %c0_12 = arith.constant 0 : index
    %10 = vector.load %arg8[%c9, %c0_11, %c0_12] : memref<10x8x128xf32, #tpu.memory_space<vmem>>, vector<1x8x128xf32>
    tpu.vector_store %arg8[%c9, %c0_11, %c0_12], %8 {strides = array<i32>} : memref<10x8x128xf32, #tpu.memory_space<vmem>>, vector<1x8x128xf32>,
    %11 = vector.shape_cast %7 : vector<64x128xf32> to vector<8x8x128xf32>
    %c1 = arith.constant 1 : index
    %c0_13 = arith.constant 0 : index
    %c0_14 = arith.constant 0 : index
    %12 = vector.load %arg8[%c1, %c0_13, %c0_14] : memref<10x8x128xf32, #tpu.memory_space<vmem>>, vector<8x8x128xf32>
    tpu.vector_store %arg8[%c1, %c0_13, %c0_14], %11 {strides = array<i32>} : memref<10x8x128xf32, #tpu.memory_space<vmem>>, vector<8x8x128xf32>,
    %13 = tpu.iota {dimensions = array<i32: 1>} : vector<8x8x128xi32>
    %c1_i32 = arith.constant 1 : i32
    %14 = vector.broadcast %c1_i32 : i32 to vector<8x8x128xi32>
    %15 = arith.cmpi sge, %13, %14 : vector<8x8x128xi32>
    %c7_i32 = arith.constant 7 : i32
    %16 = vector.broadcast %c7_i32 : i32 to vector<8x8x128xi32>
    %17 = arith.cmpi slt, %13, %16 : vector<8x8x128xi32>
    %cst_15 = arith.constant 0.000000e+00 : f32
    %18 = vector.broadcast %cst_15 : f32 to vector<64x128xf32>
    %c0_16 = arith.constant 0 : index
    %c0_17 = arith.constant 0 : index
    %c0_18 = arith.constant 0 : index
    %19 = vector.load %arg8[%c0_16, %c0_17, %c0_18] : memref<10x8x128xf32, #tpu.memory_space<vmem>>, vector<8x8x128xf32>
    %c1_i32_19 = arith.constant 1 : i32
    %20 = tpu.dynamic_rotate %19 by %c1_i32_19 dim 1 : vector<8x8x128xf32>, i32 -> vector<8x8x128xf32>
    %cst_20 = arith.constant 0.000000e+00 : f32
    %21 = vector.broadcast %cst_20 : f32 to vector<8x8x128xf32>
    %22 = arith.select %15, %20, %21 : vector<8x8x128xi1>, vector<8x8x128xf32>
    %23 = vector.shape_cast %22 : vector<8x8x128xf32> to vector<64x128xf32>
    %24 = arith.truncf %23 : vector<64x128xf32> to vector<64x128xbf16>
    %c0_21 = arith.constant 0 : index
    %c0_22 = arith.constant 0 : index
    %c0_23 = arith.constant 0 : index
    %25 = vector.load %arg4[%c0_21, %c0_22, %c0_23] : memref<9x128x128xbf16, #tpu.memory_space<vmem>>, vector<1x128x128xbf16>
    %26 = vector.shape_cast %25 : vector<1x128x128xbf16> to vector<128x128xbf16>
    %cst_24 = arith.constant dense<0.000000e+00> : vector<64x128xf32>
    %27 = tpu.matmul %24, %26, %cst_24 {dimension_numbers = #tpu.dot_dimension_numbers<[1], [0], [0], [1], [0, 0, 1, 1], [], []>} : vector<64x128xbf16>, vector<128x128xbf16>, vector<64x128xf32> -> vector<64x128xf32>
    %28 = arith.addf %18, %27 : vector<64x128xf32>
    %29 = vector.shape_cast %19 : vector<8x8x128xf32> to vector<64x128xf32>
    %30 = arith.truncf %29 : vector<64x128xf32> to vector<64x128xbf16>
    %c1_25 = arith.constant 1 : index
    %c0_26 = arith.constant 0 : index
    %c0_27 = arith.constant 0 : index
    %31 = vector.load %arg4[%c1_25, %c0_26, %c0_27] : memref<9x128x128xbf16, #tpu.memory_space<vmem>>, vector<1x128x128xbf16>
    %32 = vector.shape_cast %31 : vector<1x128x128xbf16> to vector<128x128xbf16>
    %cst_28 = arith.constant dense<0.000000e+00> : vector<64x128xf32>
    %33 = tpu.matmul %30, %32, %cst_28 {dimension_numbers = #tpu.dot_dimension_numbers<[1], [0], [0], [1], [0, 0, 1, 1], [], []>} : vector<64x128xbf16>, vector<128x128xbf16>, vector<64x128xf32> -> vector<64x128xf32>
    %34 = arith.addf %28, %33 : vector<64x128xf32>
    %c7_i32_29 = arith.constant 7 : i32
    %35 = tpu.dynamic_rotate %19 by %c7_i32_29 dim 1 : vector<8x8x128xf32>, i32 -> vector<8x8x128xf32>
    %cst_30 = arith.constant 0.000000e+00 : f32
    %36 = vector.broadcast %cst_30 : f32 to vector<8x8x128xf32>
    %37 = arith.select %17, %35, %36 : vector<8x8x128xi1>, vector<8x8x128xf32>
    %38 = vector.shape_cast %37 : vector<8x8x128xf32> to vector<64x128xf32>
    %39 = arith.truncf %38 : vector<64x128xf32> to vector<64x128xbf16>
    %c2 = arith.constant 2 : index
    %c0_31 = arith.constant 0 : index
    %c0_32 = arith.constant 0 : index
    %40 = vector.load %arg4[%c2, %c0_31, %c0_32] : memref<9x128x128xbf16, #tpu.memory_space<vmem>>, vector<1x128x128xbf16>
    %41 = vector.shape_cast %40 : vector<1x128x128xbf16> to vector<128x128xbf16>
    %cst_33 = arith.constant dense<0.000000e+00> : vector<64x128xf32>
    %42 = tpu.matmul %39, %41, %cst_33 {dimension_numbers = #tpu.dot_dimension_numbers<[1], [0], [0], [1], [0, 0, 1, 1], [], []>} : vector<64x128xbf16>, vector<128x128xbf16>, vector<64x128xf32> -> vector<64x128xf32>
    %43 = arith.addf %34, %42 : vector<64x128xf32>
    %c1_34 = arith.constant 1 : index
    %c0_35 = arith.constant 0 : index
    %c0_36 = arith.constant 0 : index
    %44 = vector.load %arg8[%c1_34, %c0_35, %c0_36] : memref<10x8x128xf32, #tpu.memory_space<vmem>>, vector<8x8x128xf32>
    %c1_i32_37 = arith.constant 1 : i32
    %45 = tpu.dynamic_rotate %44 by %c1_i32_37 dim 1 : vector<8x8x128xf32>, i32 -> vector<8x8x128xf32>
    %cst_38 = arith.constant 0.000000e+00 : f32
    %46 = vector.broadcast %cst_38 : f32 to vector<8x8x128xf32>
    %47 = arith.select %15, %45, %46 : vector<8x8x128xi1>, vector<8x8x128xf32>
    %48 = vector.shape_cast %47 : vector<8x8x128xf32> to vector<64x128xf32>
    %49 = arith.truncf %48 : vector<64x128xf32> to vector<64x128xbf16>
    %c3 = arith.constant 3 : index
    %c0_39 = arith.constant 0 : index
    %c0_40 = arith.constant 0 : index
    %50 = vector.load %arg4[%c3, %c0_39, %c0_40] : memref<9x128x128xbf16, #tpu.memory_space<vmem>>, vector<1x128x128xbf16>
    %51 = vector.shape_cast %50 : vector<1x128x128xbf16> to vector<128x128xbf16>
    %cst_41 = arith.constant dense<0.000000e+00> : vector<64x128xf32>
    %52 = tpu.matmul %49, %51, %cst_41 {dimension_numbers = #tpu.dot_dimension_numbers<[1], [0], [0], [1], [0, 0, 1, 1], [], []>} : vector<64x128xbf16>, vector<128x128xbf16>, vector<64x128xf32> -> vector<64x128xf32>
    %53 = arith.addf %43, %52 : vector<64x128xf32>
    %54 = vector.shape_cast %44 : vector<8x8x128xf32> to vector<64x128xf32>
    %55 = arith.truncf %54 : vector<64x128xf32> to vector<64x128xbf16>
    %c4 = arith.constant 4 : index
    %c0_42 = arith.constant 0 : index
    %c0_43 = arith.constant 0 : index
    %56 = vector.load %arg4[%c4, %c0_42, %c0_43] : memref<9x128x128xbf16, #tpu.memory_space<vmem>>, vector<1x128x128xbf16>
    %57 = vector.shape_cast %56 : vector<1x128x128xbf16> to vector<128x128xbf16>
    %cst_44 = arith.constant dense<0.000000e+00> : vector<64x128xf32>
    %58 = tpu.matmul %55, %57, %cst_44 {dimension_numbers = #tpu.dot_dimension_numbers<[1], [0], [0], [1], [0, 0, 1, 1], [], []>} : vector<64x128xbf16>, vector<128x128xbf16>, vector<64x128xf32> -> vector<64x128xf32>
    %59 = arith.addf %53, %58 : vector<64x128xf32>
    %c7_i32_45 = arith.constant 7 : i32
    %60 = tpu.dynamic_rotate %44 by %c7_i32_45 dim 1 : vector<8x8x128xf32>, i32 -> vector<8x8x128xf32>
    %cst_46 = arith.constant 0.000000e+00 : f32
    %61 = vector.broadcast %cst_46 : f32 to vector<8x8x128xf32>
    %62 = arith.select %17, %60, %61 : vector<8x8x128xi1>, vector<8x8x128xf32>
    %63 = vector.shape_cast %62 : vector<8x8x128xf32> to vector<64x128xf32>
    %64 = arith.truncf %63 : vector<64x128xf32> to vector<64x128xbf16>
    %c5 = arith.constant 5 : index
    %c0_47 = arith.constant 0 : index
    %c0_48 = arith.constant 0 : index
    %65 = vector.load %arg4[%c5, %c0_47, %c0_48] : memref<9x128x128xbf16, #tpu.memory_space<vmem>>, vector<1x128x128xbf16>
    %66 = vector.shape_cast %65 : vector<1x128x128xbf16> to vector<128x128xbf16>
    %cst_49 = arith.constant dense<0.000000e+00> : vector<64x128xf32>
    %67 = tpu.matmul %64, %66, %cst_49 {dimension_numbers = #tpu.dot_dimension_numbers<[1], [0], [0], [1], [0, 0, 1, 1], [], []>} : vector<64x128xbf16>, vector<128x128xbf16>, vector<64x128xf32> -> vector<64x128xf32>
    %68 = arith.addf %59, %67 : vector<64x128xf32>
    %c2_50 = arith.constant 2 : index
    %c0_51 = arith.constant 0 : index
    %c0_52 = arith.constant 0 : index
    %69 = vector.load %arg8[%c2_50, %c0_51, %c0_52] : memref<10x8x128xf32, #tpu.memory_space<vmem>>, vector<8x8x128xf32>
    %c1_i32_53 = arith.constant 1 : i32
    %70 = tpu.dynamic_rotate %69 by %c1_i32_53 dim 1 : vector<8x8x128xf32>, i32 -> vector<8x8x128xf32>
    %cst_54 = arith.constant 0.000000e+00 : f32
    %71 = vector.broadcast %cst_54 : f32 to vector<8x8x128xf32>
    %72 = arith.select %15, %70, %71 : vector<8x8x128xi1>, vector<8x8x128xf32>
    %73 = vector.shape_cast %72 : vector<8x8x128xf32> to vector<64x128xf32>
    %74 = arith.truncf %73 : vector<64x128xf32> to vector<64x128xbf16>
    %c6 = arith.constant 6 : index
    %c0_55 = arith.constant 0 : index
    %c0_56 = arith.constant 0 : index
    %75 = vector.load %arg4[%c6, %c0_55, %c0_56] : memref<9x128x128xbf16, #tpu.memory_space<vmem>>, vector<1x128x128xbf16>
    %76 = vector.shape_cast %75 : vector<1x128x128xbf16> to vector<128x128xbf16>
    %cst_57 = arith.constant dense<0.000000e+00> : vector<64x128xf32>
    %77 = tpu.matmul %74, %76, %cst_57 {dimension_numbers = #tpu.dot_dimension_numbers<[1], [0], [0], [1], [0, 0, 1, 1], [], []>} : vector<64x128xbf16>, vector<128x128xbf16>, vector<64x128xf32> -> vector<64x128xf32>
    %78 = arith.addf %68, %77 : vector<64x128xf32>
    %79 = vector.shape_cast %69 : vector<8x8x128xf32> to vector<64x128xf32>
    %80 = arith.truncf %79 : vector<64x128xf32> to vector<64x128xbf16>
    %c7 = arith.constant 7 : index
    %c0_58 = arith.constant 0 : index
    %c0_59 = arith.constant 0 : index
    %81 = vector.load %arg4[%c7, %c0_58, %c0_59] : memref<9x128x128xbf16, #tpu.memory_space<vmem>>, vector<1x128x128xbf16>
    %82 = vector.shape_cast %81 : vector<1x128x128xbf16> to vector<128x128xbf16>
    %cst_60 = arith.constant dense<0.000000e+00> : vector<64x128xf32>
    %83 = tpu.matmul %80, %82, %cst_60 {dimension_numbers = #tpu.dot_dimension_numbers<[1], [0], [0], [1], [0, 0, 1, 1], [], []>} : vector<64x128xbf16>, vector<128x128xbf16>, vector<64x128xf32> -> vector<64x128xf32>
    %84 = arith.addf %78, %83 : vector<64x128xf32>
    %c7_i32_61 = arith.constant 7 : i32
    %85 = tpu.dynamic_rotate %69 by %c7_i32_61 dim 1 : vector<8x8x128xf32>, i32 -> vector<8x8x128xf32>
    %cst_62 = arith.constant 0.000000e+00 : f32
    %86 = vector.broadcast %cst_62 : f32 to vector<8x8x128xf32>
    %87 = arith.select %17, %85, %86 : vector<8x8x128xi1>, vector<8x8x128xf32>
    %88 = vector.shape_cast %87 : vector<8x8x128xf32> to vector<64x128xf32>
    %89 = arith.truncf %88 : vector<64x128xf32> to vector<64x128xbf16>
    %c8 = arith.constant 8 : index
    %c0_63 = arith.constant 0 : index
    %c0_64 = arith.constant 0 : index
    %90 = vector.load %arg4[%c8, %c0_63, %c0_64] : memref<9x128x128xbf16, #tpu.memory_space<vmem>>, vector<1x128x128xbf16>
    %91 = vector.shape_cast %90 : vector<1x128x128xbf16> to vector<128x128xbf16>
    %cst_65 = arith.constant dense<0.000000e+00> : vector<64x128xf32>
    %92 = tpu.matmul %89, %91, %cst_65 {dimension_numbers = #tpu.dot_dimension_numbers<[1], [0], [0], [1], [0, 0, 1, 1], [], []>} : vector<64x128xbf16>, vector<128x128xbf16>, vector<64x128xf32> -> vector<64x128xf32>
    %93 = arith.addf %84, %92 : vector<64x128xf32>
    %c0_66 = arith.constant 0 : index
    %c0_67 = arith.constant 0 : index
    %c0_68 = arith.constant 0 : index
    %94 = vector.load %arg5[%c0_66, %c0_67, %c0_68] : memref<1x1x128xf32, #tpu.memory_space<vmem>>, vector<1x1x128xf32>
    %95 = vector.shape_cast %94 : vector<1x1x128xf32> to vector<1x128xf32>
    %96 = vector.broadcast %95 : vector<1x128xf32> to vector<64x128xf32>
    %97 = arith.mulf %96, %93 : vector<64x128xf32>
    %c0_69 = arith.constant 0 : index
    %c0_70 = arith.constant 0 : index
    %c0_71 = arith.constant 0 : index
    %98 = vector.load %arg6[%c0_69, %c0_70, %c0_71] : memref<1x1x128xf32, #tpu.memory_space<vmem>>, vector<1x1x128xf32>
    %99 = vector.shape_cast %98 : vector<1x1x128xf32> to vector<1x128xf32>
    %100 = vector.broadcast %99 : vector<1x128xf32> to vector<64x128xf32>
    %101 = arith.addf %97, %100 : vector<64x128xf32>
    %cst_72 = arith.constant 0.000000e+00 : f32
    %102 = vector.broadcast %cst_72 : f32 to vector<64x128xf32>
    %103 = arith.maximumf %101, %102 : vector<64x128xf32>
    %104 = arith.addf %7, %103 : vector<64x128xf32>
    %105 = arith.truncf %104 : vector<64x128xf32> to vector<64x128xbf16>
    %c0_73 = arith.constant 0 : index
    %c0_74 = arith.constant 0 : index
    %c0_75 = arith.constant 0 : index
    %106 = vector.load %arg7[%c0_73, %c0_74, %c0_75] : memref<1x64x128xbf16, #tpu.memory_space<vmem>>, vector<1x64x128xbf16>
    %107 = vector.shape_cast %106 : vector<1x64x128xbf16> to vector<64x128xbf16>
    %108 = vector.shape_cast %105 : vector<64x128xbf16> to vector<1x64x128xbf16>
    tpu.vector_store %arg7[%c0_73, %c0_74, %c0_75], %108 {strides = array<i32>} : memref<1x64x128xbf16, #tpu.memory_space<vmem>>, vector<1x64x128xbf16>,
    return
  }
  func.func @transform_0(%arg0: i32) -> (i32, i32, i32) {
    %c0_i32 = arith.constant 0 : i32
    %c0_i32_0 = arith.constant 0 : i32
    %c0_i32_1 = arith.constant 0 : i32
    return %arg0, %c0_i32, %c0_i32_0 : i32, i32, i32
  }
  func.func @transform_1(%arg0: i32) -> (i32, i32) {
    %c0_i32 = arith.constant 0 : i32
    %c0_i32_0 = arith.constant 0 : i32
    %c0_i32_1 = arith.constant 0 : i32
    return %c0_i32, %c0_i32_0 : i32, i32
  }
  func.func @transform_2(%arg0: i32) -> (i32, i32) {
    %c0_i32 = arith.constant 0 : i32
    %c0_i32_0 = arith.constant 0 : i32
    %c0_i32_1 = arith.constant 0 : i32
    return %c0_i32, %c0_i32_0 : i32, i32
  }
  func.func @transform_3(%arg0: i32) -> (i32, i32, i32) {
    %c0_i32 = arith.constant 0 : i32
    %c0_i32_0 = arith.constant 0 : i32
    %c0_i32_1 = arith.constant 0 : i32
    %c0_i32_2 = arith.constant 0 : i32
    return %c0_i32, %c0_i32_0, %c0_i32_1 : i32, i32, i32
  }
  func.func @transform_4(%arg0: i32) -> (i32, i32, i32) {
    %c0_i32 = arith.constant 0 : i32
    %c0_i32_0 = arith.constant 0 : i32
    %c0_i32_1 = arith.constant 0 : i32
    return %arg0, %c0_i32, %c0_i32_0 : i32, i32, i32
  }
  func.func @transform_5(%arg0: i32) -> (i32, i32, i32) {
    %c0_i32 = arith.constant 0 : i32
    %c0_i32_0 = arith.constant 0 : i32
    %c0_i32_1 = arith.constant 0 : i32
    return %arg0, %c0_i32, %c0_i32_0 : i32, i32, i32
  }
  func.func @transform_6(%arg0: i32) -> (i32, i32, i32) {
    %c0_i32 = arith.constant 0 : i32
    %c0_i32_0 = arith.constant 0 : i32
    %c0_i32_1 = arith.constant 0 : i32
    return %arg0, %c0_i32, %c0_i32_0 : i32, i32, i32
  }
}

module attributes {stable_mosaic.version = 11 : i64} {
  func.func @_stem_kernel(%arg0: i32, %arg1: memref<1x8x8x16xbf16, #tpu.memory_space<vmem>>, %arg2: memref<9x16x128xbf16, #tpu.memory_space<vmem>>, %arg3: memref<64x128xf32, #tpu.memory_space<vmem>>, %arg4: memref<9x128x128xbf16, #tpu.memory_space<vmem>>, %arg5: memref<1x128xf32, #tpu.memory_space<vmem>>, %arg6: memref<1x64x128xbf16, #tpu.memory_space<vmem>>, %arg7: memref<10x8x16xf32, #tpu.memory_space<vmem>>, %arg8: memref<10x8x128xf32, #tpu.memory_space<vmem>>) attributes {dimension_semantics = [#tpu.dimension_semantics<parallel>], iteration_bounds = array<i64: 2>, scalar_prefetch = 0 : i64, scratch_operands = 2 : i64, tpu.core_type = #tpu.core_type<tc>, window_params = [{transform_indices = @transform_0, window_bounds = array<i64: 1, 8, 8, 16>}, {pipeline_mode = #tpu.pipeline_mode<synchronous>, transform_indices = @transform_1, window_bounds = array<i64: 9, 16, 128>}, {pipeline_mode = #tpu.pipeline_mode<synchronous>, transform_indices = @transform_2, window_bounds = array<i64: 64, 128>}, {pipeline_mode = #tpu.pipeline_mode<synchronous>, transform_indices = @transform_3, window_bounds = array<i64: 9, 128, 128>}, {pipeline_mode = #tpu.pipeline_mode<synchronous>, transform_indices = @transform_4, window_bounds = array<i64: 1, 128>}, {transform_indices = @transform_5, window_bounds = array<i64: 1, 64, 128>}]} {
    %cst = arith.constant 0.000000e+00 : f32
    %0 = vector.broadcast %cst : f32 to vector<1x8x16xf32>
    %c0 = arith.constant 0 : index
    %c0_0 = arith.constant 0 : index
    %c0_1 = arith.constant 0 : index
    %1 = vector.load %arg7[%c0, %c0_0, %c0_1] : memref<10x8x16xf32, #tpu.memory_space<vmem>>, vector<1x8x16xf32>
    tpu.vector_store %arg7[%c0, %c0_0, %c0_1], %0 {strides = array<i32>} : memref<10x8x16xf32, #tpu.memory_space<vmem>>, vector<1x8x16xf32>,
    %c9 = arith.constant 9 : index
    %c0_2 = arith.constant 0 : index
    %c0_3 = arith.constant 0 : index
    %2 = vector.load %arg7[%c9, %c0_2, %c0_3] : memref<10x8x16xf32, #tpu.memory_space<vmem>>, vector<1x8x16xf32>
    tpu.vector_store %arg7[%c9, %c0_2, %c0_3], %0 {strides = array<i32>} : memref<10x8x16xf32, #tpu.memory_space<vmem>>, vector<1x8x16xf32>,
    %c0_4 = arith.constant 0 : index
    %c0_5 = arith.constant 0 : index
    %c0_6 = arith.constant 0 : index
    %c0_7 = arith.constant 0 : index
    %3 = vector.load %arg1[%c0_4, %c0_5, %c0_6, %c0_7] : memref<1x8x8x16xbf16, #tpu.memory_space<vmem>>, vector<1x8x8x16xbf16>
    %4 = vector.shape_cast %3 : vector<1x8x8x16xbf16> to vector<8x8x16xbf16>
    %5 = arith.extf %4 : vector<8x8x16xbf16> to vector<8x8x16xf32>
    %c1 = arith.constant 1 : index
    %c0_8 = arith.constant 0 : index
    %c0_9 = arith.constant 0 : index
    %6 = vector.load %arg7[%c1, %c0_8, %c0_9] : memref<10x8x16xf32, #tpu.memory_space<vmem>>, vector<8x8x16xf32>
    tpu.vector_store %arg7[%c1, %c0_8, %c0_9], %5 {strides = array<i32>} : memref<10x8x16xf32, #tpu.memory_space<vmem>>, vector<8x8x16xf32>,
    %7 = tpu.iota {dimensions = array<i32: 1>} : vector<8x8x16xi32>
    %c1_i32 = arith.constant 1 : i32
    %8 = vector.broadcast %c1_i32 : i32 to vector<8x8x16xi32>
    %9 = arith.cmpi sge, %7, %8 : vector<8x8x16xi32>
    %c7_i32 = arith.constant 7 : i32
    %10 = vector.broadcast %c7_i32 : i32 to vector<8x8x16xi32>
    %11 = arith.cmpi slt, %7, %10 : vector<8x8x16xi32>
    %cst_10 = arith.constant 0.000000e+00 : f32
    %12 = vector.broadcast %cst_10 : f32 to vector<64x128xf32>
    %c0_11 = arith.constant 0 : index
    %c0_12 = arith.constant 0 : index
    %c0_13 = arith.constant 0 : index
    %13 = vector.load %arg7[%c0_11, %c0_12, %c0_13] : memref<10x8x16xf32, #tpu.memory_space<vmem>>, vector<8x8x16xf32>
    %c1_i32_14 = arith.constant 1 : i32
    %14 = tpu.dynamic_rotate %13 by %c1_i32_14 dim 1 : vector<8x8x16xf32>, i32 -> vector<8x8x16xf32>
    %cst_15 = arith.constant 0.000000e+00 : f32
    %15 = vector.broadcast %cst_15 : f32 to vector<8x8x16xf32>
    %16 = arith.select %9, %14, %15 : vector<8x8x16xi1>, vector<8x8x16xf32>
    %17 = vector.shape_cast %16 : vector<8x8x16xf32> to vector<64x16xf32>
    %18 = arith.truncf %17 : vector<64x16xf32> to vector<64x16xbf16>
    %c0_16 = arith.constant 0 : index
    %c0_17 = arith.constant 0 : index
    %c0_18 = arith.constant 0 : index
    %19 = vector.load %arg2[%c0_16, %c0_17, %c0_18] : memref<9x16x128xbf16, #tpu.memory_space<vmem>>, vector<1x16x128xbf16>
    %20 = vector.shape_cast %19 : vector<1x16x128xbf16> to vector<16x128xbf16>
    %cst_19 = arith.constant dense<0.000000e+00> : vector<64x128xf32>
    %21 = tpu.matmul %18, %20, %cst_19 {dimension_numbers = #tpu.dot_dimension_numbers<[1], [0], [0], [1], [0, 0, 1, 1], [], []>} : vector<64x16xbf16>, vector<16x128xbf16>, vector<64x128xf32> -> vector<64x128xf32>
    %22 = arith.addf %12, %21 : vector<64x128xf32>
    %23 = vector.shape_cast %13 : vector<8x8x16xf32> to vector<64x16xf32>
    %24 = arith.truncf %23 : vector<64x16xf32> to vector<64x16xbf16>
    %c1_20 = arith.constant 1 : index
    %c0_21 = arith.constant 0 : index
    %c0_22 = arith.constant 0 : index
    %25 = vector.load %arg2[%c1_20, %c0_21, %c0_22] : memref<9x16x128xbf16, #tpu.memory_space<vmem>>, vector<1x16x128xbf16>
    %26 = vector.shape_cast %25 : vector<1x16x128xbf16> to vector<16x128xbf16>
    %cst_23 = arith.constant dense<0.000000e+00> : vector<64x128xf32>
    %27 = tpu.matmul %24, %26, %cst_23 {dimension_numbers = #tpu.dot_dimension_numbers<[1], [0], [0], [1], [0, 0, 1, 1], [], []>} : vector<64x16xbf16>, vector<16x128xbf16>, vector<64x128xf32> -> vector<64x128xf32>
    %28 = arith.addf %22, %27 : vector<64x128xf32>
    %c7_i32_24 = arith.constant 7 : i32
    %29 = tpu.dynamic_rotate %13 by %c7_i32_24 dim 1 : vector<8x8x16xf32>, i32 -> vector<8x8x16xf32>
    %cst_25 = arith.constant 0.000000e+00 : f32
    %30 = vector.broadcast %cst_25 : f32 to vector<8x8x16xf32>
    %31 = arith.select %11, %29, %30 : vector<8x8x16xi1>, vector<8x8x16xf32>
    %32 = vector.shape_cast %31 : vector<8x8x16xf32> to vector<64x16xf32>
    %33 = arith.truncf %32 : vector<64x16xf32> to vector<64x16xbf16>
    %c2 = arith.constant 2 : index
    %c0_26 = arith.constant 0 : index
    %c0_27 = arith.constant 0 : index
    %34 = vector.load %arg2[%c2, %c0_26, %c0_27] : memref<9x16x128xbf16, #tpu.memory_space<vmem>>, vector<1x16x128xbf16>
    %35 = vector.shape_cast %34 : vector<1x16x128xbf16> to vector<16x128xbf16>
    %cst_28 = arith.constant dense<0.000000e+00> : vector<64x128xf32>
    %36 = tpu.matmul %33, %35, %cst_28 {dimension_numbers = #tpu.dot_dimension_numbers<[1], [0], [0], [1], [0, 0, 1, 1], [], []>} : vector<64x16xbf16>, vector<16x128xbf16>, vector<64x128xf32> -> vector<64x128xf32>
    %37 = arith.addf %28, %36 : vector<64x128xf32>
    %c1_29 = arith.constant 1 : index
    %c0_30 = arith.constant 0 : index
    %c0_31 = arith.constant 0 : index
    %38 = vector.load %arg7[%c1_29, %c0_30, %c0_31] : memref<10x8x16xf32, #tpu.memory_space<vmem>>, vector<8x8x16xf32>
    %c1_i32_32 = arith.constant 1 : i32
    %39 = tpu.dynamic_rotate %38 by %c1_i32_32 dim 1 : vector<8x8x16xf32>, i32 -> vector<8x8x16xf32>
    %cst_33 = arith.constant 0.000000e+00 : f32
    %40 = vector.broadcast %cst_33 : f32 to vector<8x8x16xf32>
    %41 = arith.select %9, %39, %40 : vector<8x8x16xi1>, vector<8x8x16xf32>
    %42 = vector.shape_cast %41 : vector<8x8x16xf32> to vector<64x16xf32>
    %43 = arith.truncf %42 : vector<64x16xf32> to vector<64x16xbf16>
    %c3 = arith.constant 3 : index
    %c0_34 = arith.constant 0 : index
    %c0_35 = arith.constant 0 : index
    %44 = vector.load %arg2[%c3, %c0_34, %c0_35] : memref<9x16x128xbf16, #tpu.memory_space<vmem>>, vector<1x16x128xbf16>
    %45 = vector.shape_cast %44 : vector<1x16x128xbf16> to vector<16x128xbf16>
    %cst_36 = arith.constant dense<0.000000e+00> : vector<64x128xf32>
    %46 = tpu.matmul %43, %45, %cst_36 {dimension_numbers = #tpu.dot_dimension_numbers<[1], [0], [0], [1], [0, 0, 1, 1], [], []>} : vector<64x16xbf16>, vector<16x128xbf16>, vector<64x128xf32> -> vector<64x128xf32>
    %47 = arith.addf %37, %46 : vector<64x128xf32>
    %48 = vector.shape_cast %38 : vector<8x8x16xf32> to vector<64x16xf32>
    %49 = arith.truncf %48 : vector<64x16xf32> to vector<64x16xbf16>
    %c4 = arith.constant 4 : index
    %c0_37 = arith.constant 0 : index
    %c0_38 = arith.constant 0 : index
    %50 = vector.load %arg2[%c4, %c0_37, %c0_38] : memref<9x16x128xbf16, #tpu.memory_space<vmem>>, vector<1x16x128xbf16>
    %51 = vector.shape_cast %50 : vector<1x16x128xbf16> to vector<16x128xbf16>
    %cst_39 = arith.constant dense<0.000000e+00> : vector<64x128xf32>
    %52 = tpu.matmul %49, %51, %cst_39 {dimension_numbers = #tpu.dot_dimension_numbers<[1], [0], [0], [1], [0, 0, 1, 1], [], []>} : vector<64x16xbf16>, vector<16x128xbf16>, vector<64x128xf32> -> vector<64x128xf32>
    %53 = arith.addf %47, %52 : vector<64x128xf32>
    %c7_i32_40 = arith.constant 7 : i32
    %54 = tpu.dynamic_rotate %38 by %c7_i32_40 dim 1 : vector<8x8x16xf32>, i32 -> vector<8x8x16xf32>
    %cst_41 = arith.constant 0.000000e+00 : f32
    %55 = vector.broadcast %cst_41 : f32 to vector<8x8x16xf32>
    %56 = arith.select %11, %54, %55 : vector<8x8x16xi1>, vector<8x8x16xf32>
    %57 = vector.shape_cast %56 : vector<8x8x16xf32> to vector<64x16xf32>
    %58 = arith.truncf %57 : vector<64x16xf32> to vector<64x16xbf16>
    %c5 = arith.constant 5 : index
    %c0_42 = arith.constant 0 : index
    %c0_43 = arith.constant 0 : index
    %59 = vector.load %arg2[%c5, %c0_42, %c0_43] : memref<9x16x128xbf16, #tpu.memory_space<vmem>>, vector<1x16x128xbf16>
    %60 = vector.shape_cast %59 : vector<1x16x128xbf16> to vector<16x128xbf16>
    %cst_44 = arith.constant dense<0.000000e+00> : vector<64x128xf32>
    %61 = tpu.matmul %58, %60, %cst_44 {dimension_numbers = #tpu.dot_dimension_numbers<[1], [0], [0], [1], [0, 0, 1, 1], [], []>} : vector<64x16xbf16>, vector<16x128xbf16>, vector<64x128xf32> -> vector<64x128xf32>
    %62 = arith.addf %53, %61 : vector<64x128xf32>
    %c2_45 = arith.constant 2 : index
    %c0_46 = arith.constant 0 : index
    %c0_47 = arith.constant 0 : index
    %63 = vector.load %arg7[%c2_45, %c0_46, %c0_47] : memref<10x8x16xf32, #tpu.memory_space<vmem>>, vector<8x8x16xf32>
    %c1_i32_48 = arith.constant 1 : i32
    %64 = tpu.dynamic_rotate %63 by %c1_i32_48 dim 1 : vector<8x8x16xf32>, i32 -> vector<8x8x16xf32>
    %cst_49 = arith.constant 0.000000e+00 : f32
    %65 = vector.broadcast %cst_49 : f32 to vector<8x8x16xf32>
    %66 = arith.select %9, %64, %65 : vector<8x8x16xi1>, vector<8x8x16xf32>
    %67 = vector.shape_cast %66 : vector<8x8x16xf32> to vector<64x16xf32>
    %68 = arith.truncf %67 : vector<64x16xf32> to vector<64x16xbf16>
    %c6 = arith.constant 6 : index
    %c0_50 = arith.constant 0 : index
    %c0_51 = arith.constant 0 : index
    %69 = vector.load %arg2[%c6, %c0_50, %c0_51] : memref<9x16x128xbf16, #tpu.memory_space<vmem>>, vector<1x16x128xbf16>
    %70 = vector.shape_cast %69 : vector<1x16x128xbf16> to vector<16x128xbf16>
    %cst_52 = arith.constant dense<0.000000e+00> : vector<64x128xf32>
    %71 = tpu.matmul %68, %70, %cst_52 {dimension_numbers = #tpu.dot_dimension_numbers<[1], [0], [0], [1], [0, 0, 1, 1], [], []>} : vector<64x16xbf16>, vector<16x128xbf16>, vector<64x128xf32> -> vector<64x128xf32>
    %72 = arith.addf %62, %71 : vector<64x128xf32>
    %73 = vector.shape_cast %63 : vector<8x8x16xf32> to vector<64x16xf32>
    %74 = arith.truncf %73 : vector<64x16xf32> to vector<64x16xbf16>
    %c7 = arith.constant 7 : index
    %c0_53 = arith.constant 0 : index
    %c0_54 = arith.constant 0 : index
    %75 = vector.load %arg2[%c7, %c0_53, %c0_54] : memref<9x16x128xbf16, #tpu.memory_space<vmem>>, vector<1x16x128xbf16>
    %76 = vector.shape_cast %75 : vector<1x16x128xbf16> to vector<16x128xbf16>
    %cst_55 = arith.constant dense<0.000000e+00> : vector<64x128xf32>
    %77 = tpu.matmul %74, %76, %cst_55 {dimension_numbers = #tpu.dot_dimension_numbers<[1], [0], [0], [1], [0, 0, 1, 1], [], []>} : vector<64x16xbf16>, vector<16x128xbf16>, vector<64x128xf32> -> vector<64x128xf32>
    %78 = arith.addf %72, %77 : vector<64x128xf32>
    %c7_i32_56 = arith.constant 7 : i32
    %79 = tpu.dynamic_rotate %63 by %c7_i32_56 dim 1 : vector<8x8x16xf32>, i32 -> vector<8x8x16xf32>
    %cst_57 = arith.constant 0.000000e+00 : f32
    %80 = vector.broadcast %cst_57 : f32 to vector<8x8x16xf32>
    %81 = arith.select %11, %79, %80 : vector<8x8x16xi1>, vector<8x8x16xf32>
    %82 = vector.shape_cast %81 : vector<8x8x16xf32> to vector<64x16xf32>
    %83 = arith.truncf %82 : vector<64x16xf32> to vector<64x16xbf16>
    %c8 = arith.constant 8 : index
    %c0_58 = arith.constant 0 : index
    %c0_59 = arith.constant 0 : index
    %84 = vector.load %arg2[%c8, %c0_58, %c0_59] : memref<9x16x128xbf16, #tpu.memory_space<vmem>>, vector<1x16x128xbf16>
    %85 = vector.shape_cast %84 : vector<1x16x128xbf16> to vector<16x128xbf16>
    %cst_60 = arith.constant dense<0.000000e+00> : vector<64x128xf32>
    %86 = tpu.matmul %83, %85, %cst_60 {dimension_numbers = #tpu.dot_dimension_numbers<[1], [0], [0], [1], [0, 0, 1, 1], [], []>} : vector<64x16xbf16>, vector<16x128xbf16>, vector<64x128xf32> -> vector<64x128xf32>
    %87 = arith.addf %78, %86 : vector<64x128xf32>
    %c0_61 = arith.constant 0 : index
    %c0_62 = arith.constant 0 : index
    %88 = vector.load %arg3[%c0_61, %c0_62] : memref<64x128xf32, #tpu.memory_space<vmem>>, vector<64x128xf32>
    %89 = arith.addf %87, %88 : vector<64x128xf32>
    %cst_63 = arith.constant 0.000000e+00 : f32
    %90 = vector.broadcast %cst_63 : f32 to vector<64x128xf32>
    %91 = arith.maximumf %89, %90 : vector<64x128xf32>
    %cst_64 = arith.constant 0.000000e+00 : f32
    %92 = vector.broadcast %cst_64 : f32 to vector<1x8x128xf32>
    %c0_65 = arith.constant 0 : index
    %c0_66 = arith.constant 0 : index
    %c0_67 = arith.constant 0 : index
    %93 = vector.load %arg8[%c0_65, %c0_66, %c0_67] : memref<10x8x128xf32, #tpu.memory_space<vmem>>, vector<1x8x128xf32>
    tpu.vector_store %arg8[%c0_65, %c0_66, %c0_67], %92 {strides = array<i32>} : memref<10x8x128xf32, #tpu.memory_space<vmem>>, vector<1x8x128xf32>,
    %c9_68 = arith.constant 9 : index
    %c0_69 = arith.constant 0 : index
    %c0_70 = arith.constant 0 : index
    %94 = vector.load %arg8[%c9_68, %c0_69, %c0_70] : memref<10x8x128xf32, #tpu.memory_space<vmem>>, vector<1x8x128xf32>
    tpu.vector_store %arg8[%c9_68, %c0_69, %c0_70], %92 {strides = array<i32>} : memref<10x8x128xf32, #tpu.memory_space<vmem>>, vector<1x8x128xf32>,
    %95 = vector.shape_cast %91 : vector<64x128xf32> to vector<8x8x128xf32>
    %c1_71 = arith.constant 1 : index
    %c0_72 = arith.constant 0 : index
    %c0_73 = arith.constant 0 : index
    %96 = vector.load %arg8[%c1_71, %c0_72, %c0_73] : memref<10x8x128xf32, #tpu.memory_space<vmem>>, vector<8x8x128xf32>
    tpu.vector_store %arg8[%c1_71, %c0_72, %c0_73], %95 {strides = array<i32>} : memref<10x8x128xf32, #tpu.memory_space<vmem>>, vector<8x8x128xf32>,
    %97 = tpu.iota {dimensions = array<i32: 1>} : vector<8x8x128xi32>
    %c1_i32_74 = arith.constant 1 : i32
    %98 = vector.broadcast %c1_i32_74 : i32 to vector<8x8x128xi32>
    %99 = arith.cmpi sge, %97, %98 : vector<8x8x128xi32>
    %c7_i32_75 = arith.constant 7 : i32
    %100 = vector.broadcast %c7_i32_75 : i32 to vector<8x8x128xi32>
    %101 = arith.cmpi slt, %97, %100 : vector<8x8x128xi32>
    %cst_76 = arith.constant 0.000000e+00 : f32
    %102 = vector.broadcast %cst_76 : f32 to vector<64x128xf32>
    %c0_77 = arith.constant 0 : index
    %c0_78 = arith.constant 0 : index
    %c0_79 = arith.constant 0 : index
    %103 = vector.load %arg8[%c0_77, %c0_78, %c0_79] : memref<10x8x128xf32, #tpu.memory_space<vmem>>, vector<8x8x128xf32>
    %c1_i32_80 = arith.constant 1 : i32
    %104 = tpu.dynamic_rotate %103 by %c1_i32_80 dim 1 : vector<8x8x128xf32>, i32 -> vector<8x8x128xf32>
    %cst_81 = arith.constant 0.000000e+00 : f32
    %105 = vector.broadcast %cst_81 : f32 to vector<8x8x128xf32>
    %106 = arith.select %99, %104, %105 : vector<8x8x128xi1>, vector<8x8x128xf32>
    %107 = vector.shape_cast %106 : vector<8x8x128xf32> to vector<64x128xf32>
    %108 = arith.truncf %107 : vector<64x128xf32> to vector<64x128xbf16>
    %c0_82 = arith.constant 0 : index
    %c0_83 = arith.constant 0 : index
    %c0_84 = arith.constant 0 : index
    %109 = vector.load %arg4[%c0_82, %c0_83, %c0_84] : memref<9x128x128xbf16, #tpu.memory_space<vmem>>, vector<1x128x128xbf16>
    %110 = vector.shape_cast %109 : vector<1x128x128xbf16> to vector<128x128xbf16>
    %cst_85 = arith.constant dense<0.000000e+00> : vector<64x128xf32>
    %111 = tpu.matmul %108, %110, %cst_85 {dimension_numbers = #tpu.dot_dimension_numbers<[1], [0], [0], [1], [0, 0, 1, 1], [], []>} : vector<64x128xbf16>, vector<128x128xbf16>, vector<64x128xf32> -> vector<64x128xf32>
    %112 = arith.addf %102, %111 : vector<64x128xf32>
    %113 = vector.shape_cast %103 : vector<8x8x128xf32> to vector<64x128xf32>
    %114 = arith.truncf %113 : vector<64x128xf32> to vector<64x128xbf16>
    %c1_86 = arith.constant 1 : index
    %c0_87 = arith.constant 0 : index
    %c0_88 = arith.constant 0 : index
    %115 = vector.load %arg4[%c1_86, %c0_87, %c0_88] : memref<9x128x128xbf16, #tpu.memory_space<vmem>>, vector<1x128x128xbf16>
    %116 = vector.shape_cast %115 : vector<1x128x128xbf16> to vector<128x128xbf16>
    %cst_89 = arith.constant dense<0.000000e+00> : vector<64x128xf32>
    %117 = tpu.matmul %114, %116, %cst_89 {dimension_numbers = #tpu.dot_dimension_numbers<[1], [0], [0], [1], [0, 0, 1, 1], [], []>} : vector<64x128xbf16>, vector<128x128xbf16>, vector<64x128xf32> -> vector<64x128xf32>
    %118 = arith.addf %112, %117 : vector<64x128xf32>
    %c7_i32_90 = arith.constant 7 : i32
    %119 = tpu.dynamic_rotate %103 by %c7_i32_90 dim 1 : vector<8x8x128xf32>, i32 -> vector<8x8x128xf32>
    %cst_91 = arith.constant 0.000000e+00 : f32
    %120 = vector.broadcast %cst_91 : f32 to vector<8x8x128xf32>
    %121 = arith.select %101, %119, %120 : vector<8x8x128xi1>, vector<8x8x128xf32>
    %122 = vector.shape_cast %121 : vector<8x8x128xf32> to vector<64x128xf32>
    %123 = arith.truncf %122 : vector<64x128xf32> to vector<64x128xbf16>
    %c2_92 = arith.constant 2 : index
    %c0_93 = arith.constant 0 : index
    %c0_94 = arith.constant 0 : index
    %124 = vector.load %arg4[%c2_92, %c0_93, %c0_94] : memref<9x128x128xbf16, #tpu.memory_space<vmem>>, vector<1x128x128xbf16>
    %125 = vector.shape_cast %124 : vector<1x128x128xbf16> to vector<128x128xbf16>
    %cst_95 = arith.constant dense<0.000000e+00> : vector<64x128xf32>
    %126 = tpu.matmul %123, %125, %cst_95 {dimension_numbers = #tpu.dot_dimension_numbers<[1], [0], [0], [1], [0, 0, 1, 1], [], []>} : vector<64x128xbf16>, vector<128x128xbf16>, vector<64x128xf32> -> vector<64x128xf32>
    %127 = arith.addf %118, %126 : vector<64x128xf32>
    %c1_96 = arith.constant 1 : index
    %c0_97 = arith.constant 0 : index
    %c0_98 = arith.constant 0 : index
    %128 = vector.load %arg8[%c1_96, %c0_97, %c0_98] : memref<10x8x128xf32, #tpu.memory_space<vmem>>, vector<8x8x128xf32>
    %c1_i32_99 = arith.constant 1 : i32
    %129 = tpu.dynamic_rotate %128 by %c1_i32_99 dim 1 : vector<8x8x128xf32>, i32 -> vector<8x8x128xf32>
    %cst_100 = arith.constant 0.000000e+00 : f32
    %130 = vector.broadcast %cst_100 : f32 to vector<8x8x128xf32>
    %131 = arith.select %99, %129, %130 : vector<8x8x128xi1>, vector<8x8x128xf32>
    %132 = vector.shape_cast %131 : vector<8x8x128xf32> to vector<64x128xf32>
    %133 = arith.truncf %132 : vector<64x128xf32> to vector<64x128xbf16>
    %c3_101 = arith.constant 3 : index
    %c0_102 = arith.constant 0 : index
    %c0_103 = arith.constant 0 : index
    %134 = vector.load %arg4[%c3_101, %c0_102, %c0_103] : memref<9x128x128xbf16, #tpu.memory_space<vmem>>, vector<1x128x128xbf16>
    %135 = vector.shape_cast %134 : vector<1x128x128xbf16> to vector<128x128xbf16>
    %cst_104 = arith.constant dense<0.000000e+00> : vector<64x128xf32>
    %136 = tpu.matmul %133, %135, %cst_104 {dimension_numbers = #tpu.dot_dimension_numbers<[1], [0], [0], [1], [0, 0, 1, 1], [], []>} : vector<64x128xbf16>, vector<128x128xbf16>, vector<64x128xf32> -> vector<64x128xf32>
    %137 = arith.addf %127, %136 : vector<64x128xf32>
    %138 = vector.shape_cast %128 : vector<8x8x128xf32> to vector<64x128xf32>
    %139 = arith.truncf %138 : vector<64x128xf32> to vector<64x128xbf16>
    %c4_105 = arith.constant 4 : index
    %c0_106 = arith.constant 0 : index
    %c0_107 = arith.constant 0 : index
    %140 = vector.load %arg4[%c4_105, %c0_106, %c0_107] : memref<9x128x128xbf16, #tpu.memory_space<vmem>>, vector<1x128x128xbf16>
    %141 = vector.shape_cast %140 : vector<1x128x128xbf16> to vector<128x128xbf16>
    %cst_108 = arith.constant dense<0.000000e+00> : vector<64x128xf32>
    %142 = tpu.matmul %139, %141, %cst_108 {dimension_numbers = #tpu.dot_dimension_numbers<[1], [0], [0], [1], [0, 0, 1, 1], [], []>} : vector<64x128xbf16>, vector<128x128xbf16>, vector<64x128xf32> -> vector<64x128xf32>
    %143 = arith.addf %137, %142 : vector<64x128xf32>
    %c7_i32_109 = arith.constant 7 : i32
    %144 = tpu.dynamic_rotate %128 by %c7_i32_109 dim 1 : vector<8x8x128xf32>, i32 -> vector<8x8x128xf32>
    %cst_110 = arith.constant 0.000000e+00 : f32
    %145 = vector.broadcast %cst_110 : f32 to vector<8x8x128xf32>
    %146 = arith.select %101, %144, %145 : vector<8x8x128xi1>, vector<8x8x128xf32>
    %147 = vector.shape_cast %146 : vector<8x8x128xf32> to vector<64x128xf32>
    %148 = arith.truncf %147 : vector<64x128xf32> to vector<64x128xbf16>
    %c5_111 = arith.constant 5 : index
    %c0_112 = arith.constant 0 : index
    %c0_113 = arith.constant 0 : index
    %149 = vector.load %arg4[%c5_111, %c0_112, %c0_113] : memref<9x128x128xbf16, #tpu.memory_space<vmem>>, vector<1x128x128xbf16>
    %150 = vector.shape_cast %149 : vector<1x128x128xbf16> to vector<128x128xbf16>
    %cst_114 = arith.constant dense<0.000000e+00> : vector<64x128xf32>
    %151 = tpu.matmul %148, %150, %cst_114 {dimension_numbers = #tpu.dot_dimension_numbers<[1], [0], [0], [1], [0, 0, 1, 1], [], []>} : vector<64x128xbf16>, vector<128x128xbf16>, vector<64x128xf32> -> vector<64x128xf32>
    %152 = arith.addf %143, %151 : vector<64x128xf32>
    %c2_115 = arith.constant 2 : index
    %c0_116 = arith.constant 0 : index
    %c0_117 = arith.constant 0 : index
    %153 = vector.load %arg8[%c2_115, %c0_116, %c0_117] : memref<10x8x128xf32, #tpu.memory_space<vmem>>, vector<8x8x128xf32>
    %c1_i32_118 = arith.constant 1 : i32
    %154 = tpu.dynamic_rotate %153 by %c1_i32_118 dim 1 : vector<8x8x128xf32>, i32 -> vector<8x8x128xf32>
    %cst_119 = arith.constant 0.000000e+00 : f32
    %155 = vector.broadcast %cst_119 : f32 to vector<8x8x128xf32>
    %156 = arith.select %99, %154, %155 : vector<8x8x128xi1>, vector<8x8x128xf32>
    %157 = vector.shape_cast %156 : vector<8x8x128xf32> to vector<64x128xf32>
    %158 = arith.truncf %157 : vector<64x128xf32> to vector<64x128xbf16>
    %c6_120 = arith.constant 6 : index
    %c0_121 = arith.constant 0 : index
    %c0_122 = arith.constant 0 : index
    %159 = vector.load %arg4[%c6_120, %c0_121, %c0_122] : memref<9x128x128xbf16, #tpu.memory_space<vmem>>, vector<1x128x128xbf16>
    %160 = vector.shape_cast %159 : vector<1x128x128xbf16> to vector<128x128xbf16>
    %cst_123 = arith.constant dense<0.000000e+00> : vector<64x128xf32>
    %161 = tpu.matmul %158, %160, %cst_123 {dimension_numbers = #tpu.dot_dimension_numbers<[1], [0], [0], [1], [0, 0, 1, 1], [], []>} : vector<64x128xbf16>, vector<128x128xbf16>, vector<64x128xf32> -> vector<64x128xf32>
    %162 = arith.addf %152, %161 : vector<64x128xf32>
    %163 = vector.shape_cast %153 : vector<8x8x128xf32> to vector<64x128xf32>
    %164 = arith.truncf %163 : vector<64x128xf32> to vector<64x128xbf16>
    %c7_124 = arith.constant 7 : index
    %c0_125 = arith.constant 0 : index
    %c0_126 = arith.constant 0 : index
    %165 = vector.load %arg4[%c7_124, %c0_125, %c0_126] : memref<9x128x128xbf16, #tpu.memory_space<vmem>>, vector<1x128x128xbf16>
    %166 = vector.shape_cast %165 : vector<1x128x128xbf16> to vector<128x128xbf16>
    %cst_127 = arith.constant dense<0.000000e+00> : vector<64x128xf32>
    %167 = tpu.matmul %164, %166, %cst_127 {dimension_numbers = #tpu.dot_dimension_numbers<[1], [0], [0], [1], [0, 0, 1, 1], [], []>} : vector<64x128xbf16>, vector<128x128xbf16>, vector<64x128xf32> -> vector<64x128xf32>
    %168 = arith.addf %162, %167 : vector<64x128xf32>
    %c7_i32_128 = arith.constant 7 : i32
    %169 = tpu.dynamic_rotate %153 by %c7_i32_128 dim 1 : vector<8x8x128xf32>, i32 -> vector<8x8x128xf32>
    %cst_129 = arith.constant 0.000000e+00 : f32
    %170 = vector.broadcast %cst_129 : f32 to vector<8x8x128xf32>
    %171 = arith.select %101, %169, %170 : vector<8x8x128xi1>, vector<8x8x128xf32>
    %172 = vector.shape_cast %171 : vector<8x8x128xf32> to vector<64x128xf32>
    %173 = arith.truncf %172 : vector<64x128xf32> to vector<64x128xbf16>
    %c8_130 = arith.constant 8 : index
    %c0_131 = arith.constant 0 : index
    %c0_132 = arith.constant 0 : index
    %174 = vector.load %arg4[%c8_130, %c0_131, %c0_132] : memref<9x128x128xbf16, #tpu.memory_space<vmem>>, vector<1x128x128xbf16>
    %175 = vector.shape_cast %174 : vector<1x128x128xbf16> to vector<128x128xbf16>
    %cst_133 = arith.constant dense<0.000000e+00> : vector<64x128xf32>
    %176 = tpu.matmul %173, %175, %cst_133 {dimension_numbers = #tpu.dot_dimension_numbers<[1], [0], [0], [1], [0, 0, 1, 1], [], []>} : vector<64x128xbf16>, vector<128x128xbf16>, vector<64x128xf32> -> vector<64x128xf32>
    %177 = arith.addf %168, %176 : vector<64x128xf32>
    %c0_134 = arith.constant 0 : index
    %c0_135 = arith.constant 0 : index
    %178 = vector.load %arg5[%c0_134, %c0_135] : memref<1x128xf32, #tpu.memory_space<vmem>>, vector<1x128xf32>
    %179 = vector.broadcast %178 : vector<1x128xf32> to vector<64x128xf32>
    %180 = arith.addf %177, %179 : vector<64x128xf32>
    %cst_136 = arith.constant 0.000000e+00 : f32
    %181 = vector.broadcast %cst_136 : f32 to vector<64x128xf32>
    %182 = arith.maximumf %180, %181 : vector<64x128xf32>
    %183 = arith.truncf %182 : vector<64x128xf32> to vector<64x128xbf16>
    %c0_137 = arith.constant 0 : index
    %c0_138 = arith.constant 0 : index
    %c0_139 = arith.constant 0 : index
    %184 = vector.load %arg6[%c0_137, %c0_138, %c0_139] : memref<1x64x128xbf16, #tpu.memory_space<vmem>>, vector<1x64x128xbf16>
    %185 = vector.shape_cast %184 : vector<1x64x128xbf16> to vector<64x128xbf16>
    %186 = vector.shape_cast %183 : vector<64x128xbf16> to vector<1x64x128xbf16>
    tpu.vector_store %arg6[%c0_137, %c0_138, %c0_139], %186 {strides = array<i32>} : memref<1x64x128xbf16, #tpu.memory_space<vmem>>, vector<1x64x128xbf16>,
    return
  }
  func.func @transform_0(%arg0: i32) -> (i32, i32, i32, i32) {
    %c0_i32 = arith.constant 0 : i32
    %c0_i32_0 = arith.constant 0 : i32
    %c0_i32_1 = arith.constant 0 : i32
    %c0_i32_2 = arith.constant 0 : i32
    return %arg0, %c0_i32, %c0_i32_0, %c0_i32_1 : i32, i32, i32, i32
  }
  func.func @transform_1(%arg0: i32) -> (i32, i32, i32) {
    %c0_i32 = arith.constant 0 : i32
    %c0_i32_0 = arith.constant 0 : i32
    %c0_i32_1 = arith.constant 0 : i32
    %c0_i32_2 = arith.constant 0 : i32
    return %c0_i32, %c0_i32_0, %c0_i32_1 : i32, i32, i32
  }
  func.func @transform_2(%arg0: i32) -> (i32, i32) {
    %c0_i32 = arith.constant 0 : i32
    %c0_i32_0 = arith.constant 0 : i32
    %c0_i32_1 = arith.constant 0 : i32
    return %c0_i32, %c0_i32_0 : i32, i32
  }
  func.func @transform_3(%arg0: i32) -> (i32, i32, i32) {
    %c0_i32 = arith.constant 0 : i32
    %c0_i32_0 = arith.constant 0 : i32
    %c0_i32_1 = arith.constant 0 : i32
    %c0_i32_2 = arith.constant 0 : i32
    return %c0_i32, %c0_i32_0, %c0_i32_1 : i32, i32, i32
  }
  func.func @transform_4(%arg0: i32) -> (i32, i32) {
    %c0_i32 = arith.constant 0 : i32
    %c0_i32_0 = arith.constant 0 : i32
    %c0_i32_1 = arith.constant 0 : i32
    return %c0_i32, %c0_i32_0 : i32, i32
  }
  func.func @transform_5(%arg0: i32) -> (i32, i32, i32) {
    %c0_i32 = arith.constant 0 : i32
    %c0_i32_0 = arith.constant 0 : i32
    %c0_i32_1 = arith.constant 0 : i32
    return %arg0, %c0_i32, %c0_i32_0 : i32, i32, i32
  }
}

module attributes {stable_mosaic.version = 11 : i64} {
  func.func @_linear_kernel(%arg0: i32, %arg1: memref<2x512xbf16, #tpu.memory_space<vmem>>, %arg2: memref<512x128xbf16, #tpu.memory_space<vmem>>, %arg3: memref<1x128xf32, #tpu.memory_space<vmem>>, %arg4: memref<2x128xbf16, #tpu.memory_space<vmem>>, %arg5: memref<2x128xf32, #tpu.memory_space<vmem>>) attributes {dimension_semantics = [#tpu.dimension_semantics<arbitrary>], iteration_bounds = array<i64: 4>, scalar_prefetch = 0 : i64, scratch_operands = 1 : i64, tpu.core_type = #tpu.core_type<tc>, window_params = [{transform_indices = @transform_0, window_bounds = array<i64: 2, 512>}, {transform_indices = @transform_1, window_bounds = array<i64: 512, 128>}, {pipeline_mode = #tpu.pipeline_mode<synchronous>, transform_indices = @transform_2, window_bounds = array<i64: 1, 128>}, {pipeline_mode = #tpu.pipeline_mode<synchronous>, transform_indices = @transform_3, window_bounds = array<i64: 2, 128>}]} {
    %c0_i32 = arith.constant 0 : i32
    %0 = arith.cmpi eq, %arg0, %c0_i32 : i32
    %1 = arith.extui %0 : i1 to i32
    %c0_i32_0 = arith.constant 0 : i32
    %2 = arith.cmpi ne, %1, %c0_i32_0 : i32
    scf.if %2 {
      %cst_9 = arith.constant 0.000000e+00 : f32
      %12 = vector.broadcast %cst_9 : f32 to vector<2x128xf32>
      %c0_10 = arith.constant 0 : index
      %c0_11 = arith.constant 0 : index
      %13 = vector.load %arg5[%c0_10, %c0_11] : memref<2x128xf32, #tpu.memory_space<vmem>>, vector<2x128xf32>
      tpu.vector_store %arg5[%c0_10, %c0_11], %12 {strides = array<i32>} : memref<2x128xf32, #tpu.memory_space<vmem>>, vector<2x128xf32>,
    } else {
    }
    %c0 = arith.constant 0 : index
    %c0_1 = arith.constant 0 : index
    %3 = vector.load %arg5[%c0, %c0_1] : memref<2x128xf32, #tpu.memory_space<vmem>>, vector<2x128xf32>
    %c0_2 = arith.constant 0 : index
    %c0_3 = arith.constant 0 : index
    %4 = vector.load %arg1[%c0_2, %c0_3] : memref<2x512xbf16, #tpu.memory_space<vmem>>, vector<2x512xbf16>
    %c0_4 = arith.constant 0 : index
    %c0_5 = arith.constant 0 : index
    %5 = vector.load %arg2[%c0_4, %c0_5] : memref<512x128xbf16, #tpu.memory_space<vmem>>, vector<512x128xbf16>
    %cst = arith.constant dense<0.000000e+00> : vector<2x128xf32>
    %6 = tpu.matmul %4, %5, %cst {dimension_numbers = #tpu.dot_dimension_numbers<[1], [0], [0], [1], [0, 0, 1, 1], [], []>} : vector<2x512xbf16>, vector<512x128xbf16>, vector<2x128xf32> -> vector<2x128xf32>
    %7 = arith.addf %3, %6 : vector<2x128xf32>
    %c0_6 = arith.constant 0 : index
    %c0_7 = arith.constant 0 : index
    %8 = vector.load %arg5[%c0_6, %c0_7] : memref<2x128xf32, #tpu.memory_space<vmem>>, vector<2x128xf32>
    tpu.vector_store %arg5[%c0_6, %c0_7], %7 {strides = array<i32>} : memref<2x128xf32, #tpu.memory_space<vmem>>, vector<2x128xf32>,
    %c3_i32 = arith.constant 3 : i32
    %9 = arith.cmpi eq, %arg0, %c3_i32 : i32
    %10 = arith.extui %9 : i1 to i32
    %c0_i32_8 = arith.constant 0 : i32
    %11 = arith.cmpi ne, %10, %c0_i32_8 : i32
    scf.if %11 {
      %c0_9 = arith.constant 0 : index
      %c0_10 = arith.constant 0 : index
      %12 = vector.load %arg5[%c0_9, %c0_10] : memref<2x128xf32, #tpu.memory_space<vmem>>, vector<2x128xf32>
      %c0_11 = arith.constant 0 : index
      %c0_12 = arith.constant 0 : index
      %13 = vector.load %arg3[%c0_11, %c0_12] : memref<1x128xf32, #tpu.memory_space<vmem>>, vector<1x128xf32>
      %14 = vector.broadcast %13 : vector<1x128xf32> to vector<2x128xf32>
      %15 = arith.addf %12, %14 : vector<2x128xf32>
      %cst_13 = arith.constant 0.000000e+00 : f32
      %16 = vector.broadcast %cst_13 : f32 to vector<2x128xf32>
      %17 = arith.maximumf %15, %16 : vector<2x128xf32>
      %18 = arith.truncf %17 : vector<2x128xf32> to vector<2x128xbf16>
      %c0_14 = arith.constant 0 : index
      %c0_15 = arith.constant 0 : index
      %19 = vector.load %arg4[%c0_14, %c0_15] : memref<2x128xbf16, #tpu.memory_space<vmem>>, vector<2x128xbf16>
      tpu.vector_store %arg4[%c0_14, %c0_15], %18 {strides = array<i32>} : memref<2x128xbf16, #tpu.memory_space<vmem>>, vector<2x128xbf16>,
    } else {
    }
    return
  }
  func.func @transform_0(%arg0: i32) -> (i32, i32) {
    %c0_i32 = arith.constant 0 : i32
    %c0_i32_0 = arith.constant 0 : i32
    return %c0_i32, %arg0 : i32, i32
  }
  func.func @transform_1(%arg0: i32) -> (i32, i32) {
    %c0_i32 = arith.constant 0 : i32
    %c0_i32_0 = arith.constant 0 : i32
    return %arg0, %c0_i32 : i32, i32
  }
  func.func @transform_2(%arg0: i32) -> (i32, i32) {
    %c0_i32 = arith.constant 0 : i32
    %c0_i32_0 = arith.constant 0 : i32
    %c0_i32_1 = arith.constant 0 : i32
    return %c0_i32, %c0_i32_0 : i32, i32
  }
  func.func @transform_3(%arg0: i32) -> (i32, i32) {
    %c0_i32 = arith.constant 0 : i32
    %c0_i32_0 = arith.constant 0 : i32
    %c0_i32_1 = arith.constant 0 : i32
    return %c0_i32, %c0_i32_0 : i32, i32
  }
}

module attributes {stable_mosaic.version = 11 : i64} {
  func.func @_linear_kernel(%arg0: i32, %arg1: memref<2x128xbf16, #tpu.memory_space<vmem>>, %arg2: memref<128x16xbf16, #tpu.memory_space<vmem>>, %arg3: memref<1x16xf32, #tpu.memory_space<vmem>>, %arg4: memref<2x16xf32, #tpu.memory_space<vmem>>, %arg5: memref<2x16xf32, #tpu.memory_space<vmem>>) attributes {dimension_semantics = [#tpu.dimension_semantics<arbitrary>], iteration_bounds = array<i64: 1>, scalar_prefetch = 0 : i64, scratch_operands = 1 : i64, tpu.core_type = #tpu.core_type<tc>, window_params = [{transform_indices = @transform_0, window_bounds = array<i64: 2, 128>}, {transform_indices = @transform_1, window_bounds = array<i64: 128, 16>}, {pipeline_mode = #tpu.pipeline_mode<synchronous>, transform_indices = @transform_2, window_bounds = array<i64: 1, 16>}, {pipeline_mode = #tpu.pipeline_mode<synchronous>, transform_indices = @transform_3, window_bounds = array<i64: 2, 16>}]} {
    %c0_i32 = arith.constant 0 : i32
    %0 = arith.cmpi eq, %arg0, %c0_i32 : i32
    %1 = arith.extui %0 : i1 to i32
    %c0_i32_0 = arith.constant 0 : i32
    %2 = arith.cmpi ne, %1, %c0_i32_0 : i32
    scf.if %2 {
      %cst_10 = arith.constant 0.000000e+00 : f32
      %12 = vector.broadcast %cst_10 : f32 to vector<2x16xf32>
      %c0_11 = arith.constant 0 : index
      %c0_12 = arith.constant 0 : index
      %13 = vector.load %arg5[%c0_11, %c0_12] : memref<2x16xf32, #tpu.memory_space<vmem>>, vector<2x16xf32>
      tpu.vector_store %arg5[%c0_11, %c0_12], %12 {strides = array<i32>} : memref<2x16xf32, #tpu.memory_space<vmem>>, vector<2x16xf32>,
    } else {
    }
    %c0 = arith.constant 0 : index
    %c0_1 = arith.constant 0 : index
    %3 = vector.load %arg5[%c0, %c0_1] : memref<2x16xf32, #tpu.memory_space<vmem>>, vector<2x16xf32>
    %c0_2 = arith.constant 0 : index
    %c0_3 = arith.constant 0 : index
    %4 = vector.load %arg1[%c0_2, %c0_3] : memref<2x128xbf16, #tpu.memory_space<vmem>>, vector<2x128xbf16>
    %c0_4 = arith.constant 0 : index
    %c0_5 = arith.constant 0 : index
    %5 = vector.load %arg2[%c0_4, %c0_5] : memref<128x16xbf16, #tpu.memory_space<vmem>>, vector<128x16xbf16>
    %cst = arith.constant dense<0.000000e+00> : vector<2x16xf32>
    %6 = tpu.matmul %4, %5, %cst {dimension_numbers = #tpu.dot_dimension_numbers<[1], [0], [0], [1], [0, 0, 1, 1], [], []>} : vector<2x128xbf16>, vector<128x16xbf16>, vector<2x16xf32> -> vector<2x16xf32>
    %7 = arith.addf %3, %6 : vector<2x16xf32>
    %c0_6 = arith.constant 0 : index
    %c0_7 = arith.constant 0 : index
    %8 = vector.load %arg5[%c0_6, %c0_7] : memref<2x16xf32, #tpu.memory_space<vmem>>, vector<2x16xf32>
    tpu.vector_store %arg5[%c0_6, %c0_7], %7 {strides = array<i32>} : memref<2x16xf32, #tpu.memory_space<vmem>>, vector<2x16xf32>,
    %c0_i32_8 = arith.constant 0 : i32
    %9 = arith.cmpi eq, %arg0, %c0_i32_8 : i32
    %10 = arith.extui %9 : i1 to i32
    %c0_i32_9 = arith.constant 0 : i32
    %11 = arith.cmpi ne, %10, %c0_i32_9 : i32
    scf.if %11 {
      %c0_10 = arith.constant 0 : index
      %c0_11 = arith.constant 0 : index
      %12 = vector.load %arg5[%c0_10, %c0_11] : memref<2x16xf32, #tpu.memory_space<vmem>>, vector<2x16xf32>
      %c0_12 = arith.constant 0 : index
      %c0_13 = arith.constant 0 : index
      %13 = vector.load %arg3[%c0_12, %c0_13] : memref<1x16xf32, #tpu.memory_space<vmem>>, vector<1x16xf32>
      %14 = vector.broadcast %13 : vector<1x16xf32> to vector<2x16xf32>
      %15 = arith.addf %12, %14 : vector<2x16xf32>
      %c0_14 = arith.constant 0 : index
      %c0_15 = arith.constant 0 : index
      %16 = vector.load %arg4[%c0_14, %c0_15] : memref<2x16xf32, #tpu.memory_space<vmem>>, vector<2x16xf32>
      tpu.vector_store %arg4[%c0_14, %c0_15], %15 {strides = array<i32>} : memref<2x16xf32, #tpu.memory_space<vmem>>, vector<2x16xf32>,
    } else {
    }
    return
  }
  func.func @transform_0(%arg0: i32) -> (i32, i32) {
    %c0_i32 = arith.constant 0 : i32
    %c0_i32_0 = arith.constant 0 : i32
    return %c0_i32, %arg0 : i32, i32
  }
  func.func @transform_1(%arg0: i32) -> (i32, i32) {
    %c0_i32 = arith.constant 0 : i32
    %c0_i32_0 = arith.constant 0 : i32
    return %arg0, %c0_i32 : i32, i32
  }
  func.func @transform_2(%arg0: i32) -> (i32, i32) {
    %c0_i32 = arith.constant 0 : i32
    %c0_i32_0 = arith.constant 0 : i32
    %c0_i32_1 = arith.constant 0 : i32
    return %c0_i32, %c0_i32_0 : i32, i32
  }
  func.func @transform_3(%arg0: i32) -> (i32, i32) {
    %c0_i32 = arith.constant 0 : i32
    %c0_i32_0 = arith.constant 0 : i32
    %c0_i32_1 = arith.constant 0 : i32
    return %c0_i32, %c0_i32_0 : i32, i32
  }
}

</mosaic_0001>

<bundles_post_ra>
// kernel: filmed_net_forward.13
= control target key start
LH: loop header
LB: loop body
LE: loop exit
PB: predicated region body
PF: predicated region fallthrough
CT: control target
= control target key end

     0   :  { %s531_s12 = smov 0   ;;  %s604_s0 = inlined_call_operand.vmem [shape: bf16[2,64,128], index: 0, kind: input, shape index: {}]   ;;  %s605_s1 = inlined_call_operand.vmem [shape: bf16[128,128], index: 1, kind: input, shape index: {}]   ;;  %s606_s2 = inlined_call_operand.vmem [shape: f32[64,128], index: 2, kind: input, shape index: {}]   ;;  %s607_s3 = inlined_call_operand.vmem [shape: bf16[2,4,8,128], index: 3, kind: output, shape index: {}]  }
   0x1 LB: > { %s387_s13 = sadd.s32 4294967295, %s509_s12   ;;  %p391_p0 = scmp.ge.s32.totalorder %s509_s12, 1  ;;  %s509_s12 = sphi %s531_s12, %s13_s12  }
   0x2   : > { %p137_p1 = scmp.lt.s32.totalorder %s509_s12, 3 }
   0x4   : > { %p138_p2 = pnand %p391_p0, %p137_p1 }
   0x5   : > { %p161_p3 = scmp.lt.s32.totalorder (!%p138_p2), %s387_s13, 1 }
   0x6   : > { %141 = sbr.rel (%p138_p2) target bundleno = 197 (0xc5), region = 32 }
   0xb   : > { %v459_v0 = vld [vmem:[%s605_s1 + $0x38] sm:$0xff]  ;;  %v458_v1 = vld [vmem:[%s605_s1 + $0x30] sm:$0xff]  ;;  %v457_v2 = vld [vmem:[%s605_s1 + $0x28] sm:$0xff]  ;;  %s609_s13 = smov (!%p161_p3, %s387_s13), 1 }
   0xc   : > { %275 = vmatpush.bf16.msra.mxu0 %v459_v0  ;;  %471 = vmatpush.bf16.msra.mxu1 %v459_v0  ;;  %v456_v3 = vld [vmem:[%s605_s1 + $0x20] sm:$0xff]  ;;  %v455_v4 = vld [vmem:[%s605_s1 + $0x18] sm:$0xff]  ;;  %v454_v5 = vld [vmem:[%s605_s1 + $0x10] sm:$0xff]  ;;  %s446_s28 = sshll.u32 %s609_s13, 5  ;;  %s447_s25 = sshll.u32 %s609_s13, 4 }
   0xd   : > { %472 = vmatpush.bf16.msra.mxu2 %v459_v0  ;;  %473 = vmatpush.bf16.msra.mxu3 %v459_v0  ;;  %v453_v6 = vld [vmem:[%s605_s1 + $0x8] sm:$0xff]  ;;  %v452_v7 = vld [vmem:[%s605_s1] sm:$0xff]  ;;  %s165_s6 = scalar_lea.vmem %s604_s0, %s446_s28  ;;  %v197_v15 = vld [vmem:[%s606_s2 + $0x10] sm:$0xff]  ;;  %s170_s28 = scalar_lea.vmem %s607_s3, %s447_s25 }
   0xe   : > { %v448_v8 = vld [vmem:[%s165_s6] sm:$0xff]  ;;  %v449_v9 = vld [vmem:[%s165_s6 + $0x8] sm:$0xff]  ;;  %v450_v10 = vld [vmem:[%s165_s6 + $0x10] sm:$0xff] }
   0xf   : > { %v451_v11 = vld [vmem:[%s165_s6 + $0x18] sm:$0xff]  ;;  %v195_v14 = vld [vmem:[%s606_s2] sm:$0xff]  ;;  %v196_v16 = vld [vmem:[%s606_s2 + $0x8] sm:$0xff] }
  0x10   : > { %276 = vmatpush.bf16.msra.mxu0 %v458_v1  ;;  %474 = vmatpush.bf16.msra.mxu1 %v458_v1  ;;  %v198_v17 = vld [vmem:[%s606_s2 + $0x18] sm:$0xff]  ;;  %v199_v28 = vld [vmem:[%s606_s2 + $0x20] sm:$0xff]  ;;  %v201_v29 = vld [vmem:[%s606_s2 + $0x30] sm:$0xff] }
  0x11   : > { %475 = vmatpush.bf16.msra.mxu2 %v458_v1  ;;  %476 = vmatpush.bf16.msra.mxu3 %v458_v1  ;;  %v200_v34 = vld [vmem:[%s606_s2 + $0x28] sm:$0xff]  ;;  %v202_v35 = vld [vmem:[%s606_s2 + $0x38] sm:$0xff] }
  0x14   : > { %277 = vmatpush.bf16.msra.mxu0 %v457_v2  ;;  %477 = vmatpush.bf16.msra.mxu1 %v457_v2 }
  0x15   : > { %478 = vmatpush.bf16.msra.mxu2 %v457_v2  ;;  %479 = vmatpush.bf16.msra.mxu3 %v457_v2 }
  0x18   : > { %278 = vmatpush.bf16.msra.mxu0 %v456_v3  ;;  %480 = vmatpush.bf16.msra.mxu1 %v456_v3 }
  0x19   : > { %481 = vmatpush.bf16.msra.mxu2 %v456_v3  ;;  %482 = vmatpush.bf16.msra.mxu3 %v456_v3 }
  0x1c   : > { %279 = vmatpush.bf16.msra.mxu0 %v455_v4  ;;  %483 = vmatpush.bf16.msra.mxu1 %v455_v4 }
  0x1d   : > { %484 = vmatpush.bf16.msra.mxu2 %v455_v4  ;;  %485 = vmatpush.bf16.msra.mxu3 %v455_v4 }
  0x20   : > { %280 = vmatpush.bf16.msra.mxu0 %v454_v5  ;;  %486 = vmatpush.bf16.msra.mxu1 %v454_v5 }
  0x21   : > { %487 = vmatpush.bf16.msra.mxu2 %v454_v5  ;;  %488 = vmatpush.bf16.msra.mxu3 %v454_v5 }
  0x24   : > { %281 = vmatpush.bf16.msra.mxu0 %v453_v6  ;;  %489 = vmatpush.bf16.msra.mxu1 %v453_v6 }
  0x25   : > { %490 = vmatpush.bf16.msra.mxu2 %v453_v6  ;;  %491 = vmatpush.bf16.msra.mxu3 %v453_v6 }
  0x28   : > { %282 = vmatpush.bf16.msra.mxu0 %v452_v7  ;;  %492 = vmatpush.bf16.msra.mxu1 %v452_v7 }
  0x29   : > { %493 = vmatpush.bf16.msra.mxu2 %v452_v7  ;;  %494 = vmatpush.bf16.msra.mxu3 %v452_v7 }
  0x2b   : > { %283 = vmatmul.bf16.vlgmr.msra.gmra.mxu0 %v448_v8  ;;  %288 = vmatmul.bf16.vlgmr.msra.gmra.mxu1 %v449_v9 }
  0x2c   : > { %293 = vmatmul.bf16.vlgmr.msra.gmra.mxu2 %v450_v10  ;;  %298 = vmatmul.bf16.vlgmr.msra.gmra.mxu3 %v451_v11 }
  0xa8   : > { %v284_v12 = vpop.f32.mrf.mxu0  ;;  %v289_v13 = vpop.f32.mrf.mxu1 }
  0xa9   : > { %v285_v18 = vadd.f32 %v284_v12, %v195_v14  ;;  %v290_v19 = vadd.f32 %v289_v13, %v197_v15 }
  0xab   : > { %v304_v26 = vmax.f32 %v285_v18, 0.0  ;;  %v306_v27 = vmax.f32 %v290_v19, 0.0 }
  0xaf   : > { %v294_v20 = vpop.f32.mrf.mxu2  ;;  %v299_v21 = vpop.f32.mrf.mxu3 }
  0xb0   : > { %v286_v22 = vpop.f32.mrf.mxu0  ;;  %v291_v23 = vpop.f32.mrf.mxu1  ;;  %v295_v36 = vadd.f32 %v294_v20, %v199_v28  ;;  %v300_v37 = vadd.f32 %v299_v21, %v201_v29 }
  0xb1   : > { %v287_v24 = vadd.f32 %v286_v22, %v196_v16  ;;  %v292_v25 = vadd.f32 %v291_v23, %v198_v17 }
  0xb2   : > { %v308_v46 = vmax.f32 %v295_v36, 0.0  ;;  %v310_v47 = vmax.f32 %v300_v37, 0.0 }
  0xb3   : > { %v305_v30 = vmax.f32 %v287_v24, 0.0  ;;  %v307_v31 = vmax.f32 %v292_v25, 0.0 }
  0xb5   : > { %v312_v32 = vmax.f32 %v304_v26, %v305_v30  ;;  %v313_v33 = vmax.f32 %v306_v27, %v307_v31 }
  0xb7   : > { %v316_v38 = vrot.slane %v312_v32, 1  ;;  %v317_v39 = vrot.slane %v313_v33, 1  ;;  %v296_v40 = vpop.f32.mrf.mxu2  ;;  %v301_v41 = vpop.f32.mrf.mxu3 }
  0xb8   : > { %v297_v42 = vadd.f32 %v296_v40, %v200_v34  ;;  %v302_v43 = vadd.f32 %v301_v41, %v202_v35 }
  0xb9   : > { %v320_v44 = vmax.f32 %v312_v32, %v316_v38  ;;  %v321_v45 = vmax.f32 %v313_v33, %v317_v39 }
  0xba   : > { %v309_v48 = vmax.f32 %v297_v42, 0.0  ;;  %v311_v49 = vmax.f32 %v302_v43, 0.0 }
  0xbb   : > { %v463_v50 = vpack.c.bf16 %v321_v45, %v320_v44 }
  0xbc   : > { %v314_v51 = vmax.f32 %v308_v46, %v309_v48  ;;  %v315_v52 = vmax.f32 %v310_v47, %v311_v49 }
  0xbd   : > { %464 = vst [vmem:[%s170_s28] sm:$0xff] %v463_v50  }
  0xbe   : > { %v318_v53 = vrot.slane %v314_v51, 1  ;;  %v319_v54 = vrot.slane %v315_v52, 1 }
  0xc0   : > { %v322_v55 = vmax.f32 %v314_v51, %v318_v53  ;;  %v323_v56 = vmax.f32 %v315_v52, %v319_v54 }
  0xc2   : > { %v468_v57 = vpack.c.bf16 %v323_v56, %v322_v55 }
  0xc4   : > { %470 = vst [vmem:[%s170_s28 + $0x8] sm:$0xff] %v468_v57  }
  0xc5 PF: > { %s13_s12 = sadd.s32 1, %s509_s12  }
  0xc6   : > { %p10_p4 = scmp.ge.s32.totalorder %s13_s12, 4  }
  0xc8   :  { %12 = sbr.rel (!%p10_p4) target bundleno = 1 (0x1), region = 62 }

// kernel: filmed_net_forward.14
= control target key start
LH: loop header
LB: loop body
LE: loop exit
PB: predicated region body
PF: predicated region fallthrough
CT: control target
= control target key end

     0   :  { %s764_s12 = smov 0   ;;  %s835_s0 = inlined_call_operand.vmem [shape: bf16[2,2048], index: 0, kind: input, shape index: {}]   ;;  %s836_s1 = inlined_call_operand.vmem [shape: bf16[2048,128], index: 1, kind: input, shape index: {}]   ;;  %s837_s2 = inlined_call_operand.vmem [shape: f32[1,128], index: 2, kind: input, shape index: {}]   ;;  %s838_s3 = inlined_call_operand.vmem [shape: bf16[2,128], index: 3, kind: output, shape index: {}]  }
   0x1 LB: > { %s770_s13 = sadd.s32 4294967295, %s741_s12   ;;  %p557_p0 = scmp.ge.s32.totalorder %s741_s12, 1  ;;  %s741_s12 = sphi %s764_s12, %s13_s12  }
   0x2   : > { %p143_p1 = scmp.lt.s32.totalorder %s741_s12, 5 }
   0x4   : > { %p144_p2 = pnand %p557_p0, %p143_p1 }
   0x5   : > { %s558_s14 = sshll.u32 (!%p144_p2), %s770_s13, 2  ;;  %s559_s15 = sshll.u32 (!%p144_p2), %s770_s13, 6 }
   0x6   : > { %147 = sbr.rel (%p144_p2) target bundleno = 207 (0xcf), region = 32  ;;  %p167_p3 = scmp.lt.s32.totalorder (!%p144_p2), %s558_s14, 15 }
   0x7   : > { %p172_p4 = scmp.lt.s32.totalorder (!%p144_p2), %s559_s15, 255  ;;  %p561_p5 = scmp.ne.s32.totalorder (!%p144_p2), %s770_s13, 0 }
   0xb   : > { %s840_s14 = smov (!%p167_p3, %s558_s14), 15  ;;  %s842_s15 = smov (!%p172_p4, %s559_s15), 255 }
   0xc   : > { %s169_s18 = scalar_lea.vmem %s835_s0, %s840_s14  ;;  %s560_s19 = sshll.u32 %s842_s15, 2 }
   0xd   : > { %s785_s22 = scalar_lea.vmem %s836_s1, %s560_s19  ;;  %180 = sbr.rel (%p561_p5) target bundleno = 20 (0x14), region = 36 }
  0x12   : > { %v743_v0 = vmov 0.0  }
  0x13   : > { %181 = vst [vmem:[#allocation2] sm:$0x3] %v743_v0 }
  0x14 PF: > { %v700_v1 = vld [vmem:[%s785_s22 + $0x38] sm:$0xff]  ;;  %v699_v5 = vld [vmem:[%s785_s22 + $0x30] sm:$0xff]  ;;  %v698_v9 = vld [vmem:[%s785_s22 + $0x28] sm:$0xff]  ;;  %p690_p6 = scmp.ne.s32.totalorder %s770_s13, 3 }
  0x15   : > { %v708_v2 = vld [vmem:[%s785_s22 + $0x78] sm:$0xff]  ;;  %450 = vmatpush.bf16.msra.mxu0 %v700_v1  ;;  %v707_v6 = vld [vmem:[%s785_s22 + $0x70] sm:$0xff]  ;;  %v706_v10 = vld [vmem:[%s785_s22 + $0x68] sm:$0xff] }
  0x16   : > { %v716_v3 = vld [vmem:[%s785_s22 + $0xb8] sm:$0xff]  ;;  %463 = vmatpush.bf16.msra.mxu1 %v708_v2  ;;  %v715_v7 = vld [vmem:[%s785_s22 + $0xb0] sm:$0xff]  ;;  %v714_v11 = vld [vmem:[%s785_s22 + $0xa8] sm:$0xff] }
  0x17   : > { %v724_v4 = vld [vmem:[%s785_s22 + $0xf8] sm:$0xff]  ;;  %476 = vmatpush.bf16.msra.mxu2 %v716_v3  ;;  %v723_v8 = vld [vmem:[%s785_s22 + $0xf0] sm:$0xff]  ;;  %v722_v12 = vld [vmem:[%s785_s22 + $0xe8] sm:$0xff] }
  0x18   : > { %489 = vmatpush.bf16.msra.mxu3 %v724_v4  ;;  %v697_v13 = vld [vmem:[%s785_s22 + $0x20] sm:$0xff]  ;;  %v696_v18 = vld [vmem:[%s785_s22 + $0x18] sm:$0xff]  ;;  %v695_v22 = vld [vmem:[%s785_s22 + $0x10] sm:$0xff] }
  0x19   : > { %451 = vmatpush.bf16.msra.mxu0 %v699_v5  ;;  %v705_v14 = vld [vmem:[%s785_s22 + $0x60] sm:$0xff]  ;;  %v704_v19 = vld [vmem:[%s785_s22 + $0x58] sm:$0xff]  ;;  %v703_v23 = vld [vmem:[%s785_s22 + $0x50] sm:$0xff] }
  0x1a   : > { %464 = vmatpush.bf16.msra.mxu1 %v707_v6  ;;  %v183_v15 = vld [vmem:[%s169_s18] sm:$0xf]  ;;  %v712_v20 = vld [vmem:[%s785_s22 + $0x98] sm:$0xff]  ;;  %v711_v24 = vld [vmem:[%s785_s22 + $0x90] sm:$0xff] }
  0x1b   : > { %477 = vmatpush.bf16.msra.mxu2 %v715_v7  ;;  %v713_v16 = vld [vmem:[%s785_s22 + $0xa0] sm:$0xff]  ;;  %249 = vst [vmem:[#allocation1] ss:$9 sm:$0xff] %v183_v15  ;;  %v720_v21 = vld [vmem:[%s785_s22 + $0xd8] sm:$0xff]  ;;  %v719_v25 = vld [vmem:[%s785_s22 + $0xd0] sm:$0xff] }
  0x1c   : > { %490 = vmatpush.bf16.msra.mxu3 %v723_v8  ;;  %v721_v17 = vld [vmem:[%s785_s22 + $0xe0] sm:$0xff]  ;;  %v694_v26 = vld [vmem:[%s785_s22 + $0x8] sm:$0xff] }
  0x1d   : > { %452 = vmatpush.bf16.msra.mxu0 %v698_v9  ;;  %v702_v27 = vld [vmem:[%s785_s22 + $0x48] sm:$0xff]  ;;  %v693_v30 = vld [vmem:[%s785_s22] sm:$0xff] }
  0x1e   : > { %465 = vmatpush.bf16.msra.mxu1 %v706_v10  ;;  %v710_v28 = vld [vmem:[%s785_s22 + $0x88] sm:$0xff]  ;;  %v701_v31 = vld [vmem:[%s785_s22 + $0x40] sm:$0xff] }
  0x1f   : > { %478 = vmatpush.bf16.msra.mxu2 %v714_v11  ;;  %v718_v29 = vld [vmem:[%s785_s22 + $0xc8] sm:$0xff]  ;;  %v709_v32 = vld [vmem:[%s785_s22 + $0x80] sm:$0xff] }
  0x20   : > { %491 = vmatpush.bf16.msra.mxu3 %v722_v12  ;;  %v717_v33 = vld [vmem:[%s785_s22 + $0xc0] sm:$0xff]  ;;  %v182_v46 = vld [vmem:[#allocation2] sm:$0x3] }
  0x21   : > { %453 = vmatpush.bf16.msra.mxu0 %v697_v13 }
  0x22   : > { %466 = vmatpush.bf16.msra.mxu1 %v705_v14  ;;  %v250_v34 = vld [vmem:[#allocation1] sm:$0xff]  ;;  %v251_v35 = vld [vmem:[#allocation1 + $0x9] sm:$0xff]  ;;  %v252_v36 = vld [vmem:[#allocation1 + $0x12] sm:$0xff] }
  0x23   : > { %479 = vmatpush.bf16.msra.mxu2 %v713_v16  ;;  %v253_v37 = vld [vmem:[#allocation1 + $0x1b] sm:$0xff] }
  0x24   : > { %492 = vmatpush.bf16.msra.mxu3 %v721_v17 }
  0x25   : > { %454 = vmatpush.bf16.msra.mxu0 %v696_v18 }
  0x26   : > { %467 = vmatpush.bf16.msra.mxu1 %v704_v19 }
  0x27   : > { %480 = vmatpush.bf16.msra.mxu2 %v712_v20 }
  0x28   : > { %493 = vmatpush.bf16.msra.mxu3 %v720_v21 }
  0x29   : > { %455 = vmatpush.bf16.msra.mxu0 %v695_v22 }
  0x2a   : > { %468 = vmatpush.bf16.msra.mxu1 %v703_v23 }
  0x2b   : > { %481 = vmatpush.bf16.msra.mxu2 %v711_v24 }
  0x2c   : > { %494 = vmatpush.bf16.msra.mxu3 %v719_v25 }
  0x2d   : > { %456 = vmatpush.bf16.msra.mxu0 %v694_v26 }
  0x2e   : > { %469 = vmatpush.bf16.msra.mxu1 %v702_v27 }
  0x2f   : > { %482 = vmatpush.bf16.msra.mxu2 %v710_v28 }
  0x30   : > { %495 = vmatpush.bf16.msra.mxu3 %v718_v29 }
  0x31   : > { %457 = vmatpush.bf16.msra.mxu0 %v693_v30 }
  0x32   : > { %470 = vmatpush.bf16.msra.mxu1 %v701_v31 }
  0x33   : > { %483 = vmatpush.bf16.msra.mxu2 %v709_v32 }
  0x34   : > { %496 = vmatpush.bf16.msra.mxu3 %v717_v33  ;;  %458 = vmatmul.bf16.vlgmr.msra.gmra.mxu0 %v250_v34 }
  0x35   : > { %471 = vmatmul.bf16.vlgmr.msra.gmra.mxu1 %v251_v35 }
  0x36   : > { %484 = vmatmul.bf16.vlgmr.msra.gmra.mxu2 %v252_v36 }
  0x37   : > { %497 = vmatmul.bf16.vlgmr.msra.gmra.mxu3 %v253_v37 }
  0xb1   : > { %v459_v38 = vpop.f32.mrf.mxu0 }
  0xb2   : > { %v472_v39 = vpop.f32.mrf.mxu1 }
  0xb3   : > { %v473_v40 = vadd.f32 %v472_v39, %v459_v38 }
  0xb9   : > { %v485_v41 = vpop.f32.mrf.mxu2  ;;  %v461_v44 = vpop.f32.mrf.mxu0 }
  0xba   : > { %v498_v42 = vpop.f32.mrf.mxu3  ;;  %v486_v43 = vadd.f32 %v485_v41, %v473_v40  ;;  %v474_v45 = vpop.f32.mrf.mxu1 }
  0xbc   : > { %v499_v47 = vadd.f32 %v498_v42, %v486_v43 }
  0xbe   : > { %v502_v48 = vadd.f32 %v499_v47, %v182_v46  ;;  %507 = sbr.rel (%p690_p6) target bundleno = 207 (0xcf), region = 40 }
  0xc0   : > { %503 = vst [vmem:[#allocation2] sm:$0x3] %v502_v48 }
  0xc1   : > { %v487_v49 = vpop.f32.mrf.mxu2 }
  0xc2   : > { %v500_v50 = vpop.f32.mrf.mxu3 }
  0xc3   : > { %v734_v52 = vld [vmem:[%s837_s2] ss:$0 sm:$0xff] }
  0xc7   : > { %v508_v51 = vld [vmem:[#allocation2] sm:$0x3] }
  0xc8   : > { %v513_v53 = vadd.f32 %v734_v52, %v508_v51 }
  0xca   : > { %v514_v54 = vmax.f32 %v513_v53, 0.0 }
  0xcc   : > { %v515_v55 = vpack.c.bf16 %v514_v54, %v514_v54 }
  0xce   : > { %516 = vst [vmem:[%s838_s3] sm:$0x1] %v515_v55 }
  0xcf PF: > { %s13_s12 = sadd.s32 1, %s741_s12  }
  0xd0   : > { %p10_p7 = scmp.ge.s32.totalorder %s13_s12, 6  }
  0xd2   :  { %12 = sbr.rel (!%p10_p7) target bundleno = 1 (0x1), region = 69 }

// kernel: filmed_net_forward.9
= control target key start
LH: loop header
LB: loop body
LE: loop exit
PB: predicated region body
PF: predicated region fallthrough
CT: control target
= control target key end

     0   :  { %11 = vsyncpa [#allocation4], 0  ;;  %s2304_s21 = smov 0   ;;  %s2634_s0 = inlined_call_operand.vmem [shape: bf16[2,64,128], index: 0, kind: input, shape index: {}]   ;;  %s2635_s1 = inlined_call_operand.vmem [shape: bf16[128,128], index: 1, kind: input, shape index: {}]   ;;  %s2636_s2 = inlined_call_operand.vmem [shape: f32[64,128], index: 2, kind: input, shape index: {}]   ;;  %s2637_s3 = inlined_call_operand.hbm [shape: bf16[9,128,128], index: 3, kind: input, shape index: {}]   ;;  %s2638_s4 = inlined_call_operand.vmem [shape: f32[2,1,128], index: 4, kind: input, shape index: {}]   ;;  %s2639_s5 = inlined_call_operand.vmem [shape: f32[2,1,128], index: 5, kind: input, shape index: {}]   ;;  %s2640_s6 = inlined_call_operand.vmem [shape: bf16[2,64,128], index: 6, kind: output, shape index: {}]  }
   0x1 LB: > { %s206_s24 = sshll.u32 %s2637_s3, 4  ;;  %s1653_s25 = sadd.s32 4294967295, %s2263_s21   ;;  %s2263_s21 = sphi %s2304_s21, %s17_s21   ;;  %s207_s24 = int_to_ptr.hbm [resolvable:$true] %s206_s24 }
   0x2   : > { %p1655_p0 = scmp.ge.s32.totalorder %s2263_s21, 1  ;;  %p189_p1 = scmp.lt.s32.totalorder %s2263_s21, 3 }
   0x3   : > { %p2207_p2 = scmp.eq.s32.totalorder %s1653_s25, 0  ;;  %s2265_s26 = smov [#allocation3]  }
   0x4   : > { %p190_p3 = pnand %p1655_p0, %p189_p1  ;;  %s208_s27 = sshll.u32 %s2265_s26, 4  ;;  %s209_s27 = int_to_ptr.vmem [resolvable:$true] %s208_s27 }
   0x5   : > { %s2266_s28 = smov 64   ;;  %s2267_s29 = smov 4  }
   0x6   : > { %p2203_p4 = pneg %p190_p3  ;;  %244 = sbr.rel (%p190_p3) target bundleno = 501 (0x1f5), region = 44 }
   0x8   : > { %p2204_p5 = pnand %p2207_p2, %p2203_p4 }
   0xa   : > { %2206 = dma.hbm_to_vmem [thread:$0]  (!%p2204_p5), %s207_s24, 9216, %s209_s27, [#allocation4], %s2266_s28, %s2266_s28, %s2267_s29  }
   0xb   : > { %2258 = dma.done.wait (%p2207_p2), [#allocation4], 9216  }
   0xc   : > { %2260 = vsyncadd (%p2207_p2), [#allocation4], 4294958080  ;;  %p281_p6 = scmp.lt.s32.totalorder %s1653_s25, 1  ;;  %v2087_v0 = vld [vmem:[%s2635_s1 + $0x38] sm:$0xff]  ;;  %v2086_v1 = vld [vmem:[%s2635_s1 + $0x30] sm:$0xff]  ;;  %v450_v42 = vlaneseq  ;;  %v2268_v52 = vmov 0.0  }
   0xd   : > { %401 = vmatpush.bf16.msra.mxu0 %v2087_v0  ;;  %2183 = vmatpush.bf16.msra.mxu2 %v2087_v0  ;;  %v2085_v2 = vld [vmem:[%s2635_s1 + $0x28] sm:$0xff]  ;;  %v2084_v3 = vld [vmem:[%s2635_s1 + $0x20] sm:$0xff]  ;;  %v2083_v4 = vld [vmem:[%s2635_s1 + $0x18] sm:$0xff]  ;;  %v2369_v53 = vrot.slane %v2268_v52, 7 }
   0xe   : > { %s2646_s25 = smov (!%p281_p6, %s1653_s25), 1  ;;  %v2103_v5 = vld [vmem:[#allocation3 + $0x78] sm:$0xff]  ;;  %v2082_v6 = vld [vmem:[%s2635_s1 + $0x10] sm:$0xff]  ;;  %v2081_v8 = vld [vmem:[%s2635_s1 + $0x8] sm:$0xff]  ;;  %v2364_v46 = vshrl.u32 %v450_v42, 7 }
   0xf   : > { %s288_s12 = scalar_lea.vmem %s2638_s4, %s2646_s25  ;;  %s291_s15 = scalar_lea.vmem %s2639_s5, %s2646_s25  ;;  %567 = vmatpush.bf16.msra.mxu1 %v2103_v5  ;;  %v2102_v7 = vld [vmem:[#allocation3 + $0x70] sm:$0xff]  ;;  %2191 = vmatpush.bf16.msra.mxu3 %v2103_v5  ;;  %v2101_v9 = vld [vmem:[#allocation3 + $0x68] sm:$0xff]  ;;  %v2080_v10 = vld [vmem:[%s2635_s1] sm:$0xff] }
  0x10   : > { %s2074_s28 = sshll.u32 %s2646_s25, 5  ;;  %v2095_v11 = vld [vmem:[#allocation3 + $0x38] sm:$0xff]  ;;  %v2100_v13 = vld [vmem:[#allocation3 + $0x60] sm:$0xff]  ;;  %v2094_v16 = vld [vmem:[#allocation3 + $0x30] sm:$0xff]  ;;  %vm452_vm0 = vcmp.ge.s32.totalorder %v2364_v46, 1  ;;  %vm453_vm2 = vcmp.lt.s32.totalorder %v2364_v46, 7 }
  0x11   : > { %402 = vmatpush.bf16.msra.mxu0 %v2086_v1  ;;  %2184 = vmatpush.bf16.msra.mxu2 %v2086_v1  ;;  %s2355_s9 = scalar_lea.vmem %s2634_s0, %s2074_s28  ;;  %v2119_v12 = vld [vmem:[#allocation3 + $0xf8] sm:$0xff]  ;;  %v2118_v17 = vld [vmem:[#allocation3 + $0xf0] sm:$0xff]  ;;  %v2093_v19 = vld [vmem:[#allocation3 + $0x28] sm:$0xff]  ;;  %s2595_s11 = scalar_lea.vmem %s2640_s6, %s2074_s28 }
  0x12   : > { %v2076_v14 = vld [vmem:[%s2355_s9] sm:$0xff]  ;;  %v2078_v15 = vld [vmem:[%s2355_s9 + $0x10] sm:$0xff]  ;;  %v2099_v18 = vld [vmem:[#allocation3 + $0x58] sm:$0xff] }
  0x13   : > { %568 = vmatpush.bf16.msra.mxu1 %v2102_v7  ;;  %2192 = vmatpush.bf16.msra.mxu3 %v2102_v7  ;;  %v2117_v20 = vld [vmem:[#allocation3 + $0xe8] sm:$0xff]  ;;  %v2098_v21 = vld [vmem:[#allocation3 + $0x50] sm:$0xff]  ;;  %v2092_v22 = vld [vmem:[#allocation3 + $0x20] sm:$0xff] }
  0x14   : > { %v2116_v23 = vld [vmem:[#allocation3 + $0xe0] sm:$0xff]  ;;  %v2091_v24 = vld [vmem:[#allocation3 + $0x18] sm:$0xff]  ;;  %v2077_v25 = vld [vmem:[%s2355_s9 + $0x8] sm:$0xff] }
  0x15   : > { %403 = vmatpush.bf16.msra.mxu0 %v2085_v2  ;;  %2185 = vmatpush.bf16.msra.mxu2 %v2085_v2  ;;  %v2079_v26 = vld [vmem:[%s2355_s9 + $0x18] sm:$0xff]  ;;  %v2090_v27 = vld [vmem:[#allocation3 + $0x10] sm:$0xff]  ;;  %v2097_v28 = vld [vmem:[#allocation3 + $0x48] sm:$0xff] }
  0x16   : > { %v2089_v29 = vld [vmem:[#allocation3 + $0x8] sm:$0xff]  ;;  %v2115_v30 = vld [vmem:[#allocation3 + $0xd8] sm:$0xff]  ;;  %v2096_v31 = vld [vmem:[#allocation3 + $0x40] sm:$0xff] }
  0x17   : > { %569 = vmatpush.bf16.msra.mxu1 %v2101_v9  ;;  %2193 = vmatpush.bf16.msra.mxu3 %v2101_v9  ;;  %v2088_v32 = vld [vmem:[#allocation3] sm:$0xff]  ;;  %v2114_v33 = vld [vmem:[#allocation3 + $0xd0] sm:$0xff]  ;;  %v2127_v34 = vld [vmem:[#allocation3 + $0x138] sm:$0xff] }
  0x18   : > { %v2113_v35 = vld [vmem:[#allocation3 + $0xc8] sm:$0xff]  ;;  %v2126_v36 = vld [vmem:[#allocation3 + $0x130] sm:$0xff]  ;;  %v2112_v37 = vld [vmem:[#allocation3 + $0xc0] sm:$0xff] }
  0x19   : > { %404 = vmatpush.bf16.msra.mxu0 %v2084_v3  ;;  %2186 = vmatpush.bf16.msra.mxu2 %v2084_v3  ;;  %v2125_v38 = vld [vmem:[#allocation3 + $0x128] sm:$0xff]  ;;  %v2124_v39 = vld [vmem:[#allocation3 + $0x120] sm:$0xff]  ;;  %v2123_v40 = vld [vmem:[#allocation3 + $0x118] sm:$0xff] }
  0x1a   : > { %v2122_v41 = vld [vmem:[#allocation3 + $0x110] sm:$0xff]  ;;  %v321_v43 = vld [vmem:[%s2636_s2] sm:$0xff]  ;;  %v2111_v44 = vld [vmem:[#allocation3 + $0xb8] sm:$0xff] }
  0x1b   : > { %570 = vmatpush.bf16.msra.mxu1 %v2100_v13  ;;  %2194 = vmatpush.bf16.msra.mxu3 %v2100_v13  ;;  %v2121_v45 = vld [vmem:[#allocation3 + $0x108] sm:$0xff]  ;;  %v2110_v49 = vld [vmem:[#allocation3 + $0xb0] sm:$0xff]  ;;  %v2120_v50 = vld [vmem:[#allocation3 + $0x100] sm:$0xff] }
  0x1c   : > { %v2109_v54 = vld [vmem:[#allocation3 + $0xa8] sm:$0xff]  ;;  %vm2378_vm1 = vmpackc.low %vm452_vm0, %vm452_vm0  ;;  %v2135_v62 = vld [vmem:[#allocation3 + $0x178] sm:$0xff] }
  0x1d   : > { %405 = vmatpush.bf16.msra.mxu0 %v2083_v4  ;;  %2187 = vmatpush.bf16.msra.mxu2 %v2083_v4  ;;  %v322_v57 = vld [vmem:[%s2636_s2 + $0x8] sm:$0xff]  ;;  %v2108_v0 = vld [vmem:[#allocation3 + $0xa0] sm:$0xff]  ;;  %v2134_v1 = vld [vmem:[#allocation3 + $0x170] sm:$0xff] }
  0x1e   : > { %v323_v4 = vld [vmem:[%s2636_s2 + $0x10] sm:$0xff]  ;;  %v2133_v9 = vld [vmem:[#allocation3 + $0x168] sm:$0xff]  ;;  %v325_v13 = vld [vmem:[%s2636_s2 + $0x20] sm:$0xff] }
  0x1f   : > { %571 = vmatpush.bf16.msra.mxu1 %v2099_v18  ;;  %2195 = vmatpush.bf16.msra.mxu3 %v2099_v18  ;;  %v2147_v42 = vld [vmem:[#allocation3 + $0x1d8] sm:$0xff]  ;;  %vm2475_vm3 = vmpackc.low %vm453_vm2, %vm453_vm2  ;;  %v2138_v46 = vld [vmem:[#allocation3 + $0x190] sm:$0xff] }
  0x21   : > { %406 = vmatpush.bf16.msra.mxu0 %v2082_v6  ;;  %2188 = vmatpush.bf16.msra.mxu2 %v2082_v6  ;;  %v2107_v6 = vld [vmem:[#allocation3 + $0x98] sm:$0xff] }
  0x23   : > { %572 = vmatpush.bf16.msra.mxu1 %v2098_v21  ;;  %2196 = vmatpush.bf16.msra.mxu3 %v2098_v21  ;;  %v324_v21 = vld [vmem:[%s2636_s2 + $0x18] sm:$0xff] }
  0x25   : > { %407 = vmatpush.bf16.msra.mxu0 %v2081_v8  ;;  %2189 = vmatpush.bf16.msra.mxu2 %v2081_v8 }
  0x27   : > { %573 = vmatpush.bf16.msra.mxu1 %v2097_v28  ;;  %2197 = vmatpush.bf16.msra.mxu3 %v2097_v28 }
  0x29   : > { %408 = vmatpush.bf16.msra.mxu0 %v2080_v10  ;;  %2190 = vmatpush.bf16.msra.mxu2 %v2080_v10  ;;  %v2151_v10 = vld [vmem:[#allocation3 + $0x1f8] sm:$0xff] }
  0x2b   : > { %574 = vmatpush.bf16.msra.mxu1 %v2096_v31  ;;  %2198 = vmatpush.bf16.msra.mxu3 %v2096_v31  ;;  %v2148_v31 = vld [vmem:[#allocation3 + $0x1e0] sm:$0xff] }
  0x2c   : > { %409 = vmatmul.bf16.vlgmr.msra.gmra.mxu0 %v2076_v14  ;;  %419 = vmatmul.bf16.vlgmr.msra.gmra.mxu2 %v2078_v15  ;;  %v2132_v14 = vld [vmem:[#allocation3 + $0x160] sm:$0xff]  ;;  %v2150_v15 = vld [vmem:[#allocation3 + $0x1f0] sm:$0xff] }
  0x2d   : > { %644 = vmatpush.bf16.msrb.mxu2 %v2095_v11  ;;  %888 = vmatpush.bf16.msrb.mxu0 %v2119_v12  ;;  %v2106_v12 = vld [vmem:[#allocation3 + $0x90] sm:$0xff] }
  0x2f   : > { %994 = vmatpush.bf16.msrb.mxu1 %v2127_v34  ;;  %758 = vmatpush.bf16.msrb.mxu3 %v2111_v44  ;;  %v327_v44 = vld [vmem:[%s2636_s2 + $0x30] sm:$0xff] }
  0x31   : > { %645 = vmatpush.bf16.msrb.mxu2 %v2094_v16  ;;  %889 = vmatpush.bf16.msrb.mxu0 %v2118_v17  ;;  %v2105_v17 = vld [vmem:[#allocation3 + $0x88] sm:$0xff] }
  0x33   : > { %995 = vmatpush.bf16.msrb.mxu1 %v2126_v36  ;;  %759 = vmatpush.bf16.msrb.mxu3 %v2110_v49 }
  0x35   : > { %646 = vmatpush.bf16.msrb.mxu2 %v2093_v19  ;;  %890 = vmatpush.bf16.msrb.mxu0 %v2117_v20 }
  0x37   : > { %996 = vmatpush.bf16.msrb.mxu1 %v2125_v38  ;;  %760 = vmatpush.bf16.msrb.mxu3 %v2109_v54 }
  0x39   : > { %647 = vmatpush.bf16.msrb.mxu2 %v2092_v22  ;;  %891 = vmatpush.bf16.msrb.mxu0 %v2116_v23 }
  0x3b   : > { %997 = vmatpush.bf16.msrb.mxu1 %v2124_v39  ;;  %761 = vmatpush.bf16.msrb.mxu3 %v2108_v0  ;;  %v2143_v39 = vld [vmem:[#allocation3 + $0x1b8] sm:$0xff]  ;;  %v2144_v0 = vld [vmem:[#allocation3 + $0x1c0] sm:$0xff] }
  0x3c   : > { %414 = vmatmul.bf16.gmra.mxu0 %v2077_v25  ;;  %424 = vmatmul.bf16.gmra.mxu2 %v2079_v26  ;;  %v2131_v25 = vld [vmem:[#allocation3 + $0x158] sm:$0xff]  ;;  %v2149_v26 = vld [vmem:[#allocation3 + $0x1e8] sm:$0xff] }
  0x3d   : > { %648 = vmatpush.bf16.msrb.mxu2 %v2091_v24  ;;  %892 = vmatpush.bf16.msrb.mxu0 %v2115_v30  ;;  %v2130_v30 = vld [vmem:[#allocation3 + $0x150] sm:$0xff] }
  0x3f   : > { %998 = vmatpush.bf16.msrb.mxu1 %v2123_v40  ;;  %762 = vmatpush.bf16.msrb.mxu3 %v2107_v6  ;;  %v326_v40 = vld [vmem:[%s2636_s2 + $0x28] sm:$0xff] }
  0x40   : > { %v2141_v6 = vld [vmem:[#allocation3 + $0x1a8] sm:$0xff] }
  0x41   : > { %649 = vmatpush.bf16.msrb.mxu2 %v2090_v27  ;;  %893 = vmatpush.bf16.msrb.mxu0 %v2114_v33  ;;  %v328_v33 = vld [vmem:[%s2636_s2 + $0x38] sm:$0xff] }
  0x43   : > { %999 = vmatpush.bf16.msrb.mxu1 %v2122_v41  ;;  %763 = vmatpush.bf16.msrb.mxu3 %v2106_v12  ;;  %v2129_v41 = vld [vmem:[#allocation3 + $0x148] sm:$0xff]  ;;  %v2140_v12 = vld [vmem:[#allocation3 + $0x1a0] sm:$0xff] }
  0x45   : > { %650 = vmatpush.bf16.msrb.mxu2 %v2089_v29  ;;  %894 = vmatpush.bf16.msrb.mxu0 %v2113_v35  ;;  %v2104_v29 = vld [vmem:[#allocation3 + $0x80] sm:$0xff] }
  0x47   : > { %1000 = vmatpush.bf16.msrb.mxu1 %v2121_v45  ;;  %764 = vmatpush.bf16.msrb.mxu3 %v2105_v17  ;;  %v2128_v45 = vld [vmem:[#allocation3 + $0x140] sm:$0xff] }
  0x49   : > { %651 = vmatpush.bf16.msrb.mxu2 %v2088_v32  ;;  %895 = vmatpush.bf16.msrb.mxu0 %v2112_v37 }
  0x4b   : > { %1001 = vmatpush.bf16.msrb.mxu1 %v2120_v50  ;;  %765 = vmatpush.bf16.msrb.mxu3 %v2104_v29 }
  0x4d   : > { %1116 = vmatpush.bf16.msra.mxu2 %v2135_v62  ;;  %1353 = vmatpush.bf16.msra.mxu0 %v2151_v10  ;;  %v2145_v62 = vld [vmem:[#allocation3 + $0x1c8] sm:$0xff]  ;;  %v2155_v10 = vld [vmem:[#allocation3 + $0x218] sm:$0xff] }
  0x51   : > { %1117 = vmatpush.bf16.msra.mxu2 %v2134_v1  ;;  %1354 = vmatpush.bf16.msra.mxu0 %v2150_v15  ;;  %v2154_v15 = vld [vmem:[#allocation3 + $0x210] sm:$0xff] }
  0x55   : > { %1118 = vmatpush.bf16.msra.mxu2 %v2133_v9  ;;  %1355 = vmatpush.bf16.msra.mxu0 %v2149_v26 }
  0x59   : > { %1119 = vmatpush.bf16.msra.mxu2 %v2132_v14  ;;  %1356 = vmatpush.bf16.msra.mxu0 %v2148_v31  ;;  %v2136_v31 = vld [vmem:[#allocation3 + $0x180] sm:$0xff] }
  0x5d   : > { %1120 = vmatpush.bf16.msra.mxu2 %v2131_v25  ;;  %1357 = vmatpush.bf16.msra.mxu0 %v2147_v42 }
  0x61   : > { %1121 = vmatpush.bf16.msra.mxu2 %v2130_v30  ;;  %v2137_v30 = vld [vmem:[#allocation3 + $0x188] sm:$0xff] }
  0x65   : > { %1122 = vmatpush.bf16.msra.mxu2 %v2129_v41 }
  0x69   : > { %1123 = vmatpush.bf16.msra.mxu2 %v2128_v45 }
  0xa9   : > { %v410_v47 = vpop.f32.mrf.mxu0 }
  0xaa   : > { %v411_v48 = vadd.f32 %v410_v47, %v321_v43  ;;  %v2146_v47 = vld [vmem:[#allocation3 + $0x1d0] sm:$0xff] }
  0xab   : > { %1358 = vmatpush.bf16.msra.mxu0 %v2146_v47 }
  0xac   : > { %v2366_v51 = vmax.f32 %v411_v48, 0.0 }
  0xae   : > { %v498_v55 = vpack.c.bf16 %v2366_v51, %v2268_v52  ;;  %v463_v56 = vrot.slane %v2366_v51, 7  ;;  %v674_v14 = vrot.slane %v2366_v51, 1 }
  0xaf   : > { %v420_v58 = vpop.f32.mrf.mxu2  ;;  %1359 = vmatpush.bf16.msra.mxu0 %v2145_v62 }
  0xb0   : > { %575 = vmatmul.bf16.vlgmr.msra.gmra.mxu1 %v498_v55  ;;  %v1777_v60 = vpack.c.bf16 %v463_v56, %v2369_v53  ;;  %v421_v18 = vadd.f32 %v420_v58, %v325_v13  ;;  %v2468_v13 = vrot.slane %v2268_v52, 1 }
  0xb1   : > { %v412_v61 = vpop.f32.mrf.mxu0 }
  0xb2   : > { %v413_v63 = vadd.f32 %v412_v61, %v322_v57  ;;  %1778 = vmatmul.msk.bf16.vlgmr.msrb.gmra.mxu2 %vm2378_vm1, %v1777_v60  ;;  %v2411_v27 = vmax.f32 %v421_v18, 0.0  ;;  %v2159_v57 = vld [vmem:[#allocation3 + $0x238] sm:$0xff]  ;;  %v2142_v61 = vld [vmem:[#allocation3 + $0x1b0] sm:$0xff]  ;;  %v1821_v18 = vpack.c.bf16 %v674_v14, %v2468_v13 }
  0xb3   : > { %1475 = vmatpush.bf16.msra.mxu1 %v2159_v57  ;;  %1360 = vmatpush.bf16.msra.mxu0 %v2144_v0 }
  0xb4   : > { %v2385_v2 = vmax.f32 %v413_v63, 0.0  ;;  %v467_v49 = vrot.slane %v2411_v27, 7 }
  0xb6   : > { %v464_v3 = vrot.slane %v2385_v2, 7  ;;  %v925_v55 = vpack.c.bf16 %v2385_v2, %v2366_v51 }
  0xb7   : > { %v2391_v5 = vpop.f32.mrf.mxu2 }
  0xb8   : > { %v1865_v7 = vpack.c.bf16 %v464_v3, %v463_v56  ;;  %v423_v48 = vadd.f32 %v2391_v5, %v326_v40 }
  0xb9   : > { %v415_v8 = vpop.f32.mrf.mxu0 }
  0xba   : > { %v416_v11 = vadd.f32 %v415_v8, %v323_v4  ;;  %1866 = vmatmul.msk.bf16.vlgmr.msrb.gmra.mxu0 %vm2378_vm1, %v1865_v7  ;;  %v2445_v58 = vmax.f32 %v423_v48, 0.0  ;;  %v2157_v4 = vld [vmem:[#allocation3 + $0x228] sm:$0xff]  ;;  %v2156_v7 = vld [vmem:[#allocation3 + $0x220] sm:$0xff] }
  0xbc   : > { %v2398_v16 = vmax.f32 %v416_v11, 0.0  ;;  %v468_v1 = vrot.slane %v2445_v58, 7  ;;  %v927_v25 = vpack.c.bf16 %v2445_v58, %v2411_v27 }
  0xbe   : > { %v2402_v19 = vpack.c.bf16 %v2398_v16, %v2385_v2  ;;  %v465_v20 = vrot.slane %v2398_v16, 7  ;;  %v1871_v5 = vpack.c.bf16 %v468_v1, %v467_v49 }
  0xbf   : > { %v425_v22 = vpop.f32.mrf.mxu2 }
  0xc0   : > { %580 = vmatmul.bf16.gmra.mxu1 %v2402_v19  ;;  %v2409_v23 = vpack.c.bf16 %v465_v20, %v464_v3  ;;  %v426_v54 = vadd.f32 %v425_v22, %v327_v44  ;;  %v2152_v22 = vld [vmem:[#allocation3 + $0x200] sm:$0xff] }
  0xc1   : > { %v417_v24 = vpop.f32.mrf.mxu0 }
  0xc2   : > { %v418_v28 = vadd.f32 %v417_v24, %v324_v21  ;;  %1781 = vmatmul.msk.bf16.gmra.mxu2 %vm2378_vm1, %v2409_v23  ;;  %v2449_v63 = vmax.f32 %v426_v54, 0.0  ;;  %v2153_v21 = vld [vmem:[#allocation3 + $0x208] sm:$0xff]  ;;  %v675_v24 = vrot.slane %v2385_v2, 1 }
  0xc4   : > { %v2416_v32 = vmax.f32 %v418_v28, 0.0  ;;  %v2457_v3 = vpack.c.bf16 %v2449_v63, %v2445_v58  ;;  %v469_v8 = vrot.slane %v2449_v63, 7  ;;  %v1941_v26 = vpack.c.bf16 %v675_v24, %v674_v14 }
  0xc5   : > { %v676_v28 = vrot.slane %v2398_v16, 1  ;;  %v680_v40 = vrot.slane %v2449_v63, 1 }
  0xc6   : > { %v2423_v34 = vpack.c.bf16 %v2411_v27, %v2416_v32  ;;  %v466_v35 = vrot.slane %v2416_v32, 7  ;;  %v926_v9 = vpack.c.bf16 %v2416_v32, %v2398_v16  ;;  %v2465_v11 = vpack.c.bf16 %v469_v8, %v468_v1 }
  0xc7   : > { %v427_v36 = vpop.f32.mrf.mxu2  ;;  %v1824_v29 = vpack.c.bf16 %v676_v28, %v675_v24 }
  0xc8   : > { %585 = vmatmul.bf16.vlgmr.msra.gmra.mxu3 %v2423_v34  ;;  %v1868_v37 = vpack.c.bf16 %v466_v35, %v465_v20  ;;  %v428_v38 = vadd.f32 %v427_v36, %v328_v33  ;;  %v2447_v60 = vpack.c.bf16 %v467_v49, %v466_v35  ;;  %v2139_v20 = vld [vmem:[#allocation3 + $0x198] sm:$0xff]  ;;  %v677_v33 = vrot.slane %v2416_v32, 1 }
  0xc9   : > { %1247 = vmatpush.bf16.msra.mxu3 %v2143_v39 }
  0xca   : > { %1869 = vmatmul.msk.bf16.gmra.mxu0 %vm2378_vm1, %v1868_v37  ;;  %v2432_v43 = vmax.f32 %v428_v38, 0.0  ;;  %v1944_v36 = vpack.c.bf16 %v677_v33, %v676_v28  ;;  %v678_v37 = vrot.slane %v2411_v27, 1 }
  0xcc   : > { %v810_v50 = vrot.slane %v2432_v43, 7  ;;  %v928_v35 = vpack.c.bf16 %v2432_v43, %v2449_v63  ;;  %v1827_v38 = vpack.c.bf16 %v678_v37, %v677_v33  ;;  %v1038_v42 = vrot.slane %v2432_v43, 1 }
  0xcd   : > { %1248 = vmatpush.bf16.msra.mxu3 %v2142_v61  ;;  %v1287_v44 = vpack.c.bf16 0.0, %v2432_v43 }
  0xce   : > { %v2443_v56 = vpack.c.bf16 %v2369_v53, %v810_v50  ;;  %v2158_v53 = vld [vmem:[#allocation3 + $0x230] sm:$0xff]  ;;  %v1874_v52 = vpack.c.bf16 %v810_v50, %v469_v8 }
  0xcf   : > { %1476 = vmatpush.bf16.msra.mxu1 %v2158_v53 }
  0xd0   : > { %1002 = vmatmul.bf16.vlgmr.msrb.gmra.mxu1 %v925_v55  ;;  %v2070_v55 = vpack.c.bf16 %v2468_v13, %v1038_v42 }
  0xd1   : > { %1249 = vmatpush.bf16.msra.mxu3 %v2141_v6 }
  0xd2   : > { %1784 = vmatmul.msk.bf16.gmra.mxu2 %vm2378_vm1, %v2447_v60 }
  0xd3   : > { %1477 = vmatpush.bf16.msra.mxu1 %v2157_v4 }
  0xd5   : > { %1250 = vmatpush.bf16.msra.mxu3 %v2140_v12 }
  0xd7   : > { %1478 = vmatpush.bf16.msra.mxu1 %v2156_v7 }
  0xd8   : > { %590 = vmatmul.bf16.gmra.mxu3 %v2457_v3 }
  0xd9   : > { %1251 = vmatpush.bf16.msra.mxu3 %v2139_v20 }
  0xda   : > { %1872 = vmatmul.msk.bf16.gmra.mxu0 %vm2378_vm1, %v1871_v5 }
  0xdb   : > { %1479 = vmatpush.bf16.msra.mxu1 %v2155_v10 }
  0xdd   : > { %1252 = vmatpush.bf16.msra.mxu3 %v2138_v46 }
  0xdf   : > { %1480 = vmatpush.bf16.msra.mxu1 %v2154_v15 }
  0xe0   : > { %1007 = vmatmul.bf16.gmra.mxu1 %v926_v9 }
  0xe1   : > { %1253 = vmatpush.bf16.msra.mxu3 %v2137_v30 }
  0xe2   : > { %1787 = vmatmul.msk.bf16.gmra.mxu2 %vm2378_vm1, %v2465_v11 }
  0xe3   : > { %1481 = vmatpush.bf16.msra.mxu1 %v2153_v21 }
  0xe5   : > { %1254 = vmatpush.bf16.msra.mxu3 %v2136_v31 }
  0xe7   : > { %1482 = vmatpush.bf16.msra.mxu1 %v2152_v22 }
  0xe8   : > { %1822 = vmatmul.msk.bf16.vlgmr.msrb.gmra.mxu3 %vm2475_vm3, %v1821_v18 }
  0xea   : > { %1875 = vmatmul.msk.bf16.gmra.mxu0 %vm2378_vm1, %v1874_v52 }
  0xf0   : > { %1012 = vmatmul.bf16.gmra.mxu1 %v927_v25 }
  0xf2   : > { %1942 = vmatmul.msk.bf16.vlgmr.msra.gmra.mxu2 %vm2475_vm3, %v1941_v26 }
  0xf8   : > { %1825 = vmatmul.msk.bf16.gmra.mxu3 %vm2475_vm3, %v1824_v29 }
  0xfa   : > { %1361 = vmatmul.bf16.vlgmr.msra.gmra.mxu0 %v2402_v19  ;;  %v679_v19 = vrot.slane %v2445_v58, 1 }
  0xfc   : > { %v1947_v39 = vpack.c.bf16 %v679_v19, %v678_v37  ;;  %v1830_v41 = vpack.c.bf16 %v680_v40, %v679_v19 }
 0x100   : > { %1017 = vmatmul.bf16.gmra.mxu1 %v928_v35 }
 0x102   : > { %1945 = vmatmul.msk.bf16.gmra.mxu2 %vm2475_vm3, %v1944_v36 }
 0x108   : > { %1828 = vmatmul.msk.bf16.gmra.mxu3 %vm2475_vm3, %v1827_v38 }
 0x10a   : > { %1366 = vmatmul.bf16.gmra.mxu0 %v2423_v34  ;;  %v1950_v34 = vpack.c.bf16 %v1038_v42, %v680_v40 }
 0x110   : > { %2062 = vmatmul.msk.bf16.vlgmr.msra.gmra.mxu1 %vm2475_vm3, %v1824_v29 }
 0x112   : > { %1948 = vmatmul.msk.bf16.gmra.mxu2 %vm2475_vm3, %v1947_v39 }
 0x118   : > { %1831 = vmatmul.msk.bf16.gmra.mxu3 %vm2475_vm3, %v1830_v41 }
 0x11a   : > { %1371 = vmatmul.bf16.gmra.mxu0 %v2457_v3 }
 0x120   : > { %2065 = vmatmul.msk.bf16.gmra.mxu1 %vm2475_vm3, %v1827_v38 }
 0x122   : > { %1951 = vmatmul.msk.bf16.gmra.mxu2 %vm2475_vm3, %v1950_v34 }
 0x128   : > { %1986 = vmatmul.msk.bf16.vlgmr.msra.gmra.mxu3 %vm2378_vm1, %v2409_v23 }
 0x12a   : > { %1376 = vmatmul.bf16.gmra.mxu0 %v1287_v44 }
 0x12d   : > { %v576_v45 = vpop.f32.mrf.mxu1 }
 0x130   : > { %2068 = vmatmul.msk.bf16.gmra.mxu1 %vm2475_vm3, %v1830_v41 }
 0x135   : > { %v2522_v47 = vpop.f32.mrf.mxu1  ;;  %v653_v48 = vpop.f32.mrf.mxu2 }
 0x136   : > { %v654_v49 = vadd.f32 %v653_v48, %v576_v45 }
 0x137   : > { %v897_v0 = vpop.f32.mrf.mxu0 }
 0x138   : > { %1989 = vmatmul.msk.bf16.gmra.mxu3 %vm2378_vm1, %v2447_v60 }
 0x13d   : > { %v581_v50 = vpop.f32.mrf.mxu1  ;;  %v655_v54 = vpop.f32.mrf.mxu2 }
 0x13f   : > { %v899_v5 = vpop.f32.mrf.mxu0 }
 0x140   : > { %2071 = vmatmul.msk.bf16.gmra.mxu1 %vm2475_vm3, %v2070_v55 }
 0x145   : > { %v658_v23 = vpop.f32.mrf.mxu2  ;;  %v2530_v61 = vpop.f32.mrf.mxu1 }
 0x146   : > { %v659_v57 = vadd.f32 %v658_v23, %v581_v50  ;;  %v656_v23 = vadd.f32 %v655_v54, %v2522_v47  ;;  %v2579_v47 = vld [vmem:[%s291_s15] ss:$0 sm:$0xff] }
 0x147   : > { %v902_v9 = vpop.f32.mrf.mxu0 }
 0x148   : > { %1992 = vmatmul.msk.bf16.gmra.mxu3 %vm2378_vm1, %v2465_v11 }
 0x14b   : > { %v586_v62 = vpop.f32.mrf.mxu3 }
 0x14d   : > { %v2535_v53 = vpop.f32.mrf.mxu2  ;;  %v1003_v60 = vpop.f32.mrf.mxu1 }
 0x14f   : > { %v904_v17 = vpop.f32.mrf.mxu0 }
 0x153   : > { %v2537_v1 = vpop.f32.mrf.mxu3 }
 0x155   : > { %v663_v3 = vpop.f32.mrf.mxu2  ;;  %v1005_v6 = vpop.f32.mrf.mxu1 }
 0x156   : > { %v664_v4 = vadd.f32 %v663_v3, %v586_v62 }
 0x158   : > { %1995 = vmatmul.msk.bf16.gmra.mxu3 %vm2378_vm1, %v2443_v56  ;;  %v907_v56 = vpop.f32.mrf.mxu0 }
 0x15b   : > { %v591_v7 = vpop.f32.mrf.mxu3 }
 0x15d   : > { %v2542_v8 = vpop.f32.mrf.mxu2  ;;  %v1008_v11 = vpop.f32.mrf.mxu1 }
 0x160   : > { %v2548_v26 = vpop.f32.mrf.mxu0 }
 0x163   : > { %v2544_v10 = vpop.f32.mrf.mxu3 }
 0x165   : > { %v668_v12 = vpop.f32.mrf.mxu2  ;;  %v2546_v52 = vpop.f32.mrf.mxu1 }
 0x166   : > { %v669_v13 = vadd.f32 %v668_v12, %v591_v7 }
 0x168   : > { %v912_v30 = vpop.f32.mrf.mxu0 }
 0x16b   : > { %v767_v14 = vpop.f32.mrf.mxu3 }
 0x16c   : > { %v787_v15 = vadd.f32 %v767_v14, %v654_v49 }
 0x16d   : > { %v1013_v21 = vpop.f32.mrf.mxu1  ;;  %v2552_v37 = vpop.f32.mrf.mxu2 }
 0x16e   : > { %v917_v18 = vadd.f32 %v897_v0, %v787_v15 }
 0x170   : > { %v1023_v20 = vadd.f32 %v1003_v60, %v917_v18  ;;  %v2558_v39 = vpop.f32.mrf.mxu0 }
 0x173   : > { %v769_v59 = vpop.f32.mrf.mxu3 }
 0x175   : > { %v2550_v28 = vpop.f32.mrf.mxu1  ;;  %v1125_v41 = vpop.f32.mrf.mxu2 }
 0x176   : > { %v1145_v0 = vadd.f32 %v1125_v41, %v1023_v20 }
 0x178   : > { %v1362_v45 = vpop.f32.mrf.mxu0 }
 0x17b   : > { %v772_v46 = vpop.f32.mrf.mxu3 }
 0x17c   : > { %v789_v22 = vadd.f32 %v772_v46, %v659_v57  ;;  %v788_v57 = vadd.f32 %v769_v59, %v656_v23 }
 0x17d   : > { %v1018_v35 = vpop.f32.mrf.mxu1  ;;  %v1127_v50 = vpop.f32.mrf.mxu2 }
 0x17e   : > { %v919_v24 = vadd.f32 %v902_v9, %v789_v22 }
 0x180   : > { %v1025_v25 = vadd.f32 %v1008_v11, %v919_v24  ;;  %v1364_v62 = vpop.f32.mrf.mxu0  ;;  %v2572_v11 = vld [vmem:[%s288_s12] ss:$0 sm:$0xff] }
 0x183   : > { %v774_v29 = vpop.f32.mrf.mxu3 }
 0x185   : > { %v2560_v40 = vpop.f32.mrf.mxu1  ;;  %v1130_v9 = vpop.f32.mrf.mxu2 }
 0x188   : > { %v1367_v15 = vpop.f32.mrf.mxu0 }
 0x18b   : > { %v777_v31 = vpop.f32.mrf.mxu3 }
 0x18c   : > { %v791_v33 = vadd.f32 %v777_v31, %v664_v4  ;;  %v918_v4 = vadd.f32 %v899_v5, %v788_v57  ;;  %v1147_v31 = vadd.f32 %v1130_v9, %v1025_v25 }
 0x18d   : > { %v1484_v49 = vpop.f32.mrf.mxu1  ;;  %v1132_v22 = vpop.f32.mrf.mxu2 }
 0x18e   : > { %v921_v36 = vadd.f32 %v907_v56, %v791_v33  ;;  %v1024_v54 = vadd.f32 %v1005_v6, %v918_v4 }
 0x190   : > { %v2554_v38 = vadd.f32 %v1013_v21, %v921_v36  ;;  %v1146_v14 = vadd.f32 %v1127_v50, %v1024_v54  ;;  %v661_v21 = vadd.f32 %v2535_v53, %v2530_v61 }
 0x192   : > { %v790_v24 = vadd.f32 %v774_v29, %v661_v21 }
 0x193   : > { %v2556_v19 = vpop.f32.mrf.mxu3 }
 0x195   : > { %v1486_v60 = vpop.f32.mrf.mxu1 }
 0x19b   : > { %v782_v42 = vpop.f32.mrf.mxu3 }
 0x19c   : > { %v793_v34 = vadd.f32 %v782_v42, %v669_v13 }
 0x19d   : > { %v1489_v56 = vpop.f32.mrf.mxu1 }
 0x19e   : > { %v923_v44 = vadd.f32 %v912_v30, %v793_v34  ;;  %v1369_v34 = vpop.f32.mrf.mxu0 }
 0x1a0   : > { %v2562_v48 = vadd.f32 %v1018_v35, %v923_v44  ;;  %v920_v35 = vadd.f32 %v904_v17, %v790_v24  ;;  %v1135_v17 = vpop.f32.mrf.mxu2 }
 0x1a1   : > { %v1149_v9 = vadd.f32 %v1135_v17, %v2554_v38 }
 0x1a2   : > { %v1026_v61 = vadd.f32 %v2546_v52, %v920_v35 }
 0x1a3   : > { %v2564_v55 = vpop.f32.mrf.mxu3 }
 0x1a4   : > { %v1148_v25 = vadd.f32 %v1132_v22, %v1026_v61 }
 0x1a8   : > { %v1137_v54 = vpop.f32.mrf.mxu2 }
 0x1ab   : > { %v1256_v3 = vpop.f32.mrf.mxu3 }
 0x1ac   : > { %v1276_v7 = vadd.f32 %v1256_v3, %v1145_v0 }
 0x1ae   : > { %v1382_v12 = vadd.f32 %v1362_v45, %v1276_v7 }
 0x1b0   : > { %v1504_v13 = vadd.f32 %v1484_v49, %v1382_v12  ;;  %v1491_v49 = vpop.f32.mrf.mxu1 }
 0x1b2   : > { %v1516_v5 = vmul.f32 %v2572_v11, %v1504_v13 }
 0x1b3   : > { %v1258_v18 = vpop.f32.mrf.mxu3 }
 0x1b4   : > { %v1528_v20 = vadd.f32 %v2579_v47, %v1516_v5  ;;  %v1277_v59 = vadd.f32 %v1258_v18, %v1146_v14 }
 0x1b6   : > { %v1383_v46 = vadd.f32 %v1364_v62, %v1277_v59  ;;  %v1536_v36 = vmax.f32 %v1528_v20, 0.0 }
 0x1b8   : > { %v1505_v30 = vadd.f32 %v1486_v60, %v1383_v46  ;;  %v1544_v53 = vadd.f32 %v1536_v36, %v2366_v51  ;;  %v1372_v60 = vpop.f32.mrf.mxu0  ;;  %v1494_v7 = vpop.f32.mrf.mxu1 }
 0x1ba   : > { %v1517_v6 = vmul.f32 %v2572_v11, %v1505_v30 }
 0x1bb   : > { %v1261_v33 = vpop.f32.mrf.mxu3 }
 0x1bc   : > { %v1529_v41 = vadd.f32 %v2579_v47, %v1517_v6  ;;  %v1278_v42 = vadd.f32 %v1261_v33, %v1147_v31  ;;  %v1140_v6 = vpop.f32.mrf.mxu2 }
 0x1bd   : > { %v1151_v35 = vadd.f32 %v1140_v6, %v2562_v48 }
 0x1be   : > { %v1537_v44 = vmax.f32 %v1529_v41, 0.0  ;;  %v1384_v45 = vadd.f32 %v1367_v15, %v1278_v42 }
 0x1c0   : > { %v1545_v29 = vadd.f32 %v1537_v44, %v2385_v2  ;;  %v1506_v50 = vadd.f32 %v1489_v56, %v1384_v45  ;;  %v666_v2 = vadd.f32 %v2542_v8, %v2537_v1  ;;  %v1374_v56 = vpop.f32.mrf.mxu0 }
 0x1c2   : > { %v2163_v23 = vpack.c.bf16 %v1545_v29, %v1544_v53  ;;  %v1518_v57 = vmul.f32 %v2572_v11, %v1506_v50  ;;  %v792_v3 = vadd.f32 %v2556_v19, %v666_v2 }
 0x1c3   : > { %v1263_v62 = vpop.f32.mrf.mxu3 }
 0x1c4   : > { %2164 = vst [vmem:[%s2595_s11] sm:$0xff] %v2163_v23   ;;  %v1530_v52 = vadd.f32 %v2579_v47, %v1518_v57  ;;  %v1279_v51 = vadd.f32 %v1263_v62, %v1148_v25  ;;  %v922_v14 = vadd.f32 %v2548_v26, %v792_v3  ;;  %v1496_v26 = vpop.f32.mrf.mxu1 }
 0x1c6   : > { %v1385_v0 = vadd.f32 %v1369_v34, %v1279_v51  ;;  %v1538_v5 = vmax.f32 %v1530_v52, 0.0  ;;  %v1028_v20 = vadd.f32 %v2550_v28, %v922_v14  ;;  %v671_v28 = vadd.f32 %v2552_v37, %v2544_v10  ;;  %v1142_v37 = vpop.f32.mrf.mxu2 }
 0x1c8   : > { %v1507_v4 = vadd.f32 %v1491_v49, %v1385_v0  ;;  %v1546_v19 = vadd.f32 %v1538_v5, %v2398_v16  ;;  %v1150_v21 = vadd.f32 %v1137_v54, %v1028_v20  ;;  %v794_v16 = vadd.f32 %v2564_v55, %v671_v28  ;;  %v1377_v41 = vpop.f32.mrf.mxu0 }
 0x1ca   : > { %v1519_v12 = vmul.f32 %v2572_v11, %v1507_v4  ;;  %v924_v34 = vadd.f32 %v2558_v39, %v794_v16 }
 0x1cb   : > { %v1266_v13 = vpop.f32.mrf.mxu3 }
 0x1cc   : > { %v1531_v15 = vadd.f32 %v2579_v47, %v1519_v12  ;;  %v1280_v18 = vadd.f32 %v1266_v13, %v1149_v9  ;;  %v1499_v61 = vpop.f32.mrf.mxu1  ;;  %v1030_v55 = vadd.f32 %v2560_v40, %v924_v34 }
 0x1ce   : > { %v1539_v1 = vmax.f32 %v1531_v15, 0.0  ;;  %v1386_v8 = vadd.f32 %v1372_v60, %v1280_v18  ;;  %v1152_v17 = vadd.f32 %v1142_v37, %v1030_v55 }
 0x1d0   : > { %v1547_v59 = vadd.f32 %v1539_v1, %v2416_v32  ;;  %v1508_v38 = vadd.f32 %v1494_v7, %v1386_v8  ;;  %v1379_v52 = vpop.f32.mrf.mxu0 }
 0x1d2   : > { %v2168_v46 = vpack.c.bf16 %v1547_v59, %v1546_v19  ;;  %v1520_v22 = vmul.f32 %v2572_v11, %v1508_v38 }
 0x1d3   : > { %v1268_v24 = vpop.f32.mrf.mxu3 }
 0x1d4   : > { %2180 = vst [vmem:[%s2595_s11 + $0x8] sm:$0xff] %v2168_v46   ;;  %v1532_v30 = vadd.f32 %v2579_v47, %v1520_v22  ;;  %v1281_v31 = vadd.f32 %v1268_v24, %v1150_v21  ;;  %v1501_v2 = vpop.f32.mrf.mxu1 }
 0x1d6   : > { %v1387_v33 = vadd.f32 %v1374_v56, %v1281_v31  ;;  %v1540_v44 = vmax.f32 %v1532_v30, 0.0 }
 0x1d8   : > { %v1509_v32 = vadd.f32 %v1496_v26, %v1387_v33  ;;  %v1548_v29 = vadd.f32 %v1540_v44, %v2411_v27 }
 0x1da   : > { %v1521_v36 = vmul.f32 %v2572_v11, %v1509_v32 }
 0x1db   : > { %v1271_v42 = vpop.f32.mrf.mxu3 }
 0x1dc   : > { %v1533_v45 = vadd.f32 %v2579_v47, %v1521_v36  ;;  %v1282_v49 = vadd.f32 %v1271_v42, %v1151_v35 }
 0x1de   : > { %v1541_v53 = vmax.f32 %v1533_v45, 0.0  ;;  %v1388_v10 = vadd.f32 %v1377_v41, %v1282_v49 }
 0x1e0   : > { %v1549_v48 = vadd.f32 %v1541_v53, %v2445_v58  ;;  %v1510_v50 = vadd.f32 %v1499_v61, %v1388_v10 }
 0x1e2   : > { %v2173_v25 = vpack.c.bf16 %v1549_v48, %v1548_v29  ;;  %v1522_v39 = vmul.f32 %v2572_v11, %v1510_v50 }
 0x1e3   : > { %v1273_v23 = vpop.f32.mrf.mxu3 }
 0x1e4   : > { %2181 = vst [vmem:[%s2595_s11 + $0x10] sm:$0xff] %v2173_v25   ;;  %v1534_v57 = vadd.f32 %v2579_v47, %v1522_v39  ;;  %v1283_v62 = vadd.f32 %v1273_v23, %v1152_v17 }
 0x1e6   : > { %v1389_v51 = vadd.f32 %v1379_v52, %v1283_v62  ;;  %v1542_v27 = vmax.f32 %v1534_v57, 0.0 }
 0x1e8   : > { %v1511_v0 = vadd.f32 %v1501_v2, %v1389_v51  ;;  %v1550_v3 = vadd.f32 %v1542_v27, %v2449_v63 }
 0x1ea   : > { %v1523_v40 = vmul.f32 %v2572_v11, %v1511_v0 }
 0x1ec   : > { %v1535_v58 = vadd.f32 %v2579_v47, %v1523_v40 }
 0x1ee   : > { %v1543_v60 = vmax.f32 %v1535_v58, 0.0 }
 0x1f0   : > { %v1551_v4 = vadd.f32 %v1543_v60, %v2432_v43 }
 0x1f2   : > { %v2178_v7 = vpack.c.bf16 %v1551_v4, %v1550_v3 }
 0x1f4   : > { %2182 = vst [vmem:[%s2595_s11 + $0x18] sm:$0xff] %v2178_v7  }
 0x1f5 PF: > { %s17_s21 = sadd.s32 1, %s2263_s21  }
 0x1f6   : > { %p14_p7 = scmp.ge.s32.totalorder %s17_s21, 4  }
 0x1f8   :  { %16 = sbr.rel (!%p14_p7) target bundleno = 1 (0x1), region = 96 }
 0x1fd   :  { %1589 = vsyncpa [#allocation4], 1 }
 0x1fe   :  { %1591 = vsyncpa [#allocation4 + $0x1], 1 }

// kernel: filmed_net_forward.15
= control target key start
LH: loop header
LB: loop body
LE: loop exit
PB: predicated region body
PF: predicated region fallthrough
CT: control target
= control target key end

     0   :  { %vm19_vm0 = vcmask 123904   ;;  %v198_v2 = vmov 0.0   ;;  %s256_s0 = inlined_call_operand.vmem [shape: bf16[2,128], index: 0, kind: input, shape index: {}]   ;;  %s257_s1 = inlined_call_operand.vmem [shape: bf16[128,16], index: 1, kind: input, shape index: {}]   ;;  %s258_s2 = inlined_call_operand.vmem [shape: f32[1,16], index: 2, kind: input, shape index: {}]   ;;  %s259_s3 = inlined_call_operand.hbm [shape: f32[2,16], index: 3, kind: output, shape index: {}]  }
   0x1   :  { %v168_v0 = vld [vmem:[%s257_s1 + $0x38] sm:$0xff]  ;;  %v167_v1 = vld [vmem:[%s257_s1 + $0x30] sm:$0xff]  ;;  %20 = vst.msk [vmem:[#allocation2] sm:$0x3] %vm19_vm0, %v198_v2 }
   0x2   :  { %87 = vmatpush.bf16.msra.mxu0 %v168_v0 }
   0x3   :  { %8 = vsyncpa [#allocation4], 0  ;;  %v166_v3 = vld [vmem:[%s257_s1 + $0x28] sm:$0xff]  ;;  %v165_v4 = vld [vmem:[%s257_s1 + $0x20] sm:$0xff]  ;;  %s199_s5 = smov [#allocation3]   ;;  %s120_s8 = sshll.u32 %s259_s3, 4  ;;  %s121_s8 = int_to_ptr.hbm [resolvable:$true] %s120_s8 }
   0x4   :  { %v164_v5 = vld [vmem:[%s257_s1 + $0x18] sm:$0xff]  ;;  %v163_v6 = vld [vmem:[%s257_s1 + $0x10] sm:$0xff]  ;;  %v162_v7 = vld [vmem:[%s257_s1 + $0x8] sm:$0xff]  ;;  %s118_s6 = sshll.u32 %s199_s5, 4  ;;  %s119_s6 = int_to_ptr.vmem [resolvable:$true] %s118_s6 }
   0x5   :  { %v161_v8 = vld [vmem:[%s257_s1] sm:$0xff] }
   0x6   :  { %88 = vmatpush.bf16.msra.mxu0 %v167_v1  ;;  %v22_v9 = vld [vmem:[%s256_s0] sm:$0x1] }
   0x7   :  { %v171_v13 = vld [vmem:[%s258_s2] ss:$0 sm:$0xff] }
   0x8   :  { %v21_v10 = vld [vmem:[#allocation2] sm:$0x3] }
   0xa   :  { %89 = vmatpush.bf16.msra.mxu0 %v166_v3 }
   0xe   :  { %90 = vmatpush.bf16.msra.mxu0 %v165_v4 }
  0x12   :  { %91 = vmatpush.bf16.msra.mxu0 %v164_v5 }
  0x16   :  { %92 = vmatpush.bf16.msra.mxu0 %v163_v6 }
  0x1a   :  { %93 = vmatpush.bf16.msra.mxu0 %v162_v7 }
  0x1e   :  { %94 = vmatpush.bf16.msra.mxu0 %v161_v8 }
  0x21   :  { %95 = vmatmul.bf16.vlgmr.msra.gmra.mxu0 %v22_v9 }
  0x9e   :  { %v96_v11 = vpop.f32.mrf.mxu0 }
  0x9f   :  { %v100_v12 = vadd.f32 %v96_v11, %v21_v10 }
  0xa1   :  { %102 = vst.msk [vmem:[#allocation2] sm:$0x3] %vm19_vm0, %v100_v12 }
  0xa6   :  { %v98_v14 = vpop.f32.mrf.mxu0 }
  0xa8   :  { %v106_v15 = vld [vmem:[#allocation2] sm:$0x3] }
  0xa9   :  { %v111_v16 = vadd.f32 %v171_v13, %v106_v15 }
  0xab   :  { %112 = vst.msk [vmem:[#allocation3] sm:$0x3] %vm19_vm0, %v111_v16 }
  0xac   :  { %123 = dma.vmem_to_hbm [thread:$0]  %s119_s6, 32, %s121_s8, [#allocation4]  }
  0xad   :  { %196 = dma.done.wait [#allocation4], 32  }
  0xae   :  { %197 = vsyncadd [#allocation4], 4294967264 }
  0xaf   :  { %128 = vsyncpa [#allocation4], 1 }

// kernel: filmed_net_forward.8
= control target key start
LH: loop header
LB: loop body
LE: loop exit
PB: predicated region body
PF: predicated region fallthrough
CT: control target
= control target key end

     0   :  { %10 = vsyncpa [#allocation5], 0  ;;  %s2822_s18 = smov 0   ;;  %s3374_s0 = inlined_call_operand.vmem [shape: bf16[2,8,8,16], index: 0, kind: input, shape index: {}]   ;;  %s3375_s1 = inlined_call_operand.vmem [shape: bf16[9,16,128], index: 1, kind: input, shape index: {}]   ;;  %s3376_s2 = inlined_call_operand.vmem [shape: f32[64,128], index: 2, kind: input, shape index: {}]   ;;  %s3377_s3 = inlined_call_operand.hbm [shape: bf16[9,128,128], index: 3, kind: input, shape index: {}]   ;;  %s3378_s4 = inlined_call_operand.vmem [shape: f32[1,128], index: 4, kind: input, shape index: {}]   ;;  %s3379_s5 = inlined_call_operand.vmem [shape: bf16[2,64,128], index: 5, kind: output, shape index: {}]  }
   0x1 LB: > { %s174_s21 = sshll.u32 %s3377_s3, 4  ;;  %s2135_s22 = sadd.s32 4294967295, %s2786_s18   ;;  %s2786_s18 = sphi %s2822_s18, %s16_s18   ;;  %s175_s21 = int_to_ptr.hbm [resolvable:$true] %s174_s21 }
   0x2   : > { %p2137_p0 = scmp.ge.s32.totalorder %s2786_s18, 1  ;;  %p157_p1 = scmp.lt.s32.totalorder %s2786_s18, 3 }
   0x3   : > { %p2731_p2 = scmp.eq.s32.totalorder %s2135_s22, 0  ;;  %s2788_s23 = smov [#allocation4]  }
   0x4   : > { %p158_p3 = pnand %p2137_p0, %p157_p1  ;;  %s176_s24 = sshll.u32 %s2788_s23, 4  ;;  %s177_s24 = int_to_ptr.vmem [resolvable:$true] %s176_s24 }
   0x5   : > { %s2789_s25 = smov 64   ;;  %s2790_s26 = smov 4  }
   0x6   : > { %p2727_p4 = pneg %p158_p3  ;;  %203 = sbr.rel (%p158_p3) target bundleno = 591 (0x24f), region = 40 }
   0x8   : > { %p2728_p5 = pnand %p2731_p2, %p2727_p4 }
   0xa   : > { %2730 = dma.hbm_to_vmem [thread:$0]  (!%p2728_p5), %s175_s21, 9216, %s177_s24, [#allocation5], %s2789_s25, %s2789_s25, %s2790_s26  }
   0xb   : > { %2781 = dma.done.wait (%p2731_p2), [#allocation5], 9216  }
   0xc   : > { %2783 = vsyncadd (%p2731_p2), [#allocation5], 4294958080  ;;  %p232_p6 = scmp.lt.s32.totalorder %s2135_s22, 1  ;;  %vm243_vm0 = vcmask 130048   ;;  %v2791_v0 = vmov 0.0   ;;  %v2599_v1 = vld [vmem:[%s3375_s1 + $0x8] sm:$0xff]  ;;  %v272_v10 = vlaneseq }
   0xd   : > { %244 = vst.msk [vmem:[#allocation2] sm:$0xff] %vm243_vm0, %v2791_v0  ;;  %v2598_v6 = vld [vmem:[%s3375_s1] sm:$0xff]  ;;  %v2600_v7 = vld [vmem:[%s3375_s1 + $0x10] sm:$0xff]  ;;  %2721 = vmatpush.bf16.msra.mxu2 %v2599_v1  ;;  %338 = vmatpush.bf16.msra.mxu0 %v2599_v1  ;;  %v2601_v11 = vld [vmem:[%s3375_s1 + $0x18] sm:$0xff] }
   0xe   : > { %s3385_s22 = smov (!%p232_p6, %s2135_s22), 1  ;;  %246 = vst.msk [vmem:[#allocation2 + $0x48] sm:$0xff] %vm243_vm0, %v2791_v0  ;;  %v2602_v12 = vld [vmem:[%s3375_s1 + $0x20] sm:$0xff]  ;;  %385 = vmatpush.bf16.msra.mxu1 %v2598_v6  ;;  %2722 = vmatpush.bf16.msra.mxu3 %v2598_v6  ;;  %v2863_v19 = vshrl.u32 %v272_v10, 7  ;;  %v2604_v33 = vld [vmem:[%s3375_s1 + $0x30] sm:$0xff]  ;;  %v2605_v37 = vld [vmem:[%s3375_s1 + $0x38] sm:$0xff] }
   0xf   : > { %s2596_s27 = sshll.u32 %s3385_s22, 5  ;;  %v2603_v38 = vld [vmem:[%s3375_s1 + $0x28] sm:$0xff]  ;;  %v2606_v39 = vld [vmem:[%s3375_s1 + $0x40] sm:$0xff] }
  0x10   : > { %s236_s30 = scalar_lea.vmem %s3374_s0, %s2596_s27  ;;  %vm274_vm1 = vcmp.ge.s32.totalorder %v2863_v19, 1  ;;  %vm275_vm2 = vcmp.lt.s32.totalorder %v2863_v19, 7  ;;  %v2654_v19 = vld [vmem:[#allocation4 + $0x178] sm:$0xff]  ;;  %s3348_s24 = scalar_lea.vmem %s3379_s5, %s2596_s27 }
  0x11   : > { %v2715_v2 = vld [vmem:[%s236_s30 + $0x8] sm:$0xff]   ;;  %v2716_v3 = vld [vmem:[%s236_s30 + $0x10] sm:$0xff]   ;;  %v2680_v8 = vld [vmem:[%s236_s30] sm:$0xff]   ;;  %455 = vmatpush.bf16.msrb.mxu2 %v2600_v7  ;;  %603 = vmatpush.bf16.msrb.mxu0 %v2602_v12 }
  0x12   : > { %v2686_v4 = vunpack.c.h.bf16 %v2715_v2  ;;  %v2689_v5 = vunpack.c.l.bf16 %v2716_v3  ;;  %v2681_v9 = vunpack.c.l.bf16 %v2680_v8  ;;  %v2690_v13 = vunpack.c.h.bf16 %v2716_v3  ;;  %v2717_v14 = vld [vmem:[%s236_s30 + $0x18] sm:$0xff]   ;;  %541 = vmatpush.bf16.msrb.mxu3 %v2601_v11  ;;  %681 = vmatpush.bf16.msrb.mxu1 %v2603_v38  ;;  %vm3119_vm3 = vmpackc.low %vm274_vm1, %vm274_vm1 }
  0x13   : > { %v2693_v15 = vunpack.c.l.bf16 %v2717_v14  ;;  %v2694_v16 = vunpack.c.h.bf16 %v2717_v14  ;;  %v2682_v17 = vunpack.c.h.bf16 %v2680_v8  ;;  %v2685_v20 = vunpack.c.l.bf16 %v2715_v2  ;;  %vm3129_vm4 = vmpackc.low %vm275_vm2, %vm275_vm2 }
  0x14   : > { %267 = vst.msk [vmem:[#allocation2 + $0x20] sm:$0xff] %vm243_vm0, %v2686_v4  ;;  %v276_v18 = vld [vmem:[#allocation2] sm:$0xff] }
  0x15   : > { %268 = vst.msk [vmem:[#allocation2 + $0x28] sm:$0xff] %vm243_vm0, %v2689_v5  ;;  %v284_v21 = vrot.slane %v276_v18, 7  ;;  %v407_v56 = vrot.slane %v276_v18, 1 }
  0x16   : > { %264 = vst.msk [vmem:[#allocation2 + $0x8] sm:$0xff] %vm243_vm0, %v2681_v9 }
  0x17   : > { %269 = vst.msk [vmem:[#allocation2 + $0x30] sm:$0xff] %vm243_vm0, %v2690_v13  ;;  %v292_v30 = vsel %vm274_vm1, %v284_v21, 0.0  ;;  %v415_v58 = vsel %vm275_vm2, %v407_v56, 0.0  ;;  %v2620_v56 = vld [vmem:[#allocation4 + $0x68] sm:$0xff] }
  0x18   : > { %270 = vst.msk [vmem:[#allocation2 + $0x38] sm:$0xff] %vm243_vm0, %v2693_v15 }
  0x19   : > { %271 = vst.msk [vmem:[#allocation2 + $0x40] sm:$0xff] %vm243_vm0, %v2694_v16 }
  0x1a   : > { %265 = vst.msk [vmem:[#allocation2 + $0x10] sm:$0xff] %vm243_vm0, %v2682_v17 }
  0x1b   : > { %v2869_v22 = vld [vmem:[#allocation2 + $0x20] sm:$0xff]  ;;  %266 = vst.msk [vmem:[#allocation2 + $0x18] sm:$0xff] %vm243_vm0, %v2685_v20 }
  0x1c   : > { %v2873_v23 = vld [vmem:[#allocation2 + $0x28] sm:$0xff]  ;;  %v288_v24 = vrot.slane %v2869_v22, 7  ;;  %v636_v5 = vrot.slane %v2869_v22, 1 }
  0x1d   : > { %v2878_v25 = vpack.c.bf16 %v2873_v23, %v2869_v22  ;;  %v277_v26 = vld [vmem:[#allocation2 + $0x8] sm:$0xff]  ;;  %v289_v27 = vrot.slane %v2873_v23, 7  ;;  %v412_v11 = vrot.slane %v2873_v23, 1 }
  0x1e   : > { %v306_v28 = vpack.c.bf16 %v277_v26, %v276_v18  ;;  %v285_v29 = vrot.slane %v277_v26, 7  ;;  %v2885_v31 = vsel %vm274_vm1, %v288_v24, 0.0  ;;  %v282_v40 = vld [vmem:[#allocation2 + $0x30] sm:$0xff]  ;;  %v408_v57 = vrot.slane %v277_v26, 1 }
  0x1f   : > { %2154 = vmatmul.msk.bf16.vlgmr.msra.gmra.mxu2 %vm243_vm0, %v2878_v25  ;;  %v2891_v32 = vsel %vm274_vm1, %v289_v27, 0.0  ;;  %v2915_v41 = vld [vmem:[#allocation2 + $0x38] sm:$0xff]  ;;  %v290_v44 = vrot.slane %v282_v40, 7  ;;  %v644_v8 = vsel %vm275_vm2, %v636_v5, 0.0  ;;  %v420_v12 = vsel %vm275_vm2, %v412_v11, 0.0  ;;  %v2630_v5 = vld [vmem:[#allocation4 + $0xb8] sm:$0xff] }
  0x20   : > { %2152 = vmatmul.msk.bf16.vlgmr.msra.gmra.mxu0 %vm243_vm0, %v306_v28  ;;  %v293_v34 = vsel %vm274_vm1, %v285_v29, 0.0  ;;  %v2901_v35 = vpack.c.bf16 %v2891_v32, %v2885_v31  ;;  %768 = vmatpush.bf16.msra.mxu2 %v2604_v33  ;;  %v291_v45 = vrot.slane %v2915_v41, 7  ;;  %v2919_v48 = vpack.c.bf16 %v2915_v41, %v282_v40  ;;  %v492_v21 = vld [vmem:[#allocation2 + $0x40] sm:$0xff]  ;;  %v719_v33 = vld [vmem:[#allocation2 + $0x48] sm:$0xff] }
  0x21   : > { %v300_v36 = vpack.c.bf16 %v293_v34, %v292_v30  ;;  %v278_v42 = vld [vmem:[#allocation2 + $0x10] sm:$0xff]  ;;  %908 = vmatpush.bf16.msra.mxu0 %v2606_v39  ;;  %v298_v49 = vsel %vm274_vm1, %v290_v44, 0.0  ;;  %v416_v59 = vsel %vm275_vm2, %v408_v57, 0.0  ;;  %v638_v13 = vrot.slane %v282_v40, 1  ;;  %v2617_v11 = vld [vmem:[#allocation4 + $0x50] sm:$0xff] }
  0x22   : > { %2162 = vmatmul.msk.bf16.vlgmr.msra.gmra.mxu3 %vm243_vm0, %v2901_v35  ;;  %v279_v43 = vld [vmem:[#allocation2 + $0x18] sm:$0xff]  ;;  %v286_v46 = vrot.slane %v278_v42, 7  ;;  %v2925_v50 = vsel %vm274_vm1, %v291_v45, 0.0  ;;  %v634_v60 = vrot.slane %v278_v42, 1  ;;  %v423_v61 = vpack.c.bf16 %v416_v59, %v415_v58 }
  0x23   : > { %2160 = vmatmul.msk.bf16.vlgmr.msra.gmra.mxu1 %vm243_vm0, %v300_v36  ;;  %830 = vmatpush.bf16.msra.mxu3 %v2605_v37  ;;  %v287_v47 = vrot.slane %v279_v43, 7  ;;  %v2927_v51 = vpack.c.bf16 %v279_v43, %v278_v42  ;;  %v2934_v54 = vpack.c.bf16 %v2925_v50, %v298_v49  ;;  %v571_v62 = vpack.c.bf16 %v278_v42, %v277_v26 }
  0x24   : > { %v294_v52 = vsel %vm274_vm1, %v286_v46, 0.0  ;;  %v642_v63 = vsel %vm275_vm2, %v634_v60, 0.0  ;;  %v410_v3 = vrot.slane %v279_v43, 1  ;;  %v572_v7 = vpack.c.bf16 %v2869_v22, %v279_v43  ;;  %v2619_v60 = vld [vmem:[#allocation4 + $0x60] sm:$0xff] }
  0x25   : > { %v295_v53 = vsel %vm274_vm1, %v287_v47, 0.0  ;;  %v509_v1 = vpack.c.bf16 %v294_v52, %v293_v34  ;;  %v649_v2 = vpack.c.bf16 %v642_v63, %v416_v59  ;;  %v425_v14 = vpack.c.bf16 %v420_v12, %v644_v8  ;;  %v2622_v47 = vld [vmem:[#allocation4 + $0x78] sm:$0xff] }
  0x26   : > { %v301_v55 = vpack.c.bf16 %v295_v53, %v294_v52  ;;  %v418_v4 = vsel %vm275_vm2, %v410_v3, 0.0  ;;  %v510_v9 = vpack.c.bf16 %v2885_v31, %v295_v53  ;;  %v573_v15 = vpack.c.bf16 %v282_v40, %v2873_v23  ;;  %1087 = vmatpush.bf16.msra.mxu1 %v2622_v47  ;;  %v2621_v52 = vld [vmem:[#allocation4 + $0x70] sm:$0xff]  ;;  %v2607_v47 = vld [vmem:[#allocation4] sm:$0xff] }
  0x27   : > { %v424_v6 = vpack.c.bf16 %v418_v4, %v642_v63  ;;  %v650_v10 = vpack.c.bf16 %v644_v8, %v418_v4  ;;  %v646_v16 = vsel %vm275_vm2, %v638_v13, 0.0  ;;  %v511_v17 = vpack.c.bf16 %v298_v49, %v2891_v32  ;;  %v2614_v4 = vld [vmem:[#allocation4 + $0x38] sm:$0xff]  ;;  %v2612_v13 = vld [vmem:[#allocation4 + $0x28] sm:$0xff] }
  0x28   : > { %v651_v18 = vpack.c.bf16 %v646_v16, %v420_v12  ;;  %v414_v20 = vrot.slane %v2915_v41, 1  ;;  %v500_v22 = vrot.slane %v492_v21, 7  ;;  %v640_v24 = vrot.slane %v492_v21, 1 }
  0x29   : > { %v574_v28 = vpack.c.bf16 %v492_v21, %v2915_v41  ;;  %v727_v36 = vrot.slane %v719_v33, 7  ;;  %v867_v38 = vrot.slane %v719_v33, 1  ;;  %v801_v46 = vpack.c.bf16 %v719_v33, %v492_v21  ;;  %v2627_v21 = vld [vmem:[#allocation4 + $0xa0] sm:$0xff]  ;;  %v2625_v33 = vld [vmem:[#allocation4 + $0x90] sm:$0xff] }
  0x2a   : > { %v422_v23 = vsel %vm275_vm2, %v414_v20, 0.0  ;;  %v508_v27 = vsel %vm274_vm1, %v500_v22, 0.0  ;;  %v648_v29 = vsel %vm275_vm2, %v640_v24, 0.0  ;;  %1088 = vmatpush.bf16.msra.mxu1 %v2621_v52  ;;  %v2611_v20 = vld [vmem:[#allocation4 + $0x20] sm:$0xff]  ;;  %v2637_v22 = vld [vmem:[#allocation4 + $0xf0] sm:$0xff] }
  0x2b   : > { %v426_v26 = vpack.c.bf16 %v422_v23, %v646_v16  ;;  %v512_v30 = vpack.c.bf16 %v508_v27, %v2925_v50  ;;  %v652_v31 = vpack.c.bf16 %v648_v29, %v422_v23  ;;  %v875_v40 = vsel %vm275_vm2, %v867_v38, 0.0  ;;  %v2616_v23 = vld [vmem:[#allocation4 + $0x48] sm:$0xff] }
  0x2c   : > { %v879_v43 = vpack.c.bf16 %v875_v40, %v648_v29  ;;  %v2608_v38 = vld [vmem:[#allocation4 + $0x8] sm:$0xff]  ;;  %v2634_v40 = vld [vmem:[#allocation4 + $0xd8] sm:$0xff] }
  0x2e   : > { %1089 = vmatpush.bf16.msra.mxu1 %v2620_v56 }
  0x2f   : > { %2155 = vmatmul.msk.bf16.gmra.mxu2 %vm243_vm0, %v2919_v48 }
  0x30   : > { %2153 = vmatmul.msk.bf16.gmra.mxu0 %vm243_vm0, %v2927_v51 }
  0x32   : > { %2163 = vmatmul.msk.bf16.gmra.mxu3 %vm243_vm0, %v2934_v54  ;;  %1090 = vmatpush.bf16.msra.mxu1 %v2619_v60  ;;  %v2632_v60 = vld [vmem:[#allocation4 + $0xc8] sm:$0xff] }
  0x33   : > { %2161 = vmatmul.msk.bf16.gmra.mxu1 %vm243_vm0, %v301_v55 }
  0x3f   : > { %2170 = vmatmul.msk.bf16.vlgmr.msrb.gmra.mxu2 %vm243_vm0, %v423_v61 }
  0x40   : > { %2190 = vmatmul.msk.bf16.vlgmr.msrb.gmra.mxu0 %vm243_vm0, %v571_v62  ;;  %1164 = vmatpush.bf16.msrb.mxu2 %v2614_v4 }
  0x42   : > { %2180 = vmatmul.msk.bf16.vlgmr.msrb.gmra.mxu3 %vm243_vm0, %v509_v1 }
  0x43   : > { %2200 = vmatmul.msk.bf16.vlgmr.msrb.gmra.mxu1 %vm243_vm0, %v649_v2  ;;  %v2618_v2 = vld [vmem:[#allocation4 + $0x58] sm:$0xff]  ;;  %1278 = vmatpush.bf16.msrb.mxu3 %v2630_v5 }
  0x44   : > { %1091 = vmatpush.bf16.msra.mxu1 %v2618_v2 }
  0x48   : > { %1092 = vmatpush.bf16.msra.mxu1 %v2617_v11  ;;  %v2631_v11 = vld [vmem:[#allocation4 + $0xc0] sm:$0xff] }
  0x4c   : > { %1093 = vmatpush.bf16.msra.mxu1 %v2616_v23 }
  0x4f   : > { %2171 = vmatmul.msk.bf16.gmra.mxu2 %vm243_vm0, %v424_v6 }
  0x50   : > { %2191 = vmatmul.msk.bf16.gmra.mxu0 %vm243_vm0, %v572_v7 }
  0x52   : > { %2181 = vmatmul.msk.bf16.gmra.mxu3 %vm243_vm0, %v510_v9  ;;  %v2613_v9 = vld [vmem:[#allocation4 + $0x30] sm:$0xff] }
  0x53   : > { %2201 = vmatmul.msk.bf16.gmra.mxu1 %vm243_vm0, %v650_v10  ;;  %v2629_v10 = vld [vmem:[#allocation4 + $0xb0] sm:$0xff]  ;;  %1165 = vmatpush.bf16.msrb.mxu2 %v2613_v9 }
  0x54   : > { %1279 = vmatpush.bf16.msrb.mxu3 %v2629_v10  ;;  %v2646_v10 = vld [vmem:[#allocation4 + $0x138] sm:$0xff] }
  0x57   : > { %1166 = vmatpush.bf16.msrb.mxu2 %v2612_v13 }
  0x5b   : > { %1167 = vmatpush.bf16.msrb.mxu2 %v2611_v20 }
  0x5f   : > { %2172 = vmatmul.msk.bf16.gmra.mxu2 %vm243_vm0, %v425_v14 }
  0x60   : > { %2192 = vmatmul.msk.bf16.gmra.mxu0 %vm243_vm0, %v573_v15  ;;  %v2638_v15 = vld [vmem:[#allocation4 + $0xf8] sm:$0xff] }
  0x61   : > { %1408 = vmatpush.bf16.msrb.mxu0 %v2638_v15 }
  0x62   : > { %2182 = vmatmul.msk.bf16.gmra.mxu3 %vm243_vm0, %v511_v17 }
  0x63   : > { %2202 = vmatmul.msk.bf16.gmra.mxu1 %vm243_vm0, %v651_v18 }
  0x65   : > { %1409 = vmatpush.bf16.msrb.mxu0 %v2637_v22 }
  0x6f   : > { %2173 = vmatmul.msk.bf16.gmra.mxu2 %vm243_vm0, %v426_v26 }
  0x70   : > { %2193 = vmatmul.msk.bf16.gmra.mxu0 %vm243_vm0, %v574_v28  ;;  %v2636_v28 = vld [vmem:[#allocation4 + $0xe8] sm:$0xff] }
  0x71   : > { %1410 = vmatpush.bf16.msrb.mxu0 %v2636_v28 }
  0x72   : > { %2183 = vmatmul.msk.bf16.gmra.mxu3 %vm243_vm0, %v512_v30 }
  0x73   : > { %2203 = vmatmul.msk.bf16.gmra.mxu1 %vm243_vm0, %v652_v31  ;;  %v2609_v31 = vld [vmem:[#allocation4 + $0x10] sm:$0xff] }
  0x7f   : > { %2210 = vmatmul.msk.bf16.vlgmr.msra.gmra.mxu2 %vm243_vm0, %v301_v55 }
  0x80   : > { %2230 = vmatmul.msk.bf16.vlgmr.msra.gmra.mxu0 %vm243_vm0, %v424_v6 }
  0x82   : > { %2220 = vmatmul.msk.bf16.vlgmr.msra.gmra.mxu3 %vm243_vm0, %v2927_v51 }
  0x8f   : > { %2211 = vmatmul.msk.bf16.gmra.mxu2 %vm243_vm0, %v2901_v35 }
  0x90   : > { %2231 = vmatmul.msk.bf16.gmra.mxu0 %vm243_vm0, %v425_v14  ;;  %v2628_v14 = vld [vmem:[#allocation4 + $0xa8] sm:$0xff] }
  0x91   : > { %1280 = vmatpush.bf16.msrb.mxu3 %v2628_v14 }
  0x92   : > { %2221 = vmatmul.msk.bf16.gmra.mxu3 %vm243_vm0, %v2878_v25  ;;  %v735_v25 = vsel %vm274_vm1, %v727_v36, 0.0 }
  0x93   : > { %v739_v42 = vpack.c.bf16 %v735_v25, %v508_v27  ;;  %v2626_v27 = vld [vmem:[#allocation4 + $0x98] sm:$0xff]  ;;  %v2624_v25 = vld [vmem:[#allocation4 + $0x88] sm:$0xff] }
  0x95   : > { %1281 = vmatpush.bf16.msrb.mxu3 %v2627_v21 }
  0x99   : > { %1282 = vmatpush.bf16.msrb.mxu3 %v2626_v27 }
  0x9d   : > { %v2998_v32 = vpop.f32.mrf.mxu0  ;;  %1283 = vmatpush.bf16.msrb.mxu3 %v2625_v33  ;;  %v2644_v33 = vld [vmem:[#allocation4 + $0x128] sm:$0xff] }
  0x9f   : > { %2212 = vmatmul.msk.bf16.gmra.mxu2 %vm243_vm0, %v2934_v54 }
  0xa0   : > { %2232 = vmatmul.msk.bf16.gmra.mxu0 %vm243_vm0, %v426_v26  ;;  %v3038_v61 = vpop.f32.mrf.mxu1  ;;  %v2610_v26 = vld [vmem:[#allocation4 + $0x18] sm:$0xff] }
  0xa1   : > { %1168 = vmatpush.bf16.msrb.mxu2 %v2610_v26  ;;  %1284 = vmatpush.bf16.msrb.mxu3 %v2624_v25  ;;  %v388_v2 = vadd.f32 %v3038_v61, %v2998_v32  ;;  %v2645_v32 = vld [vmem:[#allocation4 + $0x130] sm:$0xff] }
  0xa2   : > { %v350_v34 = vpop.f32.mrf.mxu2  ;;  %2222 = vmatmul.msk.bf16.gmra.mxu3 %vm243_vm0, %v2919_v48 }
  0xa5   : > { %v397_v37 = vpop.f32.mrf.mxu3  ;;  %v3005_v35 = vpop.f32.mrf.mxu0  ;;  %1169 = vmatpush.bf16.msrb.mxu2 %v2609_v31 }
  0xa6   : > { %v3007_v39 = vadd.f32 %v397_v37, %v350_v34  ;;  %v2635_v34 = vld [vmem:[#allocation4 + $0xe0] sm:$0xff] }
  0xa7   : > { %1411 = vmatpush.bf16.msrb.mxu0 %v2635_v34 }
  0xa8   : > { %v3048_v6 = vpop.f32.mrf.mxu1 }
  0xa9   : > { %1170 = vmatpush.bf16.msrb.mxu2 %v2608_v38  ;;  %v390_v20 = vadd.f32 %v3048_v6, %v3005_v35  ;;  %v938_v38 = vld [vmem:[%s3376_s2] sm:$0xff] }
  0xaa   : > { %v3013_v41 = vpop.f32.mrf.mxu2 }
  0xab   : > { %1412 = vmatpush.bf16.msrb.mxu0 %v2634_v40 }
  0xad   : > { %v3015_v44 = vpop.f32.mrf.mxu3  ;;  %v3017_v45 = vpop.f32.mrf.mxu0  ;;  %1171 = vmatpush.bf16.msrb.mxu2 %v2607_v47 }
  0xaf   : > { %2213 = vmatmul.msk.bf16.gmra.mxu2 %vm243_vm0, %v739_v42  ;;  %v2615_v42 = vld [vmem:[#allocation4 + $0x40] sm:$0xff] }
  0xb0   : > { %2233 = vmatmul.msk.bf16.gmra.mxu0 %vm243_vm0, %v879_v43  ;;  %v3060_v18 = vpop.f32.mrf.mxu1  ;;  %1094 = vmatpush.bf16.msra.mxu1 %v2615_v42 }
  0xb1   : > { %v393_v27 = vadd.f32 %v3060_v18, %v3017_v45  ;;  %1636 = vmatpush.bf16.msra.mxu2 %v2654_v19 }
  0xb2   : > { %v355_v48 = vpop.f32.mrf.mxu2  ;;  %2223 = vmatmul.msk.bf16.gmra.mxu3 %vm243_vm0, %v801_v46 }
  0xb4   : > { %1514 = vmatpush.bf16.msrb.mxu1 %v2646_v10 }
  0xb5   : > { %v402_v49 = vpop.f32.mrf.mxu3  ;;  %v3022_v50 = vpop.f32.mrf.mxu0 }
  0xb6   : > { %v3024_v51 = vadd.f32 %v402_v49, %v355_v48  ;;  %v2623_v48 = vld [vmem:[#allocation4 + $0x80] sm:$0xff]  ;;  %v2633_v49 = vld [vmem:[#allocation4 + $0xd0] sm:$0xff] }
  0xb7   : > { %1285 = vmatpush.bf16.msrb.mxu3 %v2623_v48  ;;  %1413 = vmatpush.bf16.msrb.mxu0 %v2633_v49  ;;  %v3108_v48 = vrot.slane %v2791_v0, 1  ;;  %v2643_v49 = vld [vmem:[#allocation4 + $0x120] sm:$0xff] }
  0xb8   : > { %v394_v36 = vpop.f32.mrf.mxu1  ;;  %1515 = vmatpush.bf16.msrb.mxu1 %v2645_v32 }
  0xb9   : > { %v395_v42 = vadd.f32 %v394_v36, %v3022_v50 }
  0xba   : > { %v3026_v53 = vpop.f32.mrf.mxu2 }
  0xbb   : > { %1414 = vmatpush.bf16.msrb.mxu0 %v2632_v60 }
  0xbc   : > { %1516 = vmatpush.bf16.msrb.mxu1 %v2644_v33 }
  0xbd   : > { %v3028_v54 = vpop.f32.mrf.mxu3  ;;  %v3030_v55 = vpop.f32.mrf.mxu0 }
  0xbf   : > { %1415 = vmatpush.bf16.msrb.mxu0 %v2631_v11 }
  0xc0   : > { %v683_v52 = vpop.f32.mrf.mxu1  ;;  %1517 = vmatpush.bf16.msrb.mxu1 %v2643_v49 }
  0xc2   : > { %v3032_v57 = vpop.f32.mrf.mxu2 }
  0xc3   : > { %v477_v4 = vadd.f32 %v3032_v57, %v388_v2 }
  0xc5   : > { %v3034_v58 = vpop.f32.mrf.mxu3  ;;  %v3036_v59 = vpop.f32.mrf.mxu0 }
  0xc6   : > { %v563_v13 = vadd.f32 %v3034_v58, %v477_v4 }
  0xc8   : > { %v685_v14 = vpop.f32.mrf.mxu1  ;;  %v625_v57 = vadd.f32 %v3030_v55, %v563_v13 }
  0xca   : > { %v3040_v62 = vpop.f32.mrf.mxu2  ;;  %v703_v23 = vadd.f32 %v683_v52, %v625_v57 }
  0xcb   : > { %v478_v61 = vadd.f32 %v3040_v62, %v390_v20 }
  0xcd   : > { %v3042_v63 = vpop.f32.mrf.mxu3  ;;  %v3044_v1 = vpop.f32.mrf.mxu0 }
  0xce   : > { %v564_v26 = vadd.f32 %v3042_v63, %v478_v61 }
  0xd0   : > { %v688_v31 = vpop.f32.mrf.mxu1  ;;  %v626_v35 = vadd.f32 %v3036_v59, %v564_v26 }
  0xd2   : > { %v3046_v3 = vpop.f32.mrf.mxu2  ;;  %v704_v25 = vadd.f32 %v685_v14, %v626_v35 }
  0xd3   : > { %v479_v55 = vadd.f32 %v3046_v3, %v393_v27  ;;  %v3105_v3 = vrot.slane %v2791_v0, 7  ;;  %v2642_v27 = vld [vmem:[#allocation4 + $0x118] sm:$0xff] }
  0xd4   : > { %1518 = vmatpush.bf16.msrb.mxu1 %v2642_v27  ;;  %v2658_v27 = vld [vmem:[#allocation4 + $0x198] sm:$0xff] }
  0xd5   : > { %v3050_v7 = vpop.f32.mrf.mxu3  ;;  %v3052_v8 = vpop.f32.mrf.mxu0 }
  0xd6   : > { %v565_v40 = vadd.f32 %v3050_v7, %v479_v55  ;;  %v2653_v55 = vld [vmem:[#allocation4 + $0x170] sm:$0xff] }
  0xd7   : > { %1637 = vmatpush.bf16.msra.mxu2 %v2653_v55 }
  0xd8   : > { %v627_v52 = vadd.f32 %v3044_v1, %v565_v40  ;;  %v690_v4 = vpop.f32.mrf.mxu1  ;;  %v939_v1 = vld [vmem:[%s3376_s2 + $0x8] sm:$0xff] }
  0xda   : > { %v3054_v12 = vpop.f32.mrf.mxu2  ;;  %v705_v32 = vadd.f32 %v688_v31, %v627_v52 }
  0xdb   : > { %v480_v60 = vadd.f32 %v3054_v12, %v395_v42  ;;  %v2670_v42 = vld [vmem:[#allocation4 + $0x1f8] sm:$0xff] }
  0xdc   : > { %1873 = vmatpush.bf16.msra.mxu0 %v2670_v42  ;;  %v2666_v42 = vld [vmem:[#allocation4 + $0x1d8] sm:$0xff] }
  0xdd   : > { %v3056_v16 = vpop.f32.mrf.mxu3  ;;  %v3058_v17 = vpop.f32.mrf.mxu0 }
  0xde   : > { %v566_v57 = vadd.f32 %v3056_v16, %v480_v60  ;;  %v2641_v60 = vld [vmem:[#allocation4 + $0x110] sm:$0xff] }
  0xdf   : > { %1519 = vmatpush.bf16.msrb.mxu1 %v2641_v60 }
  0xe2   : > { %v3062_v24 = vpop.f32.mrf.mxu2 }
  0xe3   : > { %v481_v16 = vadd.f32 %v3062_v24, %v3007_v39 }
  0xe5   : > { %v3064_v29 = vpop.f32.mrf.mxu3  ;;  %v3066_v30 = vpop.f32.mrf.mxu0 }
  0xe6   : > { %v567_v39 = vadd.f32 %v3064_v29, %v481_v16 }
  0xea   : > { %v3068_v37 = vpop.f32.mrf.mxu2 }
  0xed   : > { %v3070_v43 = vpop.f32.mrf.mxu3  ;;  %v3072_v46 = vpop.f32.mrf.mxu0 }
  0xf2   : > { %v3074_v56 = vpop.f32.mrf.mxu2 }
  0xf3   : > { %v483_v55 = vadd.f32 %v3074_v56, %v3024_v51 }
  0xf5   : > { %v3079_v5 = vpop.f32.mrf.mxu3  ;;  %v3081_v9 = vpop.f32.mrf.mxu0 }
  0xf6   : > { %v569_v51 = vadd.f32 %v3079_v5, %v483_v55  ;;  %v2647_v5 = vld [vmem:[#allocation4 + $0x140] sm:$0xff] }
  0xf7   : > { %v2663_v55 = vld [vmem:[#allocation4 + $0x1c0] sm:$0xff] }
  0xfa   : > { %v3084_v15 = vpop.f32.mrf.mxu2 }
  0xfd   : > { %v3090_v21 = vpop.f32.mrf.mxu3  ;;  %v910_v22 = vpop.f32.mrf.mxu0 }
 0x102   : > { %v770_v58 = vpop.f32.mrf.mxu2 }
 0x103   : > { %v790_v28 = vadd.f32 %v770_v58, %v703_v23  ;;  %v2662_v23 = vld [vmem:[#allocation4 + $0x1b8] sm:$0xff] }
 0x104   : > { %1767 = vmatpush.bf16.msra.mxu3 %v2662_v23 }
 0x105   : > { %v832_v6 = vpop.f32.mrf.mxu3  ;;  %v912_v62 = vpop.f32.mrf.mxu0 }
 0x106   : > { %v852_v34 = vadd.f32 %v832_v6, %v790_v28  ;;  %v628_v28 = vadd.f32 %v3052_v8, %v566_v57  ;;  %v2661_v6 = vld [vmem:[#allocation4 + $0x1b0] sm:$0xff] }
 0x108   : > { %v930_v63 = vadd.f32 %v910_v22, %v852_v34  ;;  %1768 = vmatpush.bf16.msra.mxu3 %v2661_v6  ;;  %v706_v8 = vadd.f32 %v690_v4, %v628_v28  ;;  %v2668_v28 = vld [vmem:[#allocation4 + $0x1e8] sm:$0xff] }
 0x10a   : > { %v946_v45 = vadd.f32 %v938_v38, %v930_v63  ;;  %v772_v18 = vpop.f32.mrf.mxu2  ;;  %v693_v38 = vpop.f32.mrf.mxu1 }
 0x10b   : > { %v791_v47 = vadd.f32 %v772_v18, %v704_v25  ;;  %v2660_v18 = vld [vmem:[#allocation4 + $0x1a8] sm:$0xff] }
 0x10c   : > { %v3102_v59 = vmax.f32 %v946_v45, 0.0  ;;  %v2652_v45 = vld [vmem:[#allocation4 + $0x168] sm:$0xff]  ;;  %1769 = vmatpush.bf16.msra.mxu3 %v2660_v18 }
 0x10d   : > { %v834_v2 = vpop.f32.mrf.mxu3  ;;  %v915_v7 = vpop.f32.mrf.mxu0  ;;  %1638 = vmatpush.bf16.msra.mxu2 %v2652_v45  ;;  %v2648_v45 = vld [vmem:[#allocation4 + $0x148] sm:$0xff] }
 0x10e   : > { %v983_v10 = vrot.slane %v3102_v59, 7  ;;  %v1194_v50 = vrot.slane %v3102_v59, 1  ;;  %v853_v36 = vadd.f32 %v834_v2, %v791_v47  ;;  %v1018_v11 = vpack.c.bf16 %v3102_v59, %v2791_v0  ;;  %v2656_v18 = vld [vmem:[#allocation4 + $0x188] sm:$0xff] }
 0x10f   : > { %v400_v47 = vadd.f32 %v3015_v44, %v3013_v41  ;;  %v629_v2 = vadd.f32 %v3058_v17, %v567_v39  ;;  %v941_v17 = vld [vmem:[%s3376_s2 + $0x18] sm:$0xff] }
 0x110   : > { %v931_v0 = vadd.f32 %v912_v62, %v853_v36  ;;  %1095 = vmatmul.bf16.vlgmr.msra.gmra.mxu1 %v1018_v11  ;;  %v2299_v14 = vpack.c.bf16 %v983_v10, %v3105_v3  ;;  %v2343_v20 = vpack.c.bf16 %v1194_v50, %v3108_v48  ;;  %v940_v62 = vld [vmem:[%s3376_s2 + $0x10] sm:$0xff] }
 0x111   : > { %v482_v29 = vadd.f32 %v3068_v37, %v400_v47  ;;  %v2651_v11 = vld [vmem:[#allocation4 + $0x160] sm:$0xff]  ;;  %v405_v47 = vadd.f32 %v3028_v54, %v3026_v53 }
 0x112   : > { %v947_v61 = vadd.f32 %v939_v1, %v931_v0  ;;  %v775_v22 = vpop.f32.mrf.mxu2  ;;  %2300 = vmatmul.msk.bf16.vlgmr.msrb.gmra.mxu2 %vm3119_vm3, %v2299_v14  ;;  %2344 = vmatmul.msk.bf16.vlgmr.msrb.gmra.mxu3 %vm3129_vm4, %v2343_v20  ;;  %v2659_v1 = vld [vmem:[#allocation4 + $0x1a0] sm:$0xff]  ;;  %v2669_v0 = vld [vmem:[#allocation4 + $0x1f0] sm:$0xff] }
 0x113   : > { %v792_v26 = vadd.f32 %v775_v22, %v705_v32  ;;  %1639 = vmatpush.bf16.msra.mxu2 %v2651_v11  ;;  %v707_v32 = vadd.f32 %v693_v38, %v629_v2  ;;  %v568_v57 = vadd.f32 %v3070_v43, %v482_v29  ;;  %1770 = vmatpush.bf16.msra.mxu3 %v2659_v1  ;;  %v695_v22 = vpop.f32.mrf.mxu1  ;;  %v2640_v43 = vld [vmem:[#allocation4 + $0x108] sm:$0xff]  ;;  %v2655_v1 = vld [vmem:[#allocation4 + $0x180] sm:$0xff] }
 0x114   : > { %v3142_v58 = vmax.f32 %v947_v61, 0.0  ;;  %1874 = vmatpush.bf16.msra.mxu0 %v2669_v0  ;;  %1520 = vmatpush.bf16.msrb.mxu1 %v2640_v43  ;;  %v2665_v0 = vld [vmem:[#allocation4 + $0x1d0] sm:$0xff] }
 0x115   : > { %v837_v31 = vpop.f32.mrf.mxu3  ;;  %v917_v34 = vpop.f32.mrf.mxu0 }
 0x116   : > { %v984_v33 = vrot.slane %v3142_v58, 7  ;;  %v854_v35 = vadd.f32 %v837_v31, %v792_v26  ;;  %v1195_v4 = vrot.slane %v3142_v58, 1  ;;  %v2650_v26 = vld [vmem:[#allocation4 + $0x158] sm:$0xff] }
 0x117   : > { %1640 = vmatpush.bf16.msra.mxu2 %v2650_v26  ;;  %1771 = vmatpush.bf16.msra.mxu3 %v2658_v27  ;;  %v2664_v27 = vld [vmem:[#allocation4 + $0x1c8] sm:$0xff] }
 0x118   : > { %v932_v63 = vadd.f32 %v915_v7, %v854_v35  ;;  %v2387_v25 = vpack.c.bf16 %v984_v33, %v983_v10  ;;  %v630_v35 = vadd.f32 %v3066_v30, %v568_v57  ;;  %1875 = vmatpush.bf16.msra.mxu0 %v2668_v28 }
 0x11a   : > { %v948_v24 = vadd.f32 %v940_v62, %v932_v63  ;;  %v777_v40 = vpop.f32.mrf.mxu2  ;;  %2388 = vmatmul.msk.bf16.vlgmr.msrb.gmra.mxu0 %vm3119_vm3, %v2387_v25  ;;  %v2657_v62 = vld [vmem:[#allocation4 + $0x190] sm:$0xff]  ;;  %v2639_v25 = vld [vmem:[#allocation4 + $0x100] sm:$0xff]  ;;  %v708_v30 = vadd.f32 %v695_v22, %v630_v35 }
 0x11b   : > { %v793_v49 = vadd.f32 %v777_v40, %v706_v8  ;;  %v942_v8 = vld [vmem:[%s3376_s2 + $0x20] sm:$0xff]  ;;  %1772 = vmatpush.bf16.msra.mxu3 %v2657_v62  ;;  %1521 = vmatpush.bf16.msrb.mxu1 %v2639_v25  ;;  %v698_v2 = vpop.f32.mrf.mxu1 }
 0x11c   : > { %v3156_v52 = vmax.f32 %v948_v24, 0.0 }
 0x11d   : > { %v839_v7 = vpop.f32.mrf.mxu3  ;;  %v920_v61 = vpop.f32.mrf.mxu0 }
 0x11e   : > { %v855_v10 = vadd.f32 %v839_v7, %v793_v49  ;;  %v3163_v36 = vpack.c.bf16 %v3156_v52, %v3142_v58  ;;  %v985_v41 = vrot.slane %v3156_v52, 7  ;;  %v1196_v44 = vrot.slane %v3156_v52, 1 }
 0x11f   : > { %v631_v7 = vadd.f32 %v3072_v46, %v569_v51  ;;  %1773 = vmatpush.bf16.msra.mxu3 %v2656_v18  ;;  %v943_v46 = vld [vmem:[%s3376_s2 + $0x28] sm:$0xff] }
 0x120   : > { %v933_v37 = vadd.f32 %v917_v34, %v855_v10  ;;  %1100 = vmatmul.bf16.gmra.mxu1 %v3163_v36  ;;  %v3171_v14 = vpack.c.bf16 %v985_v41, %v984_v33  ;;  %v3177_v20 = vpack.c.bf16 %v1196_v44, %v1195_v4  ;;  %v2649_v33 = vld [vmem:[#allocation4 + $0x150] sm:$0xff]  ;;  %v2667_v34 = vld [vmem:[#allocation4 + $0x1e0] sm:$0xff]  ;;  %v484_v10 = vadd.f32 %v3084_v15, %v405_v47 }
 0x121   : > { %1641 = vmatpush.bf16.msra.mxu2 %v2649_v33  ;;  %1876 = vmatpush.bf16.msra.mxu0 %v2667_v34  ;;  %v709_v22 = vadd.f32 %v698_v2, %v631_v7  ;;  %v2676_v7 = vld [vmem:[#allocation4 + $0x228] sm:$0xff] }
 0x122   : > { %v949_v19 = vadd.f32 %v941_v17, %v933_v37  ;;  %v780_v23 = vpop.f32.mrf.mxu2  ;;  %2303 = vmatmul.msk.bf16.gmra.mxu2 %vm3119_vm3, %v3171_v14  ;;  %2347 = vmatmul.msk.bf16.gmra.mxu3 %vm3129_vm4, %v3177_v20 }
 0x123   : > { %v794_v16 = vadd.f32 %v780_v23, %v707_v32  ;;  %1774 = vmatpush.bf16.msra.mxu3 %v2655_v1 }
 0x124   : > { %v3186_v31 = vmax.f32 %v949_v19, 0.0  ;;  %v570_v19 = vadd.f32 %v3090_v21, %v484_v10 }
 0x125   : > { %v842_v6 = vpop.f32.mrf.mxu3  ;;  %v922_v49 = vpop.f32.mrf.mxu0  ;;  %1642 = vmatpush.bf16.msra.mxu2 %v2648_v45  ;;  %1877 = vmatpush.bf16.msra.mxu0 %v2666_v42 }
 0x126   : > { %v856_v38 = vadd.f32 %v842_v6, %v794_v16  ;;  %v986_v63 = vrot.slane %v3186_v31, 7  ;;  %v1197_v11 = vrot.slane %v3186_v31, 1  ;;  %v2677_v16 = vld [vmem:[#allocation4 + $0x230] sm:$0xff]  ;;  %v632_v21 = vadd.f32 %v3081_v9, %v570_v19  ;;  %v700_v6 = vpop.f32.mrf.mxu1 }
 0x128   : > { %v934_v39 = vadd.f32 %v920_v61, %v856_v38  ;;  %v2390_v24 = vpack.c.bf16 %v986_v63, %v985_v41  ;;  %v2678_v61 = vld [vmem:[#allocation4 + $0x238] sm:$0xff]  ;;  %v944_v38 = vld [vmem:[%s3376_s2 + $0x30] sm:$0xff] }
 0x129   : > { %1643 = vmatpush.bf16.msra.mxu2 %v2647_v5  ;;  %1878 = vmatpush.bf16.msra.mxu0 %v2665_v0 }
 0x12a   : > { %v950_v56 = vadd.f32 %v942_v8, %v934_v39  ;;  %v782_v40 = vpop.f32.mrf.mxu2  ;;  %2391 = vmatmul.msk.bf16.gmra.mxu0 %vm3119_vm3, %v2390_v24  ;;  %1995 = vmatpush.bf16.msra.mxu1 %v2678_v61  ;;  %v710_v8 = vadd.f32 %v700_v6, %v632_v21  ;;  %v2673_v61 = vld [vmem:[#allocation4 + $0x210] sm:$0xff] }
 0x12b   : > { %v795_v60 = vadd.f32 %v782_v40, %v708_v30 }
 0x12c   : > { %v3200_v29 = vmax.f32 %v950_v56, 0.0 }
 0x12d   : > { %v844_v41 = vpop.f32.mrf.mxu3  ;;  %v925_v33 = vpop.f32.mrf.mxu0  ;;  %1879 = vmatpush.bf16.msra.mxu0 %v2664_v27 }
 0x12e   : > { %v857_v17 = vadd.f32 %v844_v41, %v795_v60  ;;  %v3207_v53 = vpack.c.bf16 %v3200_v29, %v3186_v31  ;;  %v987_v54 = vrot.slane %v3200_v29, 7  ;;  %v1198_v37 = vrot.slane %v3200_v29, 1  ;;  %1996 = vmatpush.bf16.msra.mxu1 %v2677_v16  ;;  %v2675_v41 = vld [vmem:[#allocation4 + $0x220] sm:$0xff] }
 0x130   : > { %v935_v15 = vadd.f32 %v922_v49, %v857_v17  ;;  %1105 = vmatmul.bf16.gmra.mxu1 %v3207_v53  ;;  %v3215_v32 = vpack.c.bf16 %v987_v54, %v986_v63  ;;  %v3221_v57 = vpack.c.bf16 %v1198_v37, %v1197_v11  ;;  %v945_v49 = vld [vmem:[%s3376_s2 + $0x38] sm:$0xff] }
 0x131   : > { %1880 = vmatpush.bf16.msra.mxu0 %v2663_v55 }
 0x132   : > { %v951_v23 = vadd.f32 %v943_v46, %v935_v15  ;;  %v785_v26 = vpop.f32.mrf.mxu2  ;;  %2306 = vmatmul.msk.bf16.gmra.mxu2 %vm3119_vm3, %v3215_v32  ;;  %2350 = vmatmul.msk.bf16.gmra.mxu3 %vm3129_vm4, %v3221_v57  ;;  %v2463_v46 = vpack.c.bf16 %v1195_v4, %v1194_v50  ;;  %v2674_v15 = vld [vmem:[#allocation4 + $0x218] sm:$0xff]  ;;  %v2466_v50 = vpack.c.bf16 %v1197_v11, %v1196_v44  ;;  %v2671_v4 = vld [vmem:[#allocation4 + $0x200] sm:$0xff] }
 0x133   : > { %v796_v28 = vadd.f32 %v785_v26, %v709_v22  ;;  %1997 = vmatpush.bf16.msra.mxu1 %v2676_v7 }
 0x134   : > { %v3230_v43 = vmax.f32 %v951_v23, 0.0 }
 0x135   : > { %v847_v35 = vpop.f32.mrf.mxu3  ;;  %v927_v47 = vpop.f32.mrf.mxu0 }
 0x136   : > { %v858_v62 = vadd.f32 %v847_v35, %v796_v28  ;;  %v988_v34 = vrot.slane %v3230_v43, 7  ;;  %v1199_v56 = vrot.slane %v3230_v43, 1 }
 0x137   : > { %1998 = vmatpush.bf16.msra.mxu1 %v2675_v41 }
 0x138   : > { %v936_v63 = vadd.f32 %v925_v33, %v858_v62  ;;  %v2393_v25 = vpack.c.bf16 %v988_v34, %v987_v54  ;;  %v1445_v54 = vpack.c.bf16 %v3142_v58, %v3102_v59  ;;  %v1446_v59 = vpack.c.bf16 %v3186_v31, %v3156_v52  ;;  %v2672_v58 = vld [vmem:[#allocation4 + $0x208] sm:$0xff] }
 0x139   : > { %v2469_v52 = vpack.c.bf16 %v1199_v56, %v1198_v37 }
 0x13a   : > { %v952_v39 = vadd.f32 %v944_v38, %v936_v63  ;;  %v787_v24 = vpop.f32.mrf.mxu2  ;;  %2394 = vmatmul.msk.bf16.gmra.mxu0 %vm3119_vm3, %v2393_v25 }
 0x13b   : > { %v797_v9 = vadd.f32 %v787_v24, %v710_v8  ;;  %1999 = vmatpush.bf16.msra.mxu1 %v2674_v15 }
 0x13c   : > { %v960_v30 = vmax.f32 %v952_v39, 0.0 }
 0x13d   : > { %v849_v51 = vpop.f32.mrf.mxu3 }
 0x13e   : > { %v859_v40 = vadd.f32 %v849_v51, %v797_v9  ;;  %v1021_v45 = vpack.c.bf16 %v960_v30, %v3230_v43  ;;  %v989_v18 = vrot.slane %v960_v30, 7  ;;  %v1200_v42 = vrot.slane %v960_v30, 1 }
 0x13f   : > { %2000 = vmatpush.bf16.msra.mxu1 %v2673_v61 }
 0x140   : > { %v937_v60 = vadd.f32 %v927_v47, %v859_v40  ;;  %1110 = vmatmul.bf16.gmra.mxu1 %v1021_v45  ;;  %v2308_v2 = vpack.c.bf16 %v989_v18, %v988_v34  ;;  %v3244_v5 = vpack.c.bf16 %v1200_v42, %v1199_v56 }
 0x142   : > { %v953_v10 = vadd.f32 %v945_v49, %v937_v60  ;;  %2309 = vmatmul.msk.bf16.gmra.mxu2 %vm3119_vm3, %v2308_v2  ;;  %2353 = vmatmul.msk.bf16.gmra.mxu3 %vm3129_vm4, %v3244_v5 }
 0x143   : > { %2001 = vmatpush.bf16.msra.mxu1 %v2672_v58 }
 0x144   : > { %v3251_v1 = vmax.f32 %v953_v10, 0.0 }
 0x146   : > { %v1330_v0 = vrot.slane %v3251_v1, 7  ;;  %v1558_v44 = vrot.slane %v3251_v1, 1 }
 0x147   : > { %2002 = vmatpush.bf16.msra.mxu1 %v2671_v4 }
 0x148   : > { %v2396_v17 = vpack.c.bf16 %v1330_v0, %v989_v18  ;;  %v2472_v31 = vpack.c.bf16 %v1558_v44, %v1200_v42  ;;  %v2516_v11 = vpack.c.bf16 %v3105_v3, %v1330_v0 }
 0x14a   : > { %2397 = vmatmul.msk.bf16.gmra.mxu0 %vm3119_vm3, %v2396_v17 }
 0x150   : > { %1522 = vmatmul.bf16.vlgmr.msrb.gmra.mxu1 %v1445_v54 }
 0x152   : > { %2464 = vmatmul.msk.bf16.vlgmr.msra.gmra.mxu2 %vm3129_vm4, %v2463_v46  ;;  %2508 = vmatmul.msk.bf16.vlgmr.msra.gmra.mxu3 %vm3119_vm3, %v3171_v14  ;;  %v1448_v14 = vpack.c.bf16 %v3251_v1, %v960_v30 }
 0x15a   : > { %1881 = vmatmul.bf16.vlgmr.msra.gmra.mxu0 %v3163_v36  ;;  %v1447_v36 = vpack.c.bf16 %v3230_v43, %v3200_v29  ;;  %v1807_v29 = vpack.c.bf16 0.0, %v3251_v1 }
 0x160   : > { %1527 = vmatmul.bf16.gmra.mxu1 %v1446_v59 }
 0x162   : > { %2467 = vmatmul.msk.bf16.gmra.mxu2 %vm3129_vm4, %v2466_v50  ;;  %2511 = vmatmul.msk.bf16.gmra.mxu3 %vm3119_vm3, %v3215_v32 }
 0x16a   : > { %1886 = vmatmul.bf16.gmra.mxu0 %v3207_v53 }
 0x170   : > { %1532 = vmatmul.bf16.gmra.mxu1 %v1447_v36 }
 0x172   : > { %2470 = vmatmul.msk.bf16.gmra.mxu2 %vm3129_vm4, %v2469_v52  ;;  %2514 = vmatmul.msk.bf16.gmra.mxu3 %vm3119_vm3, %v2308_v2 }
 0x17a   : > { %1891 = vmatmul.bf16.gmra.mxu0 %v1021_v45  ;;  %v2592_v45 = vpack.c.bf16 %v3108_v48, %v1558_v44 }
 0x180   : > { %1537 = vmatmul.bf16.gmra.mxu1 %v1448_v14 }
 0x182   : > { %2473 = vmatmul.msk.bf16.gmra.mxu2 %vm3129_vm4, %v2472_v31  ;;  %2517 = vmatmul.msk.bf16.gmra.mxu3 %vm3119_vm3, %v2516_v11 }
 0x18a   : > { %1896 = vmatmul.bf16.gmra.mxu0 %v1807_v29 }
 0x18d   : > { %v1096_v53 = vpop.f32.mrf.mxu1 }
 0x190   : > { %2584 = vmatmul.msk.bf16.vlgmr.msra.gmra.mxu1 %vm3129_vm4, %v3177_v20 }
 0x195   : > { %v1098_v37 = vpop.f32.mrf.mxu1  ;;  %v1173_v32 = vpop.f32.mrf.mxu2 }
 0x196   : > { %v1174_v22 = vadd.f32 %v1173_v32, %v1096_v53  ;;  %v1287_v19 = vpop.f32.mrf.mxu3 }
 0x197   : > { %v1417_v23 = vpop.f32.mrf.mxu0 }
 0x198   : > { %v1307_v3 = vadd.f32 %v1287_v19, %v1174_v22 }
 0x19a   : > { %v1437_v26 = vadd.f32 %v1417_v23, %v1307_v3 }
 0x19d   : > { %v1101_v27 = vpop.f32.mrf.mxu1  ;;  %v1175_v28 = vpop.f32.mrf.mxu2 }
 0x19e   : > { %v1289_v16 = vpop.f32.mrf.mxu3  ;;  %v1176_v14 = vadd.f32 %v1175_v28, %v1098_v37  ;;  %v3338_v28 = vld [vmem:[%s3378_s4] ss:$0 sm:$0xff] }
 0x19f   : > { %v1419_v13 = vpop.f32.mrf.mxu0 }
 0x1a0   : > { %2587 = vmatmul.msk.bf16.gmra.mxu1 %vm3129_vm4, %v3221_v57  ;;  %v1308_v11 = vadd.f32 %v1289_v16, %v1176_v14 }
 0x1a2   : > { %v1438_v22 = vadd.f32 %v1419_v13, %v1308_v11 }
 0x1a5   : > { %v3302_v43 = vpop.f32.mrf.mxu1  ;;  %v1178_v21 = vpop.f32.mrf.mxu2 }
 0x1a6   : > { %v1179_v33 = vadd.f32 %v1178_v21, %v1101_v27  ;;  %v1292_v20 = vpop.f32.mrf.mxu3 }
 0x1a7   : > { %v1422_v35 = vpop.f32.mrf.mxu0 }
 0x1a8   : > { %v1309_v55 = vadd.f32 %v1292_v20, %v1179_v33 }
 0x1aa   : > { %v1439_v6 = vadd.f32 %v1422_v35, %v1309_v55 }
 0x1ad   : > { %v1106_v62 = vpop.f32.mrf.mxu1  ;;  %v1180_v34 = vpop.f32.mrf.mxu2 }
 0x1ae   : > { %v1294_v38 = vpop.f32.mrf.mxu3  ;;  %v1181_v33 = vadd.f32 %v1180_v34, %v3302_v43 }
 0x1af   : > { %v3304_v63 = vpop.f32.mrf.mxu0 }
 0x1b0   : > { %2590 = vmatmul.msk.bf16.gmra.mxu1 %vm3129_vm4, %v3244_v5  ;;  %v1310_v16 = vadd.f32 %v1294_v38, %v1181_v33 }
 0x1b2   : > { %v1440_v43 = vadd.f32 %v3304_v63, %v1310_v16 }
 0x1b5   : > { %v3309_v25 = vpop.f32.mrf.mxu1  ;;  %v1183_v57 = vpop.f32.mrf.mxu2 }
 0x1b6   : > { %v1184_v8 = vadd.f32 %v1183_v57, %v1106_v62  ;;  %v1297_v39 = vpop.f32.mrf.mxu3 }
 0x1b7   : > { %v1427_v24 = vpop.f32.mrf.mxu0 }
 0x1b8   : > { %v1311_v9 = vadd.f32 %v1297_v39, %v1184_v8 }
 0x1ba   : > { %v1441_v30 = vadd.f32 %v1427_v24, %v1311_v9 }
 0x1bd   : > { %v1111_v51 = vpop.f32.mrf.mxu1  ;;  %v3311_v56 = vpop.f32.mrf.mxu2 }
 0x1be   : > { %v3313_v40 = vpop.f32.mrf.mxu3  ;;  %v1186_v63 = vadd.f32 %v3311_v56, %v3309_v25 }
 0x1bf   : > { %v3316_v18 = vpop.f32.mrf.mxu0 }
 0x1c0   : > { %2593 = vmatmul.msk.bf16.gmra.mxu1 %vm3129_vm4, %v2592_v45 }
 0x1c5   : > { %v3320_v42 = vpop.f32.mrf.mxu1  ;;  %v1188_v47 = vpop.f32.mrf.mxu2 }
 0x1c6   : > { %v1189_v49 = vadd.f32 %v1188_v47, %v1111_v51  ;;  %v1302_v60 = vpop.f32.mrf.mxu3 }
 0x1c7   : > { %v1432_v5 = vpop.f32.mrf.mxu0 }
 0x1c8   : > { %v1313_v2 = vadd.f32 %v1302_v60, %v1189_v49 }
 0x1ca   : > { %v1443_v7 = vadd.f32 %v1432_v5, %v1313_v2 }
 0x1cd   : > { %v1523_v10 = vpop.f32.mrf.mxu1  ;;  %v3322_v48 = vpop.f32.mrf.mxu2 }
 0x1ce   : > { %v1543_v41 = vadd.f32 %v1523_v10, %v1437_v26  ;;  %v3326_v12 = vpop.f32.mrf.mxu3 }
 0x1cf   : > { %v3328_v61 = vpop.f32.mrf.mxu0 }
 0x1d5   : > { %v1525_v1 = vpop.f32.mrf.mxu1  ;;  %v1645_v59 = vpop.f32.mrf.mxu2 }
 0x1d6   : > { %v1776_v58 = vpop.f32.mrf.mxu3  ;;  %v1665_v19 = vadd.f32 %v1645_v59, %v1543_v41  ;;  %v1544_v23 = vadd.f32 %v1525_v1, %v1438_v22  ;;  %v1312_v1 = vadd.f32 %v3313_v40, %v1186_v63 }
 0x1d7   : > { %v1882_v4 = vpop.f32.mrf.mxu0 }
 0x1d8   : > { %v1796_v3 = vadd.f32 %v1776_v58, %v1665_v19 }
 0x1da   : > { %v1902_v20 = vadd.f32 %v1882_v4, %v1796_v3  ;;  %v1442_v4 = vadd.f32 %v3316_v18, %v1312_v1 }
 0x1dd   : > { %v1528_v0 = vpop.f32.mrf.mxu1  ;;  %v1647_v36 = vpop.f32.mrf.mxu2 }
 0x1de   : > { %v1545_v17 = vadd.f32 %v1528_v0, %v1439_v6  ;;  %v1778_v31 = vpop.f32.mrf.mxu3  ;;  %v1666_v26 = vadd.f32 %v1647_v36, %v1544_v23  ;;  %v1191_v23 = vadd.f32 %v3322_v48, %v3320_v42 }
 0x1df   : > { %v1884_v53 = vpop.f32.mrf.mxu0 }
 0x1e0   : > { %v1797_v35 = vadd.f32 %v1778_v31, %v1666_v26 }
 0x1e2   : > { %v1903_v13 = vadd.f32 %v1884_v53, %v1797_v35 }
 0x1e5   : > { %v1530_v54 = vpop.f32.mrf.mxu1  ;;  %v1650_v32 = vpop.f32.mrf.mxu2 }
 0x1e6   : > { %v1781_v27 = vpop.f32.mrf.mxu3  ;;  %v1667_v34 = vadd.f32 %v1650_v32, %v1545_v17  ;;  %v1546_v9 = vadd.f32 %v1530_v54, %v1440_v43 }
 0x1e7   : > { %v1887_v55 = vpop.f32.mrf.mxu0 }
 0x1e8   : > { %v1798_v38 = vadd.f32 %v1781_v27, %v1667_v34 }
 0x1ea   : > { %v1904_v5 = vadd.f32 %v1887_v55, %v1798_v38 }
 0x1ed   : > { %v1533_v46 = vpop.f32.mrf.mxu1  ;;  %v1652_v6 = vpop.f32.mrf.mxu2 }
 0x1ee   : > { %v3324_v15 = vadd.f32 %v1533_v46, %v1441_v30  ;;  %v1783_v39 = vpop.f32.mrf.mxu3  ;;  %v1668_v49 = vadd.f32 %v1652_v6, %v1546_v9 }
 0x1ef   : > { %v1889_v30 = vpop.f32.mrf.mxu0 }
 0x1f5   : > { %v1535_v50 = vpop.f32.mrf.mxu1  ;;  %v1655_v47 = vpop.f32.mrf.mxu2 }
 0x1f6   : > { %v1786_v10 = vpop.f32.mrf.mxu3  ;;  %v1669_v36 = vadd.f32 %v1655_v47, %v3324_v15  ;;  %v1548_v56 = vadd.f32 %v1535_v50, %v1442_v4  ;;  %v1314_v15 = vadd.f32 %v3326_v12, %v1191_v23 }
 0x1f7   : > { %v1892_v17 = vpop.f32.mrf.mxu0 }
 0x1f8   : > { %v1800_v11 = vadd.f32 %v1786_v10, %v1669_v36  ;;  %v1444_v35 = vadd.f32 %v3328_v61, %v1314_v15 }
 0x1fa   : > { %v1906_v3 = vadd.f32 %v1892_v17, %v1800_v11 }
 0x1fd   : > { %v1538_v52 = vpop.f32.mrf.mxu1  ;;  %v1657_v54 = vpop.f32.mrf.mxu2 }
 0x1fe   : > { %v3330_v44 = vadd.f32 %v1538_v52, %v1443_v7  ;;  %v1799_v7 = vadd.f32 %v1783_v39, %v1668_v49  ;;  %v1788_v31 = vpop.f32.mrf.mxu3  ;;  %v1670_v40 = vadd.f32 %v1657_v54, %v1548_v56 }
 0x1ff   : > { %v1894_v22 = vpop.f32.mrf.mxu0 }
 0x200   : > { %v1905_v0 = vadd.f32 %v1889_v30, %v1799_v7  ;;  %v1801_v18 = vadd.f32 %v1788_v31, %v1670_v40 }
 0x202   : > { %v1907_v27 = vadd.f32 %v1894_v22, %v1801_v18 }
 0x205   : > { %v3332_v29 = vpop.f32.mrf.mxu1  ;;  %v1660_v19 = vpop.f32.mrf.mxu2 }
 0x206   : > { %v1791_v50 = vpop.f32.mrf.mxu3  ;;  %v1671_v55 = vadd.f32 %v1660_v19, %v3330_v44  ;;  %v1550_v48 = vadd.f32 %v3332_v29, %v1444_v35 }
 0x208   : > { %v1802_v12 = vadd.f32 %v1791_v50, %v1671_v55 }
 0x20d   : > { %v2004_v21 = vpop.f32.mrf.mxu1  ;;  %v1662_v42 = vpop.f32.mrf.mxu2 }
 0x20e   : > { %v2024_v37 = vadd.f32 %v2004_v21, %v1902_v20  ;;  %v1793_v39 = vpop.f32.mrf.mxu3 }
 0x210   : > { %v2036_v57 = vadd.f32 %v3338_v28, %v2024_v37  ;;  %v1897_v37 = vpop.f32.mrf.mxu0 }
 0x211   : > { %v1908_v43 = vadd.f32 %v1897_v37, %v1802_v12 }
 0x212   : > { %v2044_v51 = vmax.f32 %v2036_v57, 0.0 }
 0x215   : > { %v2006_v62 = vpop.f32.mrf.mxu1 }
 0x216   : > { %v2025_v8 = vadd.f32 %v2006_v62, %v1903_v13  ;;  %v1672_v62 = vadd.f32 %v1662_v42, %v1550_v48 }
 0x218   : > { %v2037_v24 = vadd.f32 %v3338_v28, %v2025_v8  ;;  %v1803_v34 = vadd.f32 %v1793_v39, %v1672_v62 }
 0x21a   : > { %v2045_v45 = vmax.f32 %v2037_v24, 0.0  ;;  %v1899_v24 = vpop.f32.mrf.mxu0 }
 0x21b   : > { %v1909_v44 = vadd.f32 %v1899_v24, %v1803_v34 }
 0x21c   : > { %v2698_v60 = vpack.c.bf16 %v2045_v45, %v2044_v51 }
 0x21d   : > { %v2009_v2 = vpop.f32.mrf.mxu1 }
 0x21e   : > { %2699 = vst [vmem:[%s3348_s24] sm:$0xff] %v2698_v60   ;;  %v2026_v41 = vadd.f32 %v2009_v2, %v1904_v5 }
 0x220   : > { %v2038_v59 = vadd.f32 %v3338_v28, %v2026_v41 }
 0x222   : > { %v2046_v52 = vmax.f32 %v2038_v59, 0.0 }
 0x225   : > { %v2011_v46 = vpop.f32.mrf.mxu1 }
 0x226   : > { %v2027_v58 = vadd.f32 %v2011_v46, %v1905_v0 }
 0x228   : > { %v2039_v25 = vadd.f32 %v3338_v28, %v2027_v58 }
 0x22a   : > { %v2047_v14 = vmax.f32 %v2039_v25, 0.0 }
 0x22c   : > { %v2703_v53 = vpack.c.bf16 %v2047_v14, %v2046_v52 }
 0x22d   : > { %v2014_v32 = vpop.f32.mrf.mxu1 }
 0x22e   : > { %2718 = vst [vmem:[%s3348_s24 + $0x8] sm:$0xff] %v2703_v53   ;;  %v2028_v26 = vadd.f32 %v2014_v32, %v1906_v3 }
 0x230   : > { %v2040_v33 = vadd.f32 %v3338_v28, %v2028_v26 }
 0x232   : > { %v2048_v16 = vmax.f32 %v2040_v33, 0.0 }
 0x235   : > { %v2016_v21 = vpop.f32.mrf.mxu1 }
 0x236   : > { %v2029_v20 = vadd.f32 %v2016_v21, %v1907_v27 }
 0x238   : > { %v2041_v6 = vadd.f32 %v3338_v28, %v2029_v20 }
 0x23a   : > { %v2049_v13 = vmax.f32 %v2041_v6, 0.0 }
 0x23c   : > { %v2708_v57 = vpack.c.bf16 %v2049_v13, %v2048_v16 }
 0x23d   : > { %v2019_v8 = vpop.f32.mrf.mxu1 }
 0x23e   : > { %2719 = vst [vmem:[%s3348_s24 + $0x10] sm:$0xff] %v2708_v57   ;;  %v2030_v61 = vadd.f32 %v2019_v8, %v1908_v43 }
 0x240   : > { %v2042_v30 = vadd.f32 %v3338_v28, %v2030_v61 }
 0x242   : > { %v2050_v45 = vmax.f32 %v2042_v30, 0.0 }
 0x245   : > { %v2021_v9 = vpop.f32.mrf.mxu1 }
 0x246   : > { %v2031_v51 = vadd.f32 %v2021_v9, %v1909_v44 }
 0x248   : > { %v2043_v29 = vadd.f32 %v3338_v28, %v2031_v51 }
 0x24a   : > { %v2051_v47 = vmax.f32 %v2043_v29, 0.0 }
 0x24c   : > { %v2713_v38 = vpack.c.bf16 %v2051_v47, %v2050_v45 }
 0x24e   : > { %2720 = vst [vmem:[%s3348_s24 + $0x18] sm:$0xff] %v2713_v38  }
 0x24f PF: > { %s16_s18 = sadd.s32 1, %s2786_s18  }
 0x250   : > { %p13_p7 = scmp.ge.s32.totalorder %s16_s18, 4  }
 0x252   :  { %15 = sbr.rel (!%p13_p7) target bundleno = 1 (0x1), region = 97 }
 0x257   :  { %2089 = vsyncpa [#allocation5], 1 }
 0x258   :  { %2091 = vsyncpa [#allocation5 + $0x1], 1 }

</bundles_post_ra>
